<compile_context>
chip_gen: v6e
topology: v6e:2x2x1
jax: 0.10.0
libtpu: 0.0.40
codegen_flags: <defaults>
</compile_context>

<pallas_src>
import functools

import jax
import jax.numpy as jnp
import numpy as np
from jax.experimental import pallas as pl
from jax.experimental.pallas import tpu as pltpu

EPS = 1e-5


# ----------------------------------------------------------------------------
# In-kernel helpers
# ----------------------------------------------------------------------------
def _instnorm(y, relu):
    """y: (M, C) = per-sample (spatial, channel). InstanceNorm2d(affine=False)."""
    mean = jnp.mean(y, axis=0, keepdims=True)
    yc = y - mean
    var = jnp.mean(yc * yc, axis=0, keepdims=True)
    y = yc * jax.lax.rsqrt(var + EPS)
    return jnp.maximum(y, 0.0) if relu else y


def _make_extractor_kernel(n_res, c_in, c_out, hh, wh):
    """Builds the fused extractor kernel for one sample per grid step."""
    hw2 = hh * wh

    def conv3x3_reflect(y_flat, w_taps, bias):
        # y_flat: (hw2, c_out); w_taps: (9, c_out, c_out); bias: (1, c_out)
        t = y_flat.reshape(hh, wh, c_out)
        tp = jnp.concatenate([t[1:2], t, t[hh - 2:hh - 1]], axis=0)
        tp = jnp.concatenate([tp[:, 1:2], tp, tp[:, wh - 2:wh - 1]], axis=1)
        acc = jnp.zeros((hw2, c_out), jnp.float32)
        for i in range(3):
            for j in range(3):
                tap = tp[i:i + hh, j:j + wh, :].reshape(hw2, c_out)
                acc = acc + jnp.dot(tap, w_taps[i * 3 + j],
                                    preferred_element_type=jnp.float32)
        return acc + bias

    def kernel(*refs):
        x_ref = refs[0]
        w0 = refs[1][...]                 # (c_in, c_out)
        b0 = refs[2][...]                 # (1, c_out)
        w1 = refs[3][...]                 # (16, c_out, c_out)
        b1 = refs[4][...]                 # (1, c_out)
        o_ref = refs[5 + 4 * n_res]

        # ---- stage 1: Conv2d(1x1) + IN + ReLU (spatial-permutation invariant,
        #      so it runs directly on the phase-packed layout)
        x = x_ref[...].reshape(4 * hw2, c_in)
        y = jnp.dot(x, w0, preferred_element_type=jnp.float32) + b0
        y = _instnorm(y, relu=True)                       # (4*hw2, c_out)

        # ---- stage 2: ReflectionPad2d(1) + Conv2d(4, stride=2) + IN + ReLU
        # row ((a*2+b)*hh + i)*wh + j of y  ==  original pixel (2i+a, 2j+b)
        y4 = y.reshape(4, hh, wh, c_out)
        d = [y4[k] for k in range(4)]                     # d[a*2+b]: phase planes

        def padded_phase(p, q):
            # phase plane (row/col parity p,q) of the reflect-padded image
            t = d[(1 - p) * 2 + (1 - q)]
            t = (jnp.concatenate([t[:1], t], axis=0) if p == 0
                 else jnp.concatenate([t, t[-1:]], axis=0))
            t = (jnp.concatenate([t[:, :1], t], axis=1) if q == 0
                 else jnp.concatenate([t, t[:, -1:]], axis=1))
            return t                                      # (hh+1, wh+1, c_out)

        phases = [[padded_phase(p, q) for q in range(2)] for p in range(2)]
        acc = jnp.zeros((hw2, c_out), jnp.float32)
        for ki in range(4):
            for kj in range(4):
                tap = phases[ki % 2][kj % 2][ki // 2:ki // 2 + hh,
                                             kj // 2:kj // 2 + wh, :]
                acc = acc + jnp.dot(tap.reshape(hw2, c_out), w1[ki * 4 + kj],
                                    preferred_element_type=jnp.float32)
        y = _instnorm(acc + b1, relu=True)                # (hw2, c_out)

        # ---- residual blocks: x + IN(conv3(ReLU(IN(conv3(x)))))
        for r in range(n_res):
            wa = refs[5 + 4 * r][...]
            ba = refs[6 + 4 * r][...]
            wb = refs[7 + 4 * r][...]
            bb = refs[8 + 4 * r][...]
            t = _instnorm(conv3x3_reflect(y, wa, ba), relu=True)
            t = _instnorm(conv3x3_reflect(t, wb, bb), relu=False)
            y = y + t

        # lane-dense store: spatial (hh*wh) on the lane axis
        o_ref[...] = y.T.reshape(1, c_out, hw2)

    return kernel


# ----------------------------------------------------------------------------
# Fused extractor wrapper (single pallas_call)
# ----------------------------------------------------------------------------
def _bcast_spec(arr):
    zeros = (0,) * arr.ndim
    return pl.BlockSpec(arr.shape, lambda n, _z=zeros: _z)


def extractor_forward(packed, x):
    """x: (N, Cin, H, W) NCHW -> (N, Cout, H//2, W//2).  One pallas_call."""
    n, c_in, h, w = x.shape
    assert h % 2 == 0 and w % 2 == 0, "4x4 stride-2 stage assumes even H, W"
    hh, wh = h // 2, w // 2
    c_out = packed["w0"].shape[1]
    n_res = len(packed["res"])

    # phase-major packing: xk[n, (a*2+b)*hh + i, j, c] = x[n, c, 2i+a, 2j+b]
    xk = x.reshape(n, c_in, hh, 2, wh, 2).transpose(0, 3, 5, 2, 4, 1)
    xk = xk.reshape(n, 4 * hh, wh, c_in)

    weights = [packed["w0"], packed["b0"], packed["w1"], packed["b1"]]
    for wa, ba, wb, bb in packed["res"]:
        weights += [wa, ba, wb, bb]

    # NOTE: per-sample VMEM here is only a few tens of KB; for realistic
    # pathology tile sizes add a row-tiled spatial grid axis before ~512x512.
    out = pl.pallas_call(
        _make_extractor_kernel(n_res, c_in, c_out, hh, wh),
        out_shape=jax.ShapeDtypeStruct((n, c_out, hh * wh), jnp.float32),
        grid=(n,),
        in_specs=[pl.BlockSpec((1, 4 * hh, wh, c_in), lambda i: (i, 0, 0, 0))]
                 + [_bcast_spec(a) for a in weights],
        out_specs=pl.BlockSpec((1, c_out, hh * wh), lambda i: (i, 0, 0)),
        compiler_params=pltpu.CompilerParams(dimension_semantics=("parallel",)),
    )(xk, *weights)
    return out.reshape(n, c_out, hh, wh)


# ----------------------------------------------------------------------------
# Preprocessing glue (mirrors the PyTorch forward, NCHW, gather-free)
# ----------------------------------------------------------------------------
@functools.lru_cache(maxsize=None)
def _interp_matrix_align_corners(n_in, n_out):
    """Host-built (n_out, n_in) bilinear interpolation matrix (align_corners)."""
    if n_in == 1:
        return jnp.ones((n_out, 1), jnp.float32)
    m = np.zeros((n_out, n_in), np.float32)
    pos = np.arange(n_out, dtype=np.float64) * (n_in - 1) / (n_out - 1)
    i0 = np.minimum(np.floor(pos).astype(np.int64), n_in - 2)
    frac = (pos - i0).astype(np.float32)
    m[np.arange(n_out), i0] += 1.0 - frac
    m[np.arange(n_out), i0 + 1] += frac
    return jnp.asarray(m)


def bilinear_up2_align_corners(x):
    # F.interpolate(scale_factor=2, mode='bilinear', align_corners=True)
    _, _, h, w = x.shape
    ay = _interp_matrix_align_corners(h, 2 * h)
    ax = _interp_matrix_align_corners(w, 2 * w)
    y = jnp.einsum("oh,nchw->ncow", ay, x)
    return jnp.einsum("ncow,pw->ncop", y, ax)


def pad_to_match(x, ref):
    # F.pad(x, [dx//2, dx - dx//2, dy//2, dy - dy//2]) (zero pad)
    dy = ref.shape[2] - x.shape[2]
    dx = ref.shape[3] - x.shape[3]
    return jnp.pad(x, ((0, 0), (0, 0), (dy // 2, dy - dy // 2),
                       (dx // 2, dx - dx // 2)))


def pathology_block_forward(packed, x1, x2, x3):
    x1 = x1[:, :, ::2, ::2]                      # F.interpolate(0.5, 'nearest')
    x1 = pad_to_match(x1, x2)
    x3 = bilinear_up2_align_corners(x3)
    x3 = pad_to_match(x3, x2)
    x = jnp.concatenate([x1, x2, x3], axis=1)    # (N, Cin, H, W)
    return extractor_forward(packed, x)


# ----------------------------------------------------------------------------
# Parameters (PyTorch layout) + one-time repack into kernel-ready matrices
# ----------------------------------------------------------------------------
def init_params(key, in_features, out_features, n_residual_blocks):
    def conv_param(k, cout, cin, kh, kw):
        kw_, kb_ = jax.random.split(k)
        w = jax.random.normal(kw_, (cout, cin, kh, kw), jnp.float32) * 0.1
        b = jax.random.normal(kb_, (cout,), jnp.float32) * 0.01
        return w, b

    keys = jax.random.split(key, 2 + 2 * n_residual_blocks)
    return {
        "conv0": conv_param(keys[0], out_features, in_features, 1, 1),
        "conv1": conv_param(keys[1], out_features, out_features, 4, 4),
        "res": [(conv_param(keys[2 + 2 * i], out_features, out_features, 3, 3),
                 conv_param(keys[3 + 2 * i], out_features, out_features, 3, 3))
                for i in range(n_residual_blocks)],
    }


def pack_params(params):
    """One-time repack: OIHW conv weights -> per-tap (kh*kw, Cin, Cout) matrices."""
    def w_1x1(w):                       # (Cout, Cin, 1, 1) -> (Cin, Cout)
        co, ci = w.shape[:2]
        return w.reshape(co, ci).T
    def w_taps(w):                      # (Cout, Cin, kh, kw) -> (kh*kw, Cin, Cout)
        co, ci, kh, kw = w.shape
        return jnp.transpose(w, (2, 3, 1, 0)).reshape(kh * kw, ci, co)
    (w0, b0), (w1, b1) = params["conv0"], params["conv1"]
    return {
        "w0": w_1x1(w0), "b0": b0.reshape(1, -1),
        "w1": w_taps(w1), "b1": b1.reshape(1, -1),
        "res": [(w_taps(wa), ba.reshape(1, -1), w_taps(wb), bb.reshape(1, -1))
                for (wa, ba), (wb, bb) in params["res"]],
    }


# ----------------------------------------------------------------------------
# Pure-JAX (XLA conv) reference for numerical validation
# ----------------------------------------------------------------------------
def reference_forward(params, x1, x2, x3):
    def conv(x, w, b, stride=1, reflect_pad=0):
        if reflect_pad:
            p = reflect_pad
            x = jnp.pad(x, ((0, 0), (0, 0), (p, p), (p, p)), mode="reflect")
        y = jax.lax.conv_general_dilated(
            x, w, (stride, stride), "VALID",
            dimension_numbers=("NCHW", "OIHW", "NCHW"))
        return y + b[None, :, None, None]

    def inorm(x, relu):
        mean = jnp.mean(x, axis=(2, 3), keepdims=True)
        var = jnp.mean((x - mean) ** 2, axis=(2, 3), keepdims=True)
        y = (x - mean) * jax.lax.rsqrt(var + EPS)
        return jnp.maximum(y, 0.0) if relu else y

    def bilinear_up2(x):
        n_in_h, n_in_w = x.shape[2], x.shape[3]

        def grid(n_in, n_out):
            pos = jnp.arange(n_out, dtype=jnp.float32) * (n_in - 1) / (n_out - 1)
            i0 = jnp.clip(jnp.floor(pos).astype(jnp.int32), 0, n_in - 2)
            return i0, i0 + 1, pos - i0.astype(jnp.float32)

        y0, y1, wy = grid(n_in_h, 2 * n_in_h)
        c0, c1, wx = grid(n_in_w, 2 * n_in_w)
        rows = (x[:, :, y0, :] * (1.0 - wy)[None, None, :, None]
                + x[:, :, y1, :] * wy[None, None, :, None])
        return (rows[:, :, :, c0] * (1.0 - wx)[None, None, None, :]
                + rows[:, :, :, c1] * wx[None, None, None, :])

    x1 = x1[:, :, ::2, ::2]
    x1 = pad_to_match(x1, x2)
    x3 = bilinear_up2(x3)
    x3 = pad_to_match(x3, x2)
    x = jnp.concatenate([x1, x2, x3], axis=1)

    (w0, b0), (w1, b1) = params["conv0"], params["conv1"]
    y = inorm(conv(x, w0, b0), True)
    y = inorm(conv(y, w1, b1, stride=2, reflect_pad=1), True)
    for (wa, ba), (wb, bb) in params["res"]:
        t = inorm(conv(y, wa, ba, reflect_pad=1), True)
        t = inorm(conv(t, wb, bb, reflect_pad=1), False)
        y = y + t
    return y


# ----------------------------------------------------------------------------
if __name__ == "__main__":
    key = jax.random.PRNGKey(0)
    k1, k2, k3, kp = jax.random.split(key, 4)

    N = 2
    C1 = C2 = C3 = 4
    H2 = W2 = 16
    # x1 at 2x spatial of x2 (nearest-down by 0.5), x3 at 0.5x (bilinear-up by 2)
    x1 = jax.random.normal(k1, (N, C1, 2 * H2, 2 * W2), jnp.float32)
    x2 = jax.random.normal(k2, (N, C2, H2, W2), jnp.float32)
    x3 = jax.random.normal(k3, (N, C3, H2 // 2, W2 // 2), jnp.float32)

    in_features = C1 + C2 + C3      # 12
    out_features = 8
    n_residual_blocks = 2

    params = init_params(kp, in_features, out_features, n_residual_blocks)
    packed = pack_params(params)    # one-time weight repack (no per-step transposes)

    fwd = jax.jit(pathology_block_forward)
    out = jax.block_until_ready(fwd(packed, x1, x2, x3))

    assert out.shape == (N, out_features, H2 // 2, W2 // 2), out.shape
    assert bool(jnp.all(jnp.isfinite(out)))

    # numerical check against a pure-XLA reference of the same module
    ref = jax.block_until_ready(jax.jit(reference_forward)(params, x1, x2, x3))
    max_err = float(jnp.max(jnp.abs(out - ref)))
    assert max_err < 2e-3, f"mismatch vs reference: {max_err}"

    print("KERNEL_OK")
</pallas_src>

<mosaic_0001>
module attributes {stable_mosaic.version = 11 : i64} {
  func.func @kernel(%arg0: i32, %arg1: memref<1x32x8x12xf32, #tpu.memory_space<vmem>>, %arg2: memref<12x8xf32, #tpu.memory_space<vmem>>, %arg3: memref<1x8xf32, #tpu.memory_space<vmem>>, %arg4: memref<16x8x8xf32, #tpu.memory_space<vmem>>, %arg5: memref<1x8xf32, #tpu.memory_space<vmem>>, %arg6: memref<9x8x8xf32, #tpu.memory_space<vmem>>, %arg7: memref<1x8xf32, #tpu.memory_space<vmem>>, %arg8: memref<9x8x8xf32, #tpu.memory_space<vmem>>, %arg9: memref<1x8xf32, #tpu.memory_space<vmem>>, %arg10: memref<9x8x8xf32, #tpu.memory_space<vmem>>, %arg11: memref<1x8xf32, #tpu.memory_space<vmem>>, %arg12: memref<9x8x8xf32, #tpu.memory_space<vmem>>, %arg13: memref<1x8xf32, #tpu.memory_space<vmem>>, %arg14: memref<1x8x64xf32, #tpu.memory_space<vmem>>) attributes {dimension_semantics = [#tpu.dimension_semantics<parallel>], iteration_bounds = array<i64: 2>, scalar_prefetch = 0 : i64, scratch_operands = 0 : i64, tpu.core_type = #tpu.core_type<tc>, window_params = [{transform_indices = @transform_0, window_bounds = array<i64: 1, 32, 8, 12>}, {pipeline_mode = #tpu.pipeline_mode<synchronous>, transform_indices = @transform_1, window_bounds = array<i64: 12, 8>}, {pipeline_mode = #tpu.pipeline_mode<synchronous>, transform_indices = @transform_2, window_bounds = array<i64: 1, 8>}, {pipeline_mode = #tpu.pipeline_mode<synchronous>, transform_indices = @transform_3, window_bounds = array<i64: 16, 8, 8>}, {pipeline_mode = #tpu.pipeline_mode<synchronous>, transform_indices = @transform_4, window_bounds = array<i64: 1, 8>}, {pipeline_mode = #tpu.pipeline_mode<synchronous>, transform_indices = @transform_5, window_bounds = array<i64: 9, 8, 8>}, {pipeline_mode = #tpu.pipeline_mode<synchronous>, transform_indices = @transform_6, window_bounds = array<i64: 1, 8>}, {pipeline_mode = #tpu.pipeline_mode<synchronous>, transform_indices = @transform_7, window_bounds = array<i64: 9, 8, 8>}, {pipeline_mode = #tpu.pipeline_mode<synchronous>, transform_indices = @transform_8, window_bounds = array<i64: 1, 8>}, {pipeline_mode = #tpu.pipeline_mode<synchronous>, transform_indices = @transform_9, window_bounds = array<i64: 9, 8, 8>}, {pipeline_mode = #tpu.pipeline_mode<synchronous>, transform_indices = @transform_10, window_bounds = array<i64: 1, 8>}, {pipeline_mode = #tpu.pipeline_mode<synchronous>, transform_indices = @transform_11, window_bounds = array<i64: 9, 8, 8>}, {pipeline_mode = #tpu.pipeline_mode<synchronous>, transform_indices = @transform_12, window_bounds = array<i64: 1, 8>}, {transform_indices = @transform_13, window_bounds = array<i64: 1, 8, 64>}]} {
    %c0 = arith.constant 0 : index
    %c0_0 = arith.constant 0 : index
    %0 = vector.load %arg2[%c0, %c0_0] : memref<12x8xf32, #tpu.memory_space<vmem>>, vector<12x8xf32>
    %c0_1 = arith.constant 0 : index
    %c0_2 = arith.constant 0 : index
    %1 = vector.load %arg3[%c0_1, %c0_2] : memref<1x8xf32, #tpu.memory_space<vmem>>, vector<1x8xf32>
    %c0_3 = arith.constant 0 : index
    %c0_4 = arith.constant 0 : index
    %c0_5 = arith.constant 0 : index
    %2 = vector.load %arg4[%c0_3, %c0_4, %c0_5] : memref<16x8x8xf32, #tpu.memory_space<vmem>>, vector<16x8x8xf32>
    %c0_6 = arith.constant 0 : index
    %c0_7 = arith.constant 0 : index
    %3 = vector.load %arg5[%c0_6, %c0_7] : memref<1x8xf32, #tpu.memory_space<vmem>>, vector<1x8xf32>
    %c0_8 = arith.constant 0 : index
    %c0_9 = arith.constant 0 : index
    %c0_10 = arith.constant 0 : index
    %c0_11 = arith.constant 0 : index
    %4 = vector.load %arg1[%c0_8, %c0_9, %c0_10, %c0_11] : memref<1x32x8x12xf32, #tpu.memory_space<vmem>>, vector<1x32x8x12xf32>
    %5 = vector.shape_cast %4 : vector<1x32x8x12xf32> to vector<256x12xf32>
    %cst = arith.constant dense<0.000000e+00> : vector<256x8xf32>
    %6 = tpu.matmul %5, %0, %cst {dimension_numbers = #tpu.dot_dimension_numbers<[1], [0], [0], [1], [0, 0, 1, 1], [], []>} : vector<256x12xf32>, vector<12x8xf32>, vector<256x8xf32> -> vector<256x8xf32>
    %7 = vector.broadcast %1 : vector<1x8xf32> to vector<256x8xf32>
    %8 = arith.addf %6, %7 : vector<256x8xf32>
    %cst_12 = arith.constant dense<0.000000e+00> : vector<8xf32>
    %9 = vector.multi_reduction <add>, %8, %cst_12 [0] : vector<256x8xf32> to vector<8xf32>
    %10 = vector.shape_cast %9 : vector<8xf32> to vector<1x8xf32>
    %cst_13 = arith.constant 2.560000e+02 : f32
    %11 = vector.broadcast %cst_13 : f32 to vector<1x8xf32>
    %12 = arith.divf %10, %11 : vector<1x8xf32>
    %13 = vector.broadcast %12 : vector<1x8xf32> to vector<256x8xf32>
    %14 = arith.subf %8, %13 : vector<256x8xf32>
    %15 = arith.mulf %14, %14 : vector<256x8xf32>
    %cst_14 = arith.constant dense<0.000000e+00> : vector<8xf32>
    %16 = vector.multi_reduction <add>, %15, %cst_14 [0] : vector<256x8xf32> to vector<8xf32>
    %17 = vector.shape_cast %16 : vector<8xf32> to vector<1x8xf32>
    %cst_15 = arith.constant 2.560000e+02 : f32
    %18 = vector.broadcast %cst_15 : f32 to vector<1x8xf32>
    %19 = arith.divf %17, %18 : vector<1x8xf32>
    %cst_16 = arith.constant 9.99999974E-6 : f32
    %20 = vector.broadcast %cst_16 : f32 to vector<1x8xf32>
    %21 = arith.addf %19, %20 : vector<1x8xf32>
    %22 = math.rsqrt %21 : vector<1x8xf32>
    %23 = vector.broadcast %22 : vector<1x8xf32> to vector<256x8xf32>
    %24 = arith.mulf %14, %23 : vector<256x8xf32>
    %cst_17 = arith.constant 0.000000e+00 : f32
    %25 = vector.broadcast %cst_17 : f32 to vector<256x8xf32>
    %26 = arith.maximumf %24, %25 : vector<256x8xf32>
    %27 = vector.shape_cast %26 : vector<256x8xf32> to vector<4x8x8x8xf32>
    %28 = vector.extract_strided_slice %27 {offsets = [0, 0, 0, 0], sizes = [1, 8, 8, 8], strides = [1, 1, 1, 1]} : vector<4x8x8x8xf32> to vector<1x8x8x8xf32>
    %29 = vector.shape_cast %28 : vector<1x8x8x8xf32> to vector<8x8x8xf32>
    %30 = vector.extract_strided_slice %27 {offsets = [1, 0, 0, 0], sizes = [1, 8, 8, 8], strides = [1, 1, 1, 1]} : vector<4x8x8x8xf32> to vector<1x8x8x8xf32>
    %31 = vector.shape_cast %30 : vector<1x8x8x8xf32> to vector<8x8x8xf32>
    %32 = vector.extract_strided_slice %27 {offsets = [2, 0, 0, 0], sizes = [1, 8, 8, 8], strides = [1, 1, 1, 1]} : vector<4x8x8x8xf32> to vector<1x8x8x8xf32>
    %33 = vector.shape_cast %32 : vector<1x8x8x8xf32> to vector<8x8x8xf32>
    %34 = vector.extract_strided_slice %27 {offsets = [3, 0, 0, 0], sizes = [1, 8, 8, 8], strides = [1, 1, 1, 1]} : vector<4x8x8x8xf32> to vector<1x8x8x8xf32>
    %35 = vector.shape_cast %34 : vector<1x8x8x8xf32> to vector<8x8x8xf32>
    %36 = vector.extract_strided_slice %35 {offsets = [0, 0, 0], sizes = [1, 8, 8], strides = [1, 1, 1]} : vector<8x8x8xf32> to vector<1x8x8xf32>
    %37 = tpu.concatenate %36, %35 in 0 : vector<1x8x8xf32>, vector<8x8x8xf32> -> vector<9x8x8xf32>
    %38 = vector.extract_strided_slice %37 {offsets = [0, 0, 0], sizes = [9, 1, 8], strides = [1, 1, 1]} : vector<9x8x8xf32> to vector<9x1x8xf32>
    %39 = tpu.concatenate %38, %37 in 1 : vector<9x1x8xf32>, vector<9x8x8xf32> -> vector<9x9x8xf32>
    %40 = vector.extract_strided_slice %33 {offsets = [0, 0, 0], sizes = [1, 8, 8], strides = [1, 1, 1]} : vector<8x8x8xf32> to vector<1x8x8xf32>
    %41 = tpu.concatenate %40, %33 in 0 : vector<1x8x8xf32>, vector<8x8x8xf32> -> vector<9x8x8xf32>
    %42 = vector.extract_strided_slice %41 {offsets = [0, 7, 0], sizes = [9, 1, 8], strides = [1, 1, 1]} : vector<9x8x8xf32> to vector<9x1x8xf32>
    %43 = tpu.concatenate %41, %42 in 1 : vector<9x8x8xf32>, vector<9x1x8xf32> -> vector<9x9x8xf32>
    %44 = vector.extract_strided_slice %31 {offsets = [7, 0, 0], sizes = [1, 8, 8], strides = [1, 1, 1]} : vector<8x8x8xf32> to vector<1x8x8xf32>
    %45 = tpu.concatenate %31, %44 in 0 : vector<8x8x8xf32>, vector<1x8x8xf32> -> vector<9x8x8xf32>
    %46 = vector.extract_strided_slice %45 {offsets = [0, 0, 0], sizes = [9, 1, 8], strides = [1, 1, 1]} : vector<9x8x8xf32> to vector<9x1x8xf32>
    %47 = tpu.concatenate %46, %45 in 1 : vector<9x1x8xf32>, vector<9x8x8xf32> -> vector<9x9x8xf32>
    %48 = vector.extract_strided_slice %29 {offsets = [7, 0, 0], sizes = [1, 8, 8], strides = [1, 1, 1]} : vector<8x8x8xf32> to vector<1x8x8xf32>
    %49 = tpu.concatenate %29, %48 in 0 : vector<8x8x8xf32>, vector<1x8x8xf32> -> vector<9x8x8xf32>
    %50 = vector.extract_strided_slice %49 {offsets = [0, 7, 0], sizes = [9, 1, 8], strides = [1, 1, 1]} : vector<9x8x8xf32> to vector<9x1x8xf32>
    %51 = tpu.concatenate %49, %50 in 1 : vector<9x8x8xf32>, vector<9x1x8xf32> -> vector<9x9x8xf32>
    %cst_18 = arith.constant 0.000000e+00 : f32
    %52 = vector.broadcast %cst_18 : f32 to vector<64x8xf32>
    %53 = vector.extract_strided_slice %39 {offsets = [0, 0, 0], sizes = [8, 8, 8], strides = [1, 1, 1]} : vector<9x9x8xf32> to vector<8x8x8xf32>
    %54 = vector.shape_cast %53 : vector<8x8x8xf32> to vector<64x8xf32>
    %55 = vector.extract_strided_slice %2 {offsets = [0, 0, 0], sizes = [1, 8, 8], strides = [1, 1, 1]} : vector<16x8x8xf32> to vector<1x8x8xf32>
    %56 = vector.shape_cast %55 : vector<1x8x8xf32> to vector<8x8xf32>
    %cst_19 = arith.constant dense<0.000000e+00> : vector<64x8xf32>
    %57 = tpu.matmul %54, %56, %cst_19 {dimension_numbers = #tpu.dot_dimension_numbers<[1], [0], [0], [1], [0, 0, 1, 1], [], []>} : vector<64x8xf32>, vector<8x8xf32>, vector<64x8xf32> -> vector<64x8xf32>
    %58 = arith.addf %52, %57 : vector<64x8xf32>
    %59 = vector.extract_strided_slice %43 {offsets = [0, 0, 0], sizes = [8, 8, 8], strides = [1, 1, 1]} : vector<9x9x8xf32> to vector<8x8x8xf32>
    %60 = vector.shape_cast %59 : vector<8x8x8xf32> to vector<64x8xf32>
    %61 = vector.extract_strided_slice %2 {offsets = [1, 0, 0], sizes = [1, 8, 8], strides = [1, 1, 1]} : vector<16x8x8xf32> to vector<1x8x8xf32>
    %62 = vector.shape_cast %61 : vector<1x8x8xf32> to vector<8x8xf32>
    %cst_20 = arith.constant dense<0.000000e+00> : vector<64x8xf32>
    %63 = tpu.matmul %60, %62, %cst_20 {dimension_numbers = #tpu.dot_dimension_numbers<[1], [0], [0], [1], [0, 0, 1, 1], [], []>} : vector<64x8xf32>, vector<8x8xf32>, vector<64x8xf32> -> vector<64x8xf32>
    %64 = arith.addf %58, %63 : vector<64x8xf32>
    %65 = vector.extract_strided_slice %39 {offsets = [0, 1, 0], sizes = [8, 8, 8], strides = [1, 1, 1]} : vector<9x9x8xf32> to vector<8x8x8xf32>
    %66 = vector.shape_cast %65 : vector<8x8x8xf32> to vector<64x8xf32>
    %67 = vector.extract_strided_slice %2 {offsets = [2, 0, 0], sizes = [1, 8, 8], strides = [1, 1, 1]} : vector<16x8x8xf32> to vector<1x8x8xf32>
    %68 = vector.shape_cast %67 : vector<1x8x8xf32> to vector<8x8xf32>
    %cst_21 = arith.constant dense<0.000000e+00> : vector<64x8xf32>
    %69 = tpu.matmul %66, %68, %cst_21 {dimension_numbers = #tpu.dot_dimension_numbers<[1], [0], [0], [1], [0, 0, 1, 1], [], []>} : vector<64x8xf32>, vector<8x8xf32>, vector<64x8xf32> -> vector<64x8xf32>
    %70 = arith.addf %64, %69 : vector<64x8xf32>
    %71 = vector.extract_strided_slice %43 {offsets = [0, 1, 0], sizes = [8, 8, 8], strides = [1, 1, 1]} : vector<9x9x8xf32> to vector<8x8x8xf32>
    %72 = vector.shape_cast %71 : vector<8x8x8xf32> to vector<64x8xf32>
    %73 = vector.extract_strided_slice %2 {offsets = [3, 0, 0], sizes = [1, 8, 8], strides = [1, 1, 1]} : vector<16x8x8xf32> to vector<1x8x8xf32>
    %74 = vector.shape_cast %73 : vector<1x8x8xf32> to vector<8x8xf32>
    %cst_22 = arith.constant dense<0.000000e+00> : vector<64x8xf32>
    %75 = tpu.matmul %72, %74, %cst_22 {dimension_numbers = #tpu.dot_dimension_numbers<[1], [0], [0], [1], [0, 0, 1, 1], [], []>} : vector<64x8xf32>, vector<8x8xf32>, vector<64x8xf32> -> vector<64x8xf32>
    %76 = arith.addf %70, %75 : vector<64x8xf32>
    %77 = vector.extract_strided_slice %47 {offsets = [0, 0, 0], sizes = [8, 8, 8], strides = [1, 1, 1]} : vector<9x9x8xf32> to vector<8x8x8xf32>
    %78 = vector.shape_cast %77 : vector<8x8x8xf32> to vector<64x8xf32>
    %79 = vector.extract_strided_slice %2 {offsets = [4, 0, 0], sizes = [1, 8, 8], strides = [1, 1, 1]} : vector<16x8x8xf32> to vector<1x8x8xf32>
    %80 = vector.shape_cast %79 : vector<1x8x8xf32> to vector<8x8xf32>
    %cst_23 = arith.constant dense<0.000000e+00> : vector<64x8xf32>
    %81 = tpu.matmul %78, %80, %cst_23 {dimension_numbers = #tpu.dot_dimension_numbers<[1], [0], [0], [1], [0, 0, 1, 1], [], []>} : vector<64x8xf32>, vector<8x8xf32>, vector<64x8xf32> -> vector<64x8xf32>
    %82 = arith.addf %76, %81 : vector<64x8xf32>
    %83 = vector.extract_strided_slice %51 {offsets = [0, 0, 0], sizes = [8, 8, 8], strides = [1, 1, 1]} : vector<9x9x8xf32> to vector<8x8x8xf32>
    %84 = vector.shape_cast %83 : vector<8x8x8xf32> to vector<64x8xf32>
    %85 = vector.extract_strided_slice %2 {offsets = [5, 0, 0], sizes = [1, 8, 8], strides = [1, 1, 1]} : vector<16x8x8xf32> to vector<1x8x8xf32>
    %86 = vector.shape_cast %85 : vector<1x8x8xf32> to vector<8x8xf32>
    %cst_24 = arith.constant dense<0.000000e+00> : vector<64x8xf32>
    %87 = tpu.matmul %84, %86, %cst_24 {dimension_numbers = #tpu.dot_dimension_numbers<[1], [0], [0], [1], [0, 0, 1, 1], [], []>} : vector<64x8xf32>, vector<8x8xf32>, vector<64x8xf32> -> vector<64x8xf32>
    %88 = arith.addf %82, %87 : vector<64x8xf32>
    %89 = vector.extract_strided_slice %47 {offsets = [0, 1, 0], sizes = [8, 8, 8], strides = [1, 1, 1]} : vector<9x9x8xf32> to vector<8x8x8xf32>
    %90 = vector.shape_cast %89 : vector<8x8x8xf32> to vector<64x8xf32>
    %91 = vector.extract_strided_slice %2 {offsets = [6, 0, 0], sizes = [1, 8, 8], strides = [1, 1, 1]} : vector<16x8x8xf32> to vector<1x8x8xf32>
    %92 = vector.shape_cast %91 : vector<1x8x8xf32> to vector<8x8xf32>
    %cst_25 = arith.constant dense<0.000000e+00> : vector<64x8xf32>
    %93 = tpu.matmul %90, %92, %cst_25 {dimension_numbers = #tpu.dot_dimension_numbers<[1], [0], [0], [1], [0, 0, 1, 1], [], []>} : vector<64x8xf32>, vector<8x8xf32>, vector<64x8xf32> -> vector<64x8xf32>
    %94 = arith.addf %88, %93 : vector<64x8xf32>
    %95 = vector.extract_strided_slice %51 {offsets = [0, 1, 0], sizes = [8, 8, 8], strides = [1, 1, 1]} : vector<9x9x8xf32> to vector<8x8x8xf32>
    %96 = vector.shape_cast %95 : vector<8x8x8xf32> to vector<64x8xf32>
    %97 = vector.extract_strided_slice %2 {offsets = [7, 0, 0], sizes = [1, 8, 8], strides = [1, 1, 1]} : vector<16x8x8xf32> to vector<1x8x8xf32>
    %98 = vector.shape_cast %97 : vector<1x8x8xf32> to vector<8x8xf32>
    %cst_26 = arith.constant dense<0.000000e+00> : vector<64x8xf32>
    %99 = tpu.matmul %96, %98, %cst_26 {dimension_numbers = #tpu.dot_dimension_numbers<[1], [0], [0], [1], [0, 0, 1, 1], [], []>} : vector<64x8xf32>, vector<8x8xf32>, vector<64x8xf32> -> vector<64x8xf32>
    %100 = arith.addf %94, %99 : vector<64x8xf32>
    %101 = vector.extract_strided_slice %39 {offsets = [1, 0, 0], sizes = [8, 8, 8], strides = [1, 1, 1]} : vector<9x9x8xf32> to vector<8x8x8xf32>
    %102 = vector.shape_cast %101 : vector<8x8x8xf32> to vector<64x8xf32>
    %103 = vector.extract_strided_slice %2 {offsets = [8, 0, 0], sizes = [1, 8, 8], strides = [1, 1, 1]} : vector<16x8x8xf32> to vector<1x8x8xf32>
    %104 = vector.shape_cast %103 : vector<1x8x8xf32> to vector<8x8xf32>
    %cst_27 = arith.constant dense<0.000000e+00> : vector<64x8xf32>
    %105 = tpu.matmul %102, %104, %cst_27 {dimension_numbers = #tpu.dot_dimension_numbers<[1], [0], [0], [1], [0, 0, 1, 1], [], []>} : vector<64x8xf32>, vector<8x8xf32>, vector<64x8xf32> -> vector<64x8xf32>
    %106 = arith.addf %100, %105 : vector<64x8xf32>
    %107 = vector.extract_strided_slice %43 {offsets = [1, 0, 0], sizes = [8, 8, 8], strides = [1, 1, 1]} : vector<9x9x8xf32> to vector<8x8x8xf32>
    %108 = vector.shape_cast %107 : vector<8x8x8xf32> to vector<64x8xf32>
    %109 = vector.extract_strided_slice %2 {offsets = [9, 0, 0], sizes = [1, 8, 8], strides = [1, 1, 1]} : vector<16x8x8xf32> to vector<1x8x8xf32>
    %110 = vector.shape_cast %109 : vector<1x8x8xf32> to vector<8x8xf32>
    %cst_28 = arith.constant dense<0.000000e+00> : vector<64x8xf32>
    %111 = tpu.matmul %108, %110, %cst_28 {dimension_numbers = #tpu.dot_dimension_numbers<[1], [0], [0], [1], [0, 0, 1, 1], [], []>} : vector<64x8xf32>, vector<8x8xf32>, vector<64x8xf32> -> vector<64x8xf32>
    %112 = arith.addf %106, %111 : vector<64x8xf32>
    %113 = vector.extract_strided_slice %39 {offsets = [1, 1, 0], sizes = [8, 8, 8], strides = [1, 1, 1]} : vector<9x9x8xf32> to vector<8x8x8xf32>
    %114 = vector.shape_cast %113 : vector<8x8x8xf32> to vector<64x8xf32>
    %115 = vector.extract_strided_slice %2 {offsets = [10, 0, 0], sizes = [1, 8, 8], strides = [1, 1, 1]} : vector<16x8x8xf32> to vector<1x8x8xf32>
    %116 = vector.shape_cast %115 : vector<1x8x8xf32> to vector<8x8xf32>
    %cst_29 = arith.constant dense<0.000000e+00> : vector<64x8xf32>
    %117 = tpu.matmul %114, %116, %cst_29 {dimension_numbers = #tpu.dot_dimension_numbers<[1], [0], [0], [1], [0, 0, 1, 1], [], []>} : vector<64x8xf32>, vector<8x8xf32>, vector<64x8xf32> -> vector<64x8xf32>
    %118 = arith.addf %112, %117 : vector<64x8xf32>
    %119 = vector.extract_strided_slice %43 {offsets = [1, 1, 0], sizes = [8, 8, 8], strides = [1, 1, 1]} : vector<9x9x8xf32> to vector<8x8x8xf32>
    %120 = vector.shape_cast %119 : vector<8x8x8xf32> to vector<64x8xf32>
    %121 = vector.extract_strided_slice %2 {offsets = [11, 0, 0], sizes = [1, 8, 8], strides = [1, 1, 1]} : vector<16x8x8xf32> to vector<1x8x8xf32>
    %122 = vector.shape_cast %121 : vector<1x8x8xf32> to vector<8x8xf32>
    %cst_30 = arith.constant dense<0.000000e+00> : vector<64x8xf32>
    %123 = tpu.matmul %120, %122, %cst_30 {dimension_numbers = #tpu.dot_dimension_numbers<[1], [0], [0], [1], [0, 0, 1, 1], [], []>} : vector<64x8xf32>, vector<8x8xf32>, vector<64x8xf32> -> vector<64x8xf32>
    %124 = arith.addf %118, %123 : vector<64x8xf32>
    %125 = vector.extract_strided_slice %47 {offsets = [1, 0, 0], sizes = [8, 8, 8], strides = [1, 1, 1]} : vector<9x9x8xf32> to vector<8x8x8xf32>
    %126 = vector.shape_cast %125 : vector<8x8x8xf32> to vector<64x8xf32>
    %127 = vector.extract_strided_slice %2 {offsets = [12, 0, 0], sizes = [1, 8, 8], strides = [1, 1, 1]} : vector<16x8x8xf32> to vector<1x8x8xf32>
    %128 = vector.shape_cast %127 : vector<1x8x8xf32> to vector<8x8xf32>
    %cst_31 = arith.constant dense<0.000000e+00> : vector<64x8xf32>
    %129 = tpu.matmul %126, %128, %cst_31 {dimension_numbers = #tpu.dot_dimension_numbers<[1], [0], [0], [1], [0, 0, 1, 1], [], []>} : vector<64x8xf32>, vector<8x8xf32>, vector<64x8xf32> -> vector<64x8xf32>
    %130 = arith.addf %124, %129 : vector<64x8xf32>
    %131 = vector.extract_strided_slice %51 {offsets = [1, 0, 0], sizes = [8, 8, 8], strides = [1, 1, 1]} : vector<9x9x8xf32> to vector<8x8x8xf32>
    %132 = vector.shape_cast %131 : vector<8x8x8xf32> to vector<64x8xf32>
    %133 = vector.extract_strided_slice %2 {offsets = [13, 0, 0], sizes = [1, 8, 8], strides = [1, 1, 1]} : vector<16x8x8xf32> to vector<1x8x8xf32>
    %134 = vector.shape_cast %133 : vector<1x8x8xf32> to vector<8x8xf32>
    %cst_32 = arith.constant dense<0.000000e+00> : vector<64x8xf32>
    %135 = tpu.matmul %132, %134, %cst_32 {dimension_numbers = #tpu.dot_dimension_numbers<[1], [0], [0], [1], [0, 0, 1, 1], [], []>} : vector<64x8xf32>, vector<8x8xf32>, vector<64x8xf32> -> vector<64x8xf32>
    %136 = arith.addf %130, %135 : vector<64x8xf32>
    %137 = vector.extract_strided_slice %47 {offsets = [1, 1, 0], sizes = [8, 8, 8], strides = [1, 1, 1]} : vector<9x9x8xf32> to vector<8x8x8xf32>
    %138 = vector.shape_cast %137 : vector<8x8x8xf32> to vector<64x8xf32>
    %139 = vector.extract_strided_slice %2 {offsets = [14, 0, 0], sizes = [1, 8, 8], strides = [1, 1, 1]} : vector<16x8x8xf32> to vector<1x8x8xf32>
    %140 = vector.shape_cast %139 : vector<1x8x8xf32> to vector<8x8xf32>
    %cst_33 = arith.constant dense<0.000000e+00> : vector<64x8xf32>
    %141 = tpu.matmul %138, %140, %cst_33 {dimension_numbers = #tpu.dot_dimension_numbers<[1], [0], [0], [1], [0, 0, 1, 1], [], []>} : vector<64x8xf32>, vector<8x8xf32>, vector<64x8xf32> -> vector<64x8xf32>
    %142 = arith.addf %136, %141 : vector<64x8xf32>
    %143 = vector.extract_strided_slice %51 {offsets = [1, 1, 0], sizes = [8, 8, 8], strides = [1, 1, 1]} : vector<9x9x8xf32> to vector<8x8x8xf32>
    %144 = vector.shape_cast %143 : vector<8x8x8xf32> to vector<64x8xf32>
    %145 = vector.extract_strided_slice %2 {offsets = [15, 0, 0], sizes = [1, 8, 8], strides = [1, 1, 1]} : vector<16x8x8xf32> to vector<1x8x8xf32>
    %146 = vector.shape_cast %145 : vector<1x8x8xf32> to vector<8x8xf32>
    %cst_34 = arith.constant dense<0.000000e+00> : vector<64x8xf32>
    %147 = tpu.matmul %144, %146, %cst_34 {dimension_numbers = #tpu.dot_dimension_numbers<[1], [0], [0], [1], [0, 0, 1, 1], [], []>} : vector<64x8xf32>, vector<8x8xf32>, vector<64x8xf32> -> vector<64x8xf32>
    %148 = arith.addf %142, %147 : vector<64x8xf32>
    %149 = vector.broadcast %3 : vector<1x8xf32> to vector<64x8xf32>
    %150 = arith.addf %148, %149 : vector<64x8xf32>
    %cst_35 = arith.constant dense<0.000000e+00> : vector<8xf32>
    %151 = vector.multi_reduction <add>, %150, %cst_35 [0] : vector<64x8xf32> to vector<8xf32>
    %152 = vector.shape_cast %151 : vector<8xf32> to vector<1x8xf32>
    %cst_36 = arith.constant 6.400000e+01 : f32
    %153 = vector.broadcast %cst_36 : f32 to vector<1x8xf32>
    %154 = arith.divf %152, %153 : vector<1x8xf32>
    %155 = vector.broadcast %154 : vector<1x8xf32> to vector<64x8xf32>
    %156 = arith.subf %150, %155 : vector<64x8xf32>
    %157 = arith.mulf %156, %156 : vector<64x8xf32>
    %cst_37 = arith.constant dense<0.000000e+00> : vector<8xf32>
    %158 = vector.multi_reduction <add>, %157, %cst_37 [0] : vector<64x8xf32> to vector<8xf32>
    %159 = vector.shape_cast %158 : vector<8xf32> to vector<1x8xf32>
    %cst_38 = arith.constant 6.400000e+01 : f32
    %160 = vector.broadcast %cst_38 : f32 to vector<1x8xf32>
    %161 = arith.divf %159, %160 : vector<1x8xf32>
    %cst_39 = arith.constant 9.99999974E-6 : f32
    %162 = vector.broadcast %cst_39 : f32 to vector<1x8xf32>
    %163 = arith.addf %161, %162 : vector<1x8xf32>
    %164 = math.rsqrt %163 : vector<1x8xf32>
    %165 = vector.broadcast %164 : vector<1x8xf32> to vector<64x8xf32>
    %166 = arith.mulf %156, %165 : vector<64x8xf32>
    %cst_40 = arith.constant 0.000000e+00 : f32
    %167 = vector.broadcast %cst_40 : f32 to vector<64x8xf32>
    %168 = arith.maximumf %166, %167 : vector<64x8xf32>
    %c0_41 = arith.constant 0 : index
    %c0_42 = arith.constant 0 : index
    %c0_43 = arith.constant 0 : index
    %169 = vector.load %arg6[%c0_41, %c0_42, %c0_43] : memref<9x8x8xf32, #tpu.memory_space<vmem>>, vector<9x8x8xf32>
    %c0_44 = arith.constant 0 : index
    %c0_45 = arith.constant 0 : index
    %170 = vector.load %arg7[%c0_44, %c0_45] : memref<1x8xf32, #tpu.memory_space<vmem>>, vector<1x8xf32>
    %c0_46 = arith.constant 0 : index
    %c0_47 = arith.constant 0 : index
    %c0_48 = arith.constant 0 : index
    %171 = vector.load %arg8[%c0_46, %c0_47, %c0_48] : memref<9x8x8xf32, #tpu.memory_space<vmem>>, vector<9x8x8xf32>
    %c0_49 = arith.constant 0 : index
    %c0_50 = arith.constant 0 : index
    %172 = vector.load %arg9[%c0_49, %c0_50] : memref<1x8xf32, #tpu.memory_space<vmem>>, vector<1x8xf32>
    %173 = vector.shape_cast %168 : vector<64x8xf32> to vector<8x8x8xf32>
    %174 = vector.extract_strided_slice %173 {offsets = [1, 0, 0], sizes = [1, 8, 8], strides = [1, 1, 1]} : vector<8x8x8xf32> to vector<1x8x8xf32>
    %175 = vector.extract_strided_slice %173 {offsets = [6, 0, 0], sizes = [1, 8, 8], strides = [1, 1, 1]} : vector<8x8x8xf32> to vector<1x8x8xf32>
    %176 = tpu.concatenate %174, %173, %175 in 0 : vector<1x8x8xf32>, vector<8x8x8xf32>, vector<1x8x8xf32> -> vector<10x8x8xf32>
    %177 = vector.extract_strided_slice %176 {offsets = [0, 1, 0], sizes = [10, 1, 8], strides = [1, 1, 1]} : vector<10x8x8xf32> to vector<10x1x8xf32>
    %178 = vector.extract_strided_slice %176 {offsets = [0, 6, 0], sizes = [10, 1, 8], strides = [1, 1, 1]} : vector<10x8x8xf32> to vector<10x1x8xf32>
    %179 = tpu.concatenate %177, %176, %178 in 1 : vector<10x1x8xf32>, vector<10x8x8xf32>, vector<10x1x8xf32> -> vector<10x10x8xf32>
    %cst_51 = arith.constant 0.000000e+00 : f32
    %180 = vector.broadcast %cst_51 : f32 to vector<64x8xf32>
    %181 = vector.extract_strided_slice %179 {offsets = [0, 0, 0], sizes = [8, 8, 8], strides = [1, 1, 1]} : vector<10x10x8xf32> to vector<8x8x8xf32>
    %182 = vector.shape_cast %181 : vector<8x8x8xf32> to vector<64x8xf32>
    %183 = vector.extract_strided_slice %169 {offsets = [0, 0, 0], sizes = [1, 8, 8], strides = [1, 1, 1]} : vector<9x8x8xf32> to vector<1x8x8xf32>
    %184 = vector.shape_cast %183 : vector<1x8x8xf32> to vector<8x8xf32>
    %cst_52 = arith.constant dense<0.000000e+00> : vector<64x8xf32>
    %185 = tpu.matmul %182, %184, %cst_52 {dimension_numbers = #tpu.dot_dimension_numbers<[1], [0], [0], [1], [0, 0, 1, 1], [], []>} : vector<64x8xf32>, vector<8x8xf32>, vector<64x8xf32> -> vector<64x8xf32>
    %186 = arith.addf %180, %185 : vector<64x8xf32>
    %187 = vector.extract_strided_slice %179 {offsets = [0, 1, 0], sizes = [8, 8, 8], strides = [1, 1, 1]} : vector<10x10x8xf32> to vector<8x8x8xf32>
    %188 = vector.shape_cast %187 : vector<8x8x8xf32> to vector<64x8xf32>
    %189 = vector.extract_strided_slice %169 {offsets = [1, 0, 0], sizes = [1, 8, 8], strides = [1, 1, 1]} : vector<9x8x8xf32> to vector<1x8x8xf32>
    %190 = vector.shape_cast %189 : vector<1x8x8xf32> to vector<8x8xf32>
    %cst_53 = arith.constant dense<0.000000e+00> : vector<64x8xf32>
    %191 = tpu.matmul %188, %190, %cst_53 {dimension_numbers = #tpu.dot_dimension_numbers<[1], [0], [0], [1], [0, 0, 1, 1], [], []>} : vector<64x8xf32>, vector<8x8xf32>, vector<64x8xf32> -> vector<64x8xf32>
    %192 = arith.addf %186, %191 : vector<64x8xf32>
    %193 = vector.extract_strided_slice %179 {offsets = [0, 2, 0], sizes = [8, 8, 8], strides = [1, 1, 1]} : vector<10x10x8xf32> to vector<8x8x8xf32>
    %194 = vector.shape_cast %193 : vector<8x8x8xf32> to vector<64x8xf32>
    %195 = vector.extract_strided_slice %169 {offsets = [2, 0, 0], sizes = [1, 8, 8], strides = [1, 1, 1]} : vector<9x8x8xf32> to vector<1x8x8xf32>
    %196 = vector.shape_cast %195 : vector<1x8x8xf32> to vector<8x8xf32>
    %cst_54 = arith.constant dense<0.000000e+00> : vector<64x8xf32>
    %197 = tpu.matmul %194, %196, %cst_54 {dimension_numbers = #tpu.dot_dimension_numbers<[1], [0], [0], [1], [0, 0, 1, 1], [], []>} : vector<64x8xf32>, vector<8x8xf32>, vector<64x8xf32> -> vector<64x8xf32>
    %198 = arith.addf %192, %197 : vector<64x8xf32>
    %199 = vector.extract_strided_slice %179 {offsets = [1, 0, 0], sizes = [8, 8, 8], strides = [1, 1, 1]} : vector<10x10x8xf32> to vector<8x8x8xf32>
    %200 = vector.shape_cast %199 : vector<8x8x8xf32> to vector<64x8xf32>
    %201 = vector.extract_strided_slice %169 {offsets = [3, 0, 0], sizes = [1, 8, 8], strides = [1, 1, 1]} : vector<9x8x8xf32> to vector<1x8x8xf32>
    %202 = vector.shape_cast %201 : vector<1x8x8xf32> to vector<8x8xf32>
    %cst_55 = arith.constant dense<0.000000e+00> : vector<64x8xf32>
    %203 = tpu.matmul %200, %202, %cst_55 {dimension_numbers = #tpu.dot_dimension_numbers<[1], [0], [0], [1], [0, 0, 1, 1], [], []>} : vector<64x8xf32>, vector<8x8xf32>, vector<64x8xf32> -> vector<64x8xf32>
    %204 = arith.addf %198, %203 : vector<64x8xf32>
    %205 = vector.extract_strided_slice %179 {offsets = [1, 1, 0], sizes = [8, 8, 8], strides = [1, 1, 1]} : vector<10x10x8xf32> to vector<8x8x8xf32>
    %206 = vector.shape_cast %205 : vector<8x8x8xf32> to vector<64x8xf32>
    %207 = vector.extract_strided_slice %169 {offsets = [4, 0, 0], sizes = [1, 8, 8], strides = [1, 1, 1]} : vector<9x8x8xf32> to vector<1x8x8xf32>
    %208 = vector.shape_cast %207 : vector<1x8x8xf32> to vector<8x8xf32>
    %cst_56 = arith.constant dense<0.000000e+00> : vector<64x8xf32>
    %209 = tpu.matmul %206, %208, %cst_56 {dimension_numbers = #tpu.dot_dimension_numbers<[1], [0], [0], [1], [0, 0, 1, 1], [], []>} : vector<64x8xf32>, vector<8x8xf32>, vector<64x8xf32> -> vector<64x8xf32>
    %210 = arith.addf %204, %209 : vector<64x8xf32>
    %211 = vector.extract_strided_slice %179 {offsets = [1, 2, 0], sizes = [8, 8, 8], strides = [1, 1, 1]} : vector<10x10x8xf32> to vector<8x8x8xf32>
    %212 = vector.shape_cast %211 : vector<8x8x8xf32> to vector<64x8xf32>
    %213 = vector.extract_strided_slice %169 {offsets = [5, 0, 0], sizes = [1, 8, 8], strides = [1, 1, 1]} : vector<9x8x8xf32> to vector<1x8x8xf32>
    %214 = vector.shape_cast %213 : vector<1x8x8xf32> to vector<8x8xf32>
    %cst_57 = arith.constant dense<0.000000e+00> : vector<64x8xf32>
    %215 = tpu.matmul %212, %214, %cst_57 {dimension_numbers = #tpu.dot_dimension_numbers<[1], [0], [0], [1], [0, 0, 1, 1], [], []>} : vector<64x8xf32>, vector<8x8xf32>, vector<64x8xf32> -> vector<64x8xf32>
    %216 = arith.addf %210, %215 : vector<64x8xf32>
    %217 = vector.extract_strided_slice %179 {offsets = [2, 0, 0], sizes = [8, 8, 8], strides = [1, 1, 1]} : vector<10x10x8xf32> to vector<8x8x8xf32>
    %218 = vector.shape_cast %217 : vector<8x8x8xf32> to vector<64x8xf32>
    %219 = vector.extract_strided_slice %169 {offsets = [6, 0, 0], sizes = [1, 8, 8], strides = [1, 1, 1]} : vector<9x8x8xf32> to vector<1x8x8xf32>
    %220 = vector.shape_cast %219 : vector<1x8x8xf32> to vector<8x8xf32>
    %cst_58 = arith.constant dense<0.000000e+00> : vector<64x8xf32>
    %221 = tpu.matmul %218, %220, %cst_58 {dimension_numbers = #tpu.dot_dimension_numbers<[1], [0], [0], [1], [0, 0, 1, 1], [], []>} : vector<64x8xf32>, vector<8x8xf32>, vector<64x8xf32> -> vector<64x8xf32>
    %222 = arith.addf %216, %221 : vector<64x8xf32>
    %223 = vector.extract_strided_slice %179 {offsets = [2, 1, 0], sizes = [8, 8, 8], strides = [1, 1, 1]} : vector<10x10x8xf32> to vector<8x8x8xf32>
    %224 = vector.shape_cast %223 : vector<8x8x8xf32> to vector<64x8xf32>
    %225 = vector.extract_strided_slice %169 {offsets = [7, 0, 0], sizes = [1, 8, 8], strides = [1, 1, 1]} : vector<9x8x8xf32> to vector<1x8x8xf32>
    %226 = vector.shape_cast %225 : vector<1x8x8xf32> to vector<8x8xf32>
    %cst_59 = arith.constant dense<0.000000e+00> : vector<64x8xf32>
    %227 = tpu.matmul %224, %226, %cst_59 {dimension_numbers = #tpu.dot_dimension_numbers<[1], [0], [0], [1], [0, 0, 1, 1], [], []>} : vector<64x8xf32>, vector<8x8xf32>, vector<64x8xf32> -> vector<64x8xf32>
    %228 = arith.addf %222, %227 : vector<64x8xf32>
    %229 = vector.extract_strided_slice %179 {offsets = [2, 2, 0], sizes = [8, 8, 8], strides = [1, 1, 1]} : vector<10x10x8xf32> to vector<8x8x8xf32>
    %230 = vector.shape_cast %229 : vector<8x8x8xf32> to vector<64x8xf32>
    %231 = vector.extract_strided_slice %169 {offsets = [8, 0, 0], sizes = [1, 8, 8], strides = [1, 1, 1]} : vector<9x8x8xf32> to vector<1x8x8xf32>
    %232 = vector.shape_cast %231 : vector<1x8x8xf32> to vector<8x8xf32>
    %cst_60 = arith.constant dense<0.000000e+00> : vector<64x8xf32>
    %233 = tpu.matmul %230, %232, %cst_60 {dimension_numbers = #tpu.dot_dimension_numbers<[1], [0], [0], [1], [0, 0, 1, 1], [], []>} : vector<64x8xf32>, vector<8x8xf32>, vector<64x8xf32> -> vector<64x8xf32>
    %234 = arith.addf %228, %233 : vector<64x8xf32>
    %235 = vector.broadcast %170 : vector<1x8xf32> to vector<64x8xf32>
    %236 = arith.addf %234, %235 : vector<64x8xf32>
    %cst_61 = arith.constant dense<0.000000e+00> : vector<8xf32>
    %237 = vector.multi_reduction <add>, %236, %cst_61 [0] : vector<64x8xf32> to vector<8xf32>
    %238 = vector.shape_cast %237 : vector<8xf32> to vector<1x8xf32>
    %cst_62 = arith.constant 6.400000e+01 : f32
    %239 = vector.broadcast %cst_62 : f32 to vector<1x8xf32>
    %240 = arith.divf %238, %239 : vector<1x8xf32>
    %241 = vector.broadcast %240 : vector<1x8xf32> to vector<64x8xf32>
    %242 = arith.subf %236, %241 : vector<64x8xf32>
    %243 = arith.mulf %242, %242 : vector<64x8xf32>
    %cst_63 = arith.constant dense<0.000000e+00> : vector<8xf32>
    %244 = vector.multi_reduction <add>, %243, %cst_63 [0] : vector<64x8xf32> to vector<8xf32>
    %245 = vector.shape_cast %244 : vector<8xf32> to vector<1x8xf32>
    %cst_64 = arith.constant 6.400000e+01 : f32
    %246 = vector.broadcast %cst_64 : f32 to vector<1x8xf32>
    %247 = arith.divf %245, %246 : vector<1x8xf32>
    %cst_65 = arith.constant 9.99999974E-6 : f32
    %248 = vector.broadcast %cst_65 : f32 to vector<1x8xf32>
    %249 = arith.addf %247, %248 : vector<1x8xf32>
    %250 = math.rsqrt %249 : vector<1x8xf32>
    %251 = vector.broadcast %250 : vector<1x8xf32> to vector<64x8xf32>
    %252 = arith.mulf %242, %251 : vector<64x8xf32>
    %cst_66 = arith.constant 0.000000e+00 : f32
    %253 = vector.broadcast %cst_66 : f32 to vector<64x8xf32>
    %254 = arith.maximumf %252, %253 : vector<64x8xf32>
    %255 = vector.shape_cast %254 : vector<64x8xf32> to vector<8x8x8xf32>
    %256 = vector.extract_strided_slice %255 {offsets = [1, 0, 0], sizes = [1, 8, 8], strides = [1, 1, 1]} : vector<8x8x8xf32> to vector<1x8x8xf32>
    %257 = vector.extract_strided_slice %255 {offsets = [6, 0, 0], sizes = [1, 8, 8], strides = [1, 1, 1]} : vector<8x8x8xf32> to vector<1x8x8xf32>
    %258 = tpu.concatenate %256, %255, %257 in 0 : vector<1x8x8xf32>, vector<8x8x8xf32>, vector<1x8x8xf32> -> vector<10x8x8xf32>
    %259 = vector.extract_strided_slice %258 {offsets = [0, 1, 0], sizes = [10, 1, 8], strides = [1, 1, 1]} : vector<10x8x8xf32> to vector<10x1x8xf32>
    %260 = vector.extract_strided_slice %258 {offsets = [0, 6, 0], sizes = [10, 1, 8], strides = [1, 1, 1]} : vector<10x8x8xf32> to vector<10x1x8xf32>
    %261 = tpu.concatenate %259, %258, %260 in 1 : vector<10x1x8xf32>, vector<10x8x8xf32>, vector<10x1x8xf32> -> vector<10x10x8xf32>
    %cst_67 = arith.constant 0.000000e+00 : f32
    %262 = vector.broadcast %cst_67 : f32 to vector<64x8xf32>
    %263 = vector.extract_strided_slice %261 {offsets = [0, 0, 0], sizes = [8, 8, 8], strides = [1, 1, 1]} : vector<10x10x8xf32> to vector<8x8x8xf32>
    %264 = vector.shape_cast %263 : vector<8x8x8xf32> to vector<64x8xf32>
    %265 = vector.extract_strided_slice %171 {offsets = [0, 0, 0], sizes = [1, 8, 8], strides = [1, 1, 1]} : vector<9x8x8xf32> to vector<1x8x8xf32>
    %266 = vector.shape_cast %265 : vector<1x8x8xf32> to vector<8x8xf32>
    %cst_68 = arith.constant dense<0.000000e+00> : vector<64x8xf32>
    %267 = tpu.matmul %264, %266, %cst_68 {dimension_numbers = #tpu.dot_dimension_numbers<[1], [0], [0], [1], [0, 0, 1, 1], [], []>} : vector<64x8xf32>, vector<8x8xf32>, vector<64x8xf32> -> vector<64x8xf32>
    %268 = arith.addf %262, %267 : vector<64x8xf32>
    %269 = vector.extract_strided_slice %261 {offsets = [0, 1, 0], sizes = [8, 8, 8], strides = [1, 1, 1]} : vector<10x10x8xf32> to vector<8x8x8xf32>
    %270 = vector.shape_cast %269 : vector<8x8x8xf32> to vector<64x8xf32>
    %271 = vector.extract_strided_slice %171 {offsets = [1, 0, 0], sizes = [1, 8, 8], strides = [1, 1, 1]} : vector<9x8x8xf32> to vector<1x8x8xf32>
    %272 = vector.shape_cast %271 : vector<1x8x8xf32> to vector<8x8xf32>
    %cst_69 = arith.constant dense<0.000000e+00> : vector<64x8xf32>
    %273 = tpu.matmul %270, %272, %cst_69 {dimension_numbers = #tpu.dot_dimension_numbers<[1], [0], [0], [1], [0, 0, 1, 1], [], []>} : vector<64x8xf32>, vector<8x8xf32>, vector<64x8xf32> -> vector<64x8xf32>
    %274 = arith.addf %268, %273 : vector<64x8xf32>
    %275 = vector.extract_strided_slice %261 {offsets = [0, 2, 0], sizes = [8, 8, 8], strides = [1, 1, 1]} : vector<10x10x8xf32> to vector<8x8x8xf32>
    %276 = vector.shape_cast %275 : vector<8x8x8xf32> to vector<64x8xf32>
    %277 = vector.extract_strided_slice %171 {offsets = [2, 0, 0], sizes = [1, 8, 8], strides = [1, 1, 1]} : vector<9x8x8xf32> to vector<1x8x8xf32>
    %278 = vector.shape_cast %277 : vector<1x8x8xf32> to vector<8x8xf32>
    %cst_70 = arith.constant dense<0.000000e+00> : vector<64x8xf32>
    %279 = tpu.matmul %276, %278, %cst_70 {dimension_numbers = #tpu.dot_dimension_numbers<[1], [0], [0], [1], [0, 0, 1, 1], [], []>} : vector<64x8xf32>, vector<8x8xf32>, vector<64x8xf32> -> vector<64x8xf32>
    %280 = arith.addf %274, %279 : vector<64x8xf32>
    %281 = vector.extract_strided_slice %261 {offsets = [1, 0, 0], sizes = [8, 8, 8], strides = [1, 1, 1]} : vector<10x10x8xf32> to vector<8x8x8xf32>
    %282 = vector.shape_cast %281 : vector<8x8x8xf32> to vector<64x8xf32>
    %283 = vector.extract_strided_slice %171 {offsets = [3, 0, 0], sizes = [1, 8, 8], strides = [1, 1, 1]} : vector<9x8x8xf32> to vector<1x8x8xf32>
    %284 = vector.shape_cast %283 : vector<1x8x8xf32> to vector<8x8xf32>
    %cst_71 = arith.constant dense<0.000000e+00> : vector<64x8xf32>
    %285 = tpu.matmul %282, %284, %cst_71 {dimension_numbers = #tpu.dot_dimension_numbers<[1], [0], [0], [1], [0, 0, 1, 1], [], []>} : vector<64x8xf32>, vector<8x8xf32>, vector<64x8xf32> -> vector<64x8xf32>
    %286 = arith.addf %280, %285 : vector<64x8xf32>
    %287 = vector.extract_strided_slice %261 {offsets = [1, 1, 0], sizes = [8, 8, 8], strides = [1, 1, 1]} : vector<10x10x8xf32> to vector<8x8x8xf32>
    %288 = vector.shape_cast %287 : vector<8x8x8xf32> to vector<64x8xf32>
    %289 = vector.extract_strided_slice %171 {offsets = [4, 0, 0], sizes = [1, 8, 8], strides = [1, 1, 1]} : vector<9x8x8xf32> to vector<1x8x8xf32>
    %290 = vector.shape_cast %289 : vector<1x8x8xf32> to vector<8x8xf32>
    %cst_72 = arith.constant dense<0.000000e+00> : vector<64x8xf32>
    %291 = tpu.matmul %288, %290, %cst_72 {dimension_numbers = #tpu.dot_dimension_numbers<[1], [0], [0], [1], [0, 0, 1, 1], [], []>} : vector<64x8xf32>, vector<8x8xf32>, vector<64x8xf32> -> vector<64x8xf32>
    %292 = arith.addf %286, %291 : vector<64x8xf32>
    %293 = vector.extract_strided_slice %261 {offsets = [1, 2, 0], sizes = [8, 8, 8], strides = [1, 1, 1]} : vector<10x10x8xf32> to vector<8x8x8xf32>
    %294 = vector.shape_cast %293 : vector<8x8x8xf32> to vector<64x8xf32>
    %295 = vector.extract_strided_slice %171 {offsets = [5, 0, 0], sizes = [1, 8, 8], strides = [1, 1, 1]} : vector<9x8x8xf32> to vector<1x8x8xf32>
    %296 = vector.shape_cast %295 : vector<1x8x8xf32> to vector<8x8xf32>
    %cst_73 = arith.constant dense<0.000000e+00> : vector<64x8xf32>
    %297 = tpu.matmul %294, %296, %cst_73 {dimension_numbers = #tpu.dot_dimension_numbers<[1], [0], [0], [1], [0, 0, 1, 1], [], []>} : vector<64x8xf32>, vector<8x8xf32>, vector<64x8xf32> -> vector<64x8xf32>
    %298 = arith.addf %292, %297 : vector<64x8xf32>
    %299 = vector.extract_strided_slice %261 {offsets = [2, 0, 0], sizes = [8, 8, 8], strides = [1, 1, 1]} : vector<10x10x8xf32> to vector<8x8x8xf32>
    %300 = vector.shape_cast %299 : vector<8x8x8xf32> to vector<64x8xf32>
    %301 = vector.extract_strided_slice %171 {offsets = [6, 0, 0], sizes = [1, 8, 8], strides = [1, 1, 1]} : vector<9x8x8xf32> to vector<1x8x8xf32>
    %302 = vector.shape_cast %301 : vector<1x8x8xf32> to vector<8x8xf32>
    %cst_74 = arith.constant dense<0.000000e+00> : vector<64x8xf32>
    %303 = tpu.matmul %300, %302, %cst_74 {dimension_numbers = #tpu.dot_dimension_numbers<[1], [0], [0], [1], [0, 0, 1, 1], [], []>} : vector<64x8xf32>, vector<8x8xf32>, vector<64x8xf32> -> vector<64x8xf32>
    %304 = arith.addf %298, %303 : vector<64x8xf32>
    %305 = vector.extract_strided_slice %261 {offsets = [2, 1, 0], sizes = [8, 8, 8], strides = [1, 1, 1]} : vector<10x10x8xf32> to vector<8x8x8xf32>
    %306 = vector.shape_cast %305 : vector<8x8x8xf32> to vector<64x8xf32>
    %307 = vector.extract_strided_slice %171 {offsets = [7, 0, 0], sizes = [1, 8, 8], strides = [1, 1, 1]} : vector<9x8x8xf32> to vector<1x8x8xf32>
    %308 = vector.shape_cast %307 : vector<1x8x8xf32> to vector<8x8xf32>
    %cst_75 = arith.constant dense<0.000000e+00> : vector<64x8xf32>
    %309 = tpu.matmul %306, %308, %cst_75 {dimension_numbers = #tpu.dot_dimension_numbers<[1], [0], [0], [1], [0, 0, 1, 1], [], []>} : vector<64x8xf32>, vector<8x8xf32>, vector<64x8xf32> -> vector<64x8xf32>
    %310 = arith.addf %304, %309 : vector<64x8xf32>
    %311 = vector.extract_strided_slice %261 {offsets = [2, 2, 0], sizes = [8, 8, 8], strides = [1, 1, 1]} : vector<10x10x8xf32> to vector<8x8x8xf32>
    %312 = vector.shape_cast %311 : vector<8x8x8xf32> to vector<64x8xf32>
    %313 = vector.extract_strided_slice %171 {offsets = [8, 0, 0], sizes = [1, 8, 8], strides = [1, 1, 1]} : vector<9x8x8xf32> to vector<1x8x8xf32>
    %314 = vector.shape_cast %313 : vector<1x8x8xf32> to vector<8x8xf32>
    %cst_76 = arith.constant dense<0.000000e+00> : vector<64x8xf32>
    %315 = tpu.matmul %312, %314, %cst_76 {dimension_numbers = #tpu.dot_dimension_numbers<[1], [0], [0], [1], [0, 0, 1, 1], [], []>} : vector<64x8xf32>, vector<8x8xf32>, vector<64x8xf32> -> vector<64x8xf32>
    %316 = arith.addf %310, %315 : vector<64x8xf32>
    %317 = vector.broadcast %172 : vector<1x8xf32> to vector<64x8xf32>
    %318 = arith.addf %316, %317 : vector<64x8xf32>
    %cst_77 = arith.constant dense<0.000000e+00> : vector<8xf32>
    %319 = vector.multi_reduction <add>, %318, %cst_77 [0] : vector<64x8xf32> to vector<8xf32>
    %320 = vector.shape_cast %319 : vector<8xf32> to vector<1x8xf32>
    %cst_78 = arith.constant 6.400000e+01 : f32
    %321 = vector.broadcast %cst_78 : f32 to vector<1x8xf32>
    %322 = arith.divf %320, %321 : vector<1x8xf32>
    %323 = vector.broadcast %322 : vector<1x8xf32> to vector<64x8xf32>
    %324 = arith.subf %318, %323 : vector<64x8xf32>
    %325 = arith.mulf %324, %324 : vector<64x8xf32>
    %cst_79 = arith.constant dense<0.000000e+00> : vector<8xf32>
    %326 = vector.multi_reduction <add>, %325, %cst_79 [0] : vector<64x8xf32> to vector<8xf32>
    %327 = vector.shape_cast %326 : vector<8xf32> to vector<1x8xf32>
    %cst_80 = arith.constant 6.400000e+01 : f32
    %328 = vector.broadcast %cst_80 : f32 to vector<1x8xf32>
    %329 = arith.divf %327, %328 : vector<1x8xf32>
    %cst_81 = arith.constant 9.99999974E-6 : f32
    %330 = vector.broadcast %cst_81 : f32 to vector<1x8xf32>
    %331 = arith.addf %329, %330 : vector<1x8xf32>
    %332 = math.rsqrt %331 : vector<1x8xf32>
    %333 = vector.broadcast %332 : vector<1x8xf32> to vector<64x8xf32>
    %334 = arith.mulf %324, %333 : vector<64x8xf32>
    %335 = arith.addf %168, %334 : vector<64x8xf32>
    %c0_82 = arith.constant 0 : index
    %c0_83 = arith.constant 0 : index
    %c0_84 = arith.constant 0 : index
    %336 = vector.load %arg10[%c0_82, %c0_83, %c0_84] : memref<9x8x8xf32, #tpu.memory_space<vmem>>, vector<9x8x8xf32>
    %c0_85 = arith.constant 0 : index
    %c0_86 = arith.constant 0 : index
    %337 = vector.load %arg11[%c0_85, %c0_86] : memref<1x8xf32, #tpu.memory_space<vmem>>, vector<1x8xf32>
    %c0_87 = arith.constant 0 : index
    %c0_88 = arith.constant 0 : index
    %c0_89 = arith.constant 0 : index
    %338 = vector.load %arg12[%c0_87, %c0_88, %c0_89] : memref<9x8x8xf32, #tpu.memory_space<vmem>>, vector<9x8x8xf32>
    %c0_90 = arith.constant 0 : index
    %c0_91 = arith.constant 0 : index
    %339 = vector.load %arg13[%c0_90, %c0_91] : memref<1x8xf32, #tpu.memory_space<vmem>>, vector<1x8xf32>
    %340 = vector.shape_cast %335 : vector<64x8xf32> to vector<8x8x8xf32>
    %341 = vector.extract_strided_slice %340 {offsets = [1, 0, 0], sizes = [1, 8, 8], strides = [1, 1, 1]} : vector<8x8x8xf32> to vector<1x8x8xf32>
    %342 = vector.extract_strided_slice %340 {offsets = [6, 0, 0], sizes = [1, 8, 8], strides = [1, 1, 1]} : vector<8x8x8xf32> to vector<1x8x8xf32>
    %343 = tpu.concatenate %341, %340, %342 in 0 : vector<1x8x8xf32>, vector<8x8x8xf32>, vector<1x8x8xf32> -> vector<10x8x8xf32>
    %344 = vector.extract_strided_slice %343 {offsets = [0, 1, 0], sizes = [10, 1, 8], strides = [1, 1, 1]} : vector<10x8x8xf32> to vector<10x1x8xf32>
    %345 = vector.extract_strided_slice %343 {offsets = [0, 6, 0], sizes = [10, 1, 8], strides = [1, 1, 1]} : vector<10x8x8xf32> to vector<10x1x8xf32>
    %346 = tpu.concatenate %344, %343, %345 in 1 : vector<10x1x8xf32>, vector<10x8x8xf32>, vector<10x1x8xf32> -> vector<10x10x8xf32>
    %cst_92 = arith.constant 0.000000e+00 : f32
    %347 = vector.broadcast %cst_92 : f32 to vector<64x8xf32>
    %348 = vector.extract_strided_slice %346 {offsets = [0, 0, 0], sizes = [8, 8, 8], strides = [1, 1, 1]} : vector<10x10x8xf32> to vector<8x8x8xf32>
    %349 = vector.shape_cast %348 : vector<8x8x8xf32> to vector<64x8xf32>
    %350 = vector.extract_strided_slice %336 {offsets = [0, 0, 0], sizes = [1, 8, 8], strides = [1, 1, 1]} : vector<9x8x8xf32> to vector<1x8x8xf32>
    %351 = vector.shape_cast %350 : vector<1x8x8xf32> to vector<8x8xf32>
    %cst_93 = arith.constant dense<0.000000e+00> : vector<64x8xf32>
    %352 = tpu.matmul %349, %351, %cst_93 {dimension_numbers = #tpu.dot_dimension_numbers<[1], [0], [0], [1], [0, 0, 1, 1], [], []>} : vector<64x8xf32>, vector<8x8xf32>, vector<64x8xf32> -> vector<64x8xf32>
    %353 = arith.addf %347, %352 : vector<64x8xf32>
    %354 = vector.extract_strided_slice %346 {offsets = [0, 1, 0], sizes = [8, 8, 8], strides = [1, 1, 1]} : vector<10x10x8xf32> to vector<8x8x8xf32>
    %355 = vector.shape_cast %354 : vector<8x8x8xf32> to vector<64x8xf32>
    %356 = vector.extract_strided_slice %336 {offsets = [1, 0, 0], sizes = [1, 8, 8], strides = [1, 1, 1]} : vector<9x8x8xf32> to vector<1x8x8xf32>
    %357 = vector.shape_cast %356 : vector<1x8x8xf32> to vector<8x8xf32>
    %cst_94 = arith.constant dense<0.000000e+00> : vector<64x8xf32>
    %358 = tpu.matmul %355, %357, %cst_94 {dimension_numbers = #tpu.dot_dimension_numbers<[1], [0], [0], [1], [0, 0, 1, 1], [], []>} : vector<64x8xf32>, vector<8x8xf32>, vector<64x8xf32> -> vector<64x8xf32>
    %359 = arith.addf %353, %358 : vector<64x8xf32>
    %360 = vector.extract_strided_slice %346 {offsets = [0, 2, 0], sizes = [8, 8, 8], strides = [1, 1, 1]} : vector<10x10x8xf32> to vector<8x8x8xf32>
    %361 = vector.shape_cast %360 : vector<8x8x8xf32> to vector<64x8xf32>
    %362 = vector.extract_strided_slice %336 {offsets = [2, 0, 0], sizes = [1, 8, 8], strides = [1, 1, 1]} : vector<9x8x8xf32> to vector<1x8x8xf32>
    %363 = vector.shape_cast %362 : vector<1x8x8xf32> to vector<8x8xf32>
    %cst_95 = arith.constant dense<0.000000e+00> : vector<64x8xf32>
    %364 = tpu.matmul %361, %363, %cst_95 {dimension_numbers = #tpu.dot_dimension_numbers<[1], [0], [0], [1], [0, 0, 1, 1], [], []>} : vector<64x8xf32>, vector<8x8xf32>, vector<64x8xf32> -> vector<64x8xf32>
    %365 = arith.addf %359, %364 : vector<64x8xf32>
    %366 = vector.extract_strided_slice %346 {offsets = [1, 0, 0], sizes = [8, 8, 8], strides = [1, 1, 1]} : vector<10x10x8xf32> to vector<8x8x8xf32>
    %367 = vector.shape_cast %366 : vector<8x8x8xf32> to vector<64x8xf32>
    %368 = vector.extract_strided_slice %336 {offsets = [3, 0, 0], sizes = [1, 8, 8], strides = [1, 1, 1]} : vector<9x8x8xf32> to vector<1x8x8xf32>
    %369 = vector.shape_cast %368 : vector<1x8x8xf32> to vector<8x8xf32>
    %cst_96 = arith.constant dense<0.000000e+00> : vector<64x8xf32>
    %370 = tpu.matmul %367, %369, %cst_96 {dimension_numbers = #tpu.dot_dimension_numbers<[1], [0], [0], [1], [0, 0, 1, 1], [], []>} : vector<64x8xf32>, vector<8x8xf32>, vector<64x8xf32> -> vector<64x8xf32>
    %371 = arith.addf %365, %370 : vector<64x8xf32>
    %372 = vector.extract_strided_slice %346 {offsets = [1, 1, 0], sizes = [8, 8, 8], strides = [1, 1, 1]} : vector<10x10x8xf32> to vector<8x8x8xf32>
    %373 = vector.shape_cast %372 : vector<8x8x8xf32> to vector<64x8xf32>
    %374 = vector.extract_strided_slice %336 {offsets = [4, 0, 0], sizes = [1, 8, 8], strides = [1, 1, 1]} : vector<9x8x8xf32> to vector<1x8x8xf32>
    %375 = vector.shape_cast %374 : vector<1x8x8xf32> to vector<8x8xf32>
    %cst_97 = arith.constant dense<0.000000e+00> : vector<64x8xf32>
    %376 = tpu.matmul %373, %375, %cst_97 {dimension_numbers = #tpu.dot_dimension_numbers<[1], [0], [0], [1], [0, 0, 1, 1], [], []>} : vector<64x8xf32>, vector<8x8xf32>, vector<64x8xf32> -> vector<64x8xf32>
    %377 = arith.addf %371, %376 : vector<64x8xf32>
    %378 = vector.extract_strided_slice %346 {offsets = [1, 2, 0], sizes = [8, 8, 8], strides = [1, 1, 1]} : vector<10x10x8xf32> to vector<8x8x8xf32>
    %379 = vector.shape_cast %378 : vector<8x8x8xf32> to vector<64x8xf32>
    %380 = vector.extract_strided_slice %336 {offsets = [5, 0, 0], sizes = [1, 8, 8], strides = [1, 1, 1]} : vector<9x8x8xf32> to vector<1x8x8xf32>
    %381 = vector.shape_cast %380 : vector<1x8x8xf32> to vector<8x8xf32>
    %cst_98 = arith.constant dense<0.000000e+00> : vector<64x8xf32>
    %382 = tpu.matmul %379, %381, %cst_98 {dimension_numbers = #tpu.dot_dimension_numbers<[1], [0], [0], [1], [0, 0, 1, 1], [], []>} : vector<64x8xf32>, vector<8x8xf32>, vector<64x8xf32> -> vector<64x8xf32>
    %383 = arith.addf %377, %382 : vector<64x8xf32>
    %384 = vector.extract_strided_slice %346 {offsets = [2, 0, 0], sizes = [8, 8, 8], strides = [1, 1, 1]} : vector<10x10x8xf32> to vector<8x8x8xf32>
    %385 = vector.shape_cast %384 : vector<8x8x8xf32> to vector<64x8xf32>
    %386 = vector.extract_strided_slice %336 {offsets = [6, 0, 0], sizes = [1, 8, 8], strides = [1, 1, 1]} : vector<9x8x8xf32> to vector<1x8x8xf32>
    %387 = vector.shape_cast %386 : vector<1x8x8xf32> to vector<8x8xf32>
    %cst_99 = arith.constant dense<0.000000e+00> : vector<64x8xf32>
    %388 = tpu.matmul %385, %387, %cst_99 {dimension_numbers = #tpu.dot_dimension_numbers<[1], [0], [0], [1], [0, 0, 1, 1], [], []>} : vector<64x8xf32>, vector<8x8xf32>, vector<64x8xf32> -> vector<64x8xf32>
    %389 = arith.addf %383, %388 : vector<64x8xf32>
    %390 = vector.extract_strided_slice %346 {offsets = [2, 1, 0], sizes = [8, 8, 8], strides = [1, 1, 1]} : vector<10x10x8xf32> to vector<8x8x8xf32>
    %391 = vector.shape_cast %390 : vector<8x8x8xf32> to vector<64x8xf32>
    %392 = vector.extract_strided_slice %336 {offsets = [7, 0, 0], sizes = [1, 8, 8], strides = [1, 1, 1]} : vector<9x8x8xf32> to vector<1x8x8xf32>
    %393 = vector.shape_cast %392 : vector<1x8x8xf32> to vector<8x8xf32>
    %cst_100 = arith.constant dense<0.000000e+00> : vector<64x8xf32>
    %394 = tpu.matmul %391, %393, %cst_100 {dimension_numbers = #tpu.dot_dimension_numbers<[1], [0], [0], [1], [0, 0, 1, 1], [], []>} : vector<64x8xf32>, vector<8x8xf32>, vector<64x8xf32> -> vector<64x8xf32>
    %395 = arith.addf %389, %394 : vector<64x8xf32>
    %396 = vector.extract_strided_slice %346 {offsets = [2, 2, 0], sizes = [8, 8, 8], strides = [1, 1, 1]} : vector<10x10x8xf32> to vector<8x8x8xf32>
    %397 = vector.shape_cast %396 : vector<8x8x8xf32> to vector<64x8xf32>
    %398 = vector.extract_strided_slice %336 {offsets = [8, 0, 0], sizes = [1, 8, 8], strides = [1, 1, 1]} : vector<9x8x8xf32> to vector<1x8x8xf32>
    %399 = vector.shape_cast %398 : vector<1x8x8xf32> to vector<8x8xf32>
    %cst_101 = arith.constant dense<0.000000e+00> : vector<64x8xf32>
    %400 = tpu.matmul %397, %399, %cst_101 {dimension_numbers = #tpu.dot_dimension_numbers<[1], [0], [0], [1], [0, 0, 1, 1], [], []>} : vector<64x8xf32>, vector<8x8xf32>, vector<64x8xf32> -> vector<64x8xf32>
    %401 = arith.addf %395, %400 : vector<64x8xf32>
    %402 = vector.broadcast %337 : vector<1x8xf32> to vector<64x8xf32>
    %403 = arith.addf %401, %402 : vector<64x8xf32>
    %cst_102 = arith.constant dense<0.000000e+00> : vector<8xf32>
    %404 = vector.multi_reduction <add>, %403, %cst_102 [0] : vector<64x8xf32> to vector<8xf32>
    %405 = vector.shape_cast %404 : vector<8xf32> to vector<1x8xf32>
    %cst_103 = arith.constant 6.400000e+01 : f32
    %406 = vector.broadcast %cst_103 : f32 to vector<1x8xf32>
    %407 = arith.divf %405, %406 : vector<1x8xf32>
    %408 = vector.broadcast %407 : vector<1x8xf32> to vector<64x8xf32>
    %409 = arith.subf %403, %408 : vector<64x8xf32>
    %410 = arith.mulf %409, %409 : vector<64x8xf32>
    %cst_104 = arith.constant dense<0.000000e+00> : vector<8xf32>
    %411 = vector.multi_reduction <add>, %410, %cst_104 [0] : vector<64x8xf32> to vector<8xf32>
    %412 = vector.shape_cast %411 : vector<8xf32> to vector<1x8xf32>
    %cst_105 = arith.constant 6.400000e+01 : f32
    %413 = vector.broadcast %cst_105 : f32 to vector<1x8xf32>
    %414 = arith.divf %412, %413 : vector<1x8xf32>
    %cst_106 = arith.constant 9.99999974E-6 : f32
    %415 = vector.broadcast %cst_106 : f32 to vector<1x8xf32>
    %416 = arith.addf %414, %415 : vector<1x8xf32>
    %417 = math.rsqrt %416 : vector<1x8xf32>
    %418 = vector.broadcast %417 : vector<1x8xf32> to vector<64x8xf32>
    %419 = arith.mulf %409, %418 : vector<64x8xf32>
    %cst_107 = arith.constant 0.000000e+00 : f32
    %420 = vector.broadcast %cst_107 : f32 to vector<64x8xf32>
    %421 = arith.maximumf %419, %420 : vector<64x8xf32>
    %422 = vector.shape_cast %421 : vector<64x8xf32> to vector<8x8x8xf32>
    %423 = vector.extract_strided_slice %422 {offsets = [1, 0, 0], sizes = [1, 8, 8], strides = [1, 1, 1]} : vector<8x8x8xf32> to vector<1x8x8xf32>
    %424 = vector.extract_strided_slice %422 {offsets = [6, 0, 0], sizes = [1, 8, 8], strides = [1, 1, 1]} : vector<8x8x8xf32> to vector<1x8x8xf32>
    %425 = tpu.concatenate %423, %422, %424 in 0 : vector<1x8x8xf32>, vector<8x8x8xf32>, vector<1x8x8xf32> -> vector<10x8x8xf32>
    %426 = vector.extract_strided_slice %425 {offsets = [0, 1, 0], sizes = [10, 1, 8], strides = [1, 1, 1]} : vector<10x8x8xf32> to vector<10x1x8xf32>
    %427 = vector.extract_strided_slice %425 {offsets = [0, 6, 0], sizes = [10, 1, 8], strides = [1, 1, 1]} : vector<10x8x8xf32> to vector<10x1x8xf32>
    %428 = tpu.concatenate %426, %425, %427 in 1 : vector<10x1x8xf32>, vector<10x8x8xf32>, vector<10x1x8xf32> -> vector<10x10x8xf32>
    %cst_108 = arith.constant 0.000000e+00 : f32
    %429 = vector.broadcast %cst_108 : f32 to vector<64x8xf32>
    %430 = vector.extract_strided_slice %428 {offsets = [0, 0, 0], sizes = [8, 8, 8], strides = [1, 1, 1]} : vector<10x10x8xf32> to vector<8x8x8xf32>
    %431 = vector.shape_cast %430 : vector<8x8x8xf32> to vector<64x8xf32>
    %432 = vector.extract_strided_slice %338 {offsets = [0, 0, 0], sizes = [1, 8, 8], strides = [1, 1, 1]} : vector<9x8x8xf32> to vector<1x8x8xf32>
    %433 = vector.shape_cast %432 : vector<1x8x8xf32> to vector<8x8xf32>
    %cst_109 = arith.constant dense<0.000000e+00> : vector<64x8xf32>
    %434 = tpu.matmul %431, %433, %cst_109 {dimension_numbers = #tpu.dot_dimension_numbers<[1], [0], [0], [1], [0, 0, 1, 1], [], []>} : vector<64x8xf32>, vector<8x8xf32>, vector<64x8xf32> -> vector<64x8xf32>
    %435 = arith.addf %429, %434 : vector<64x8xf32>
    %436 = vector.extract_strided_slice %428 {offsets = [0, 1, 0], sizes = [8, 8, 8], strides = [1, 1, 1]} : vector<10x10x8xf32> to vector<8x8x8xf32>
    %437 = vector.shape_cast %436 : vector<8x8x8xf32> to vector<64x8xf32>
    %438 = vector.extract_strided_slice %338 {offsets = [1, 0, 0], sizes = [1, 8, 8], strides = [1, 1, 1]} : vector<9x8x8xf32> to vector<1x8x8xf32>
    %439 = vector.shape_cast %438 : vector<1x8x8xf32> to vector<8x8xf32>
    %cst_110 = arith.constant dense<0.000000e+00> : vector<64x8xf32>
    %440 = tpu.matmul %437, %439, %cst_110 {dimension_numbers = #tpu.dot_dimension_numbers<[1], [0], [0], [1], [0, 0, 1, 1], [], []>} : vector<64x8xf32>, vector<8x8xf32>, vector<64x8xf32> -> vector<64x8xf32>
    %441 = arith.addf %435, %440 : vector<64x8xf32>
    %442 = vector.extract_strided_slice %428 {offsets = [0, 2, 0], sizes = [8, 8, 8], strides = [1, 1, 1]} : vector<10x10x8xf32> to vector<8x8x8xf32>
    %443 = vector.shape_cast %442 : vector<8x8x8xf32> to vector<64x8xf32>
    %444 = vector.extract_strided_slice %338 {offsets = [2, 0, 0], sizes = [1, 8, 8], strides = [1, 1, 1]} : vector<9x8x8xf32> to vector<1x8x8xf32>
    %445 = vector.shape_cast %444 : vector<1x8x8xf32> to vector<8x8xf32>
    %cst_111 = arith.constant dense<0.000000e+00> : vector<64x8xf32>
    %446 = tpu.matmul %443, %445, %cst_111 {dimension_numbers = #tpu.dot_dimension_numbers<[1], [0], [0], [1], [0, 0, 1, 1], [], []>} : vector<64x8xf32>, vector<8x8xf32>, vector<64x8xf32> -> vector<64x8xf32>
    %447 = arith.addf %441, %446 : vector<64x8xf32>
    %448 = vector.extract_strided_slice %428 {offsets = [1, 0, 0], sizes = [8, 8, 8], strides = [1, 1, 1]} : vector<10x10x8xf32> to vector<8x8x8xf32>
    %449 = vector.shape_cast %448 : vector<8x8x8xf32> to vector<64x8xf32>
    %450 = vector.extract_strided_slice %338 {offsets = [3, 0, 0], sizes = [1, 8, 8], strides = [1, 1, 1]} : vector<9x8x8xf32> to vector<1x8x8xf32>
    %451 = vector.shape_cast %450 : vector<1x8x8xf32> to vector<8x8xf32>
    %cst_112 = arith.constant dense<0.000000e+00> : vector<64x8xf32>
    %452 = tpu.matmul %449, %451, %cst_112 {dimension_numbers = #tpu.dot_dimension_numbers<[1], [0], [0], [1], [0, 0, 1, 1], [], []>} : vector<64x8xf32>, vector<8x8xf32>, vector<64x8xf32> -> vector<64x8xf32>
    %453 = arith.addf %447, %452 : vector<64x8xf32>
    %454 = vector.extract_strided_slice %428 {offsets = [1, 1, 0], sizes = [8, 8, 8], strides = [1, 1, 1]} : vector<10x10x8xf32> to vector<8x8x8xf32>
    %455 = vector.shape_cast %454 : vector<8x8x8xf32> to vector<64x8xf32>
    %456 = vector.extract_strided_slice %338 {offsets = [4, 0, 0], sizes = [1, 8, 8], strides = [1, 1, 1]} : vector<9x8x8xf32> to vector<1x8x8xf32>
    %457 = vector.shape_cast %456 : vector<1x8x8xf32> to vector<8x8xf32>
    %cst_113 = arith.constant dense<0.000000e+00> : vector<64x8xf32>
    %458 = tpu.matmul %455, %457, %cst_113 {dimension_numbers = #tpu.dot_dimension_numbers<[1], [0], [0], [1], [0, 0, 1, 1], [], []>} : vector<64x8xf32>, vector<8x8xf32>, vector<64x8xf32> -> vector<64x8xf32>
    %459 = arith.addf %453, %458 : vector<64x8xf32>
    %460 = vector.extract_strided_slice %428 {offsets = [1, 2, 0], sizes = [8, 8, 8], strides = [1, 1, 1]} : vector<10x10x8xf32> to vector<8x8x8xf32>
    %461 = vector.shape_cast %460 : vector<8x8x8xf32> to vector<64x8xf32>
    %462 = vector.extract_strided_slice %338 {offsets = [5, 0, 0], sizes = [1, 8, 8], strides = [1, 1, 1]} : vector<9x8x8xf32> to vector<1x8x8xf32>
    %463 = vector.shape_cast %462 : vector<1x8x8xf32> to vector<8x8xf32>
    %cst_114 = arith.constant dense<0.000000e+00> : vector<64x8xf32>
    %464 = tpu.matmul %461, %463, %cst_114 {dimension_numbers = #tpu.dot_dimension_numbers<[1], [0], [0], [1], [0, 0, 1, 1], [], []>} : vector<64x8xf32>, vector<8x8xf32>, vector<64x8xf32> -> vector<64x8xf32>
    %465 = arith.addf %459, %464 : vector<64x8xf32>
    %466 = vector.extract_strided_slice %428 {offsets = [2, 0, 0], sizes = [8, 8, 8], strides = [1, 1, 1]} : vector<10x10x8xf32> to vector<8x8x8xf32>
    %467 = vector.shape_cast %466 : vector<8x8x8xf32> to vector<64x8xf32>
    %468 = vector.extract_strided_slice %338 {offsets = [6, 0, 0], sizes = [1, 8, 8], strides = [1, 1, 1]} : vector<9x8x8xf32> to vector<1x8x8xf32>
    %469 = vector.shape_cast %468 : vector<1x8x8xf32> to vector<8x8xf32>
    %cst_115 = arith.constant dense<0.000000e+00> : vector<64x8xf32>
    %470 = tpu.matmul %467, %469, %cst_115 {dimension_numbers = #tpu.dot_dimension_numbers<[1], [0], [0], [1], [0, 0, 1, 1], [], []>} : vector<64x8xf32>, vector<8x8xf32>, vector<64x8xf32> -> vector<64x8xf32>
    %471 = arith.addf %465, %470 : vector<64x8xf32>
    %472 = vector.extract_strided_slice %428 {offsets = [2, 1, 0], sizes = [8, 8, 8], strides = [1, 1, 1]} : vector<10x10x8xf32> to vector<8x8x8xf32>
    %473 = vector.shape_cast %472 : vector<8x8x8xf32> to vector<64x8xf32>
    %474 = vector.extract_strided_slice %338 {offsets = [7, 0, 0], sizes = [1, 8, 8], strides = [1, 1, 1]} : vector<9x8x8xf32> to vector<1x8x8xf32>
    %475 = vector.shape_cast %474 : vector<1x8x8xf32> to vector<8x8xf32>
    %cst_116 = arith.constant dense<0.000000e+00> : vector<64x8xf32>
    %476 = tpu.matmul %473, %475, %cst_116 {dimension_numbers = #tpu.dot_dimension_numbers<[1], [0], [0], [1], [0, 0, 1, 1], [], []>} : vector<64x8xf32>, vector<8x8xf32>, vector<64x8xf32> -> vector<64x8xf32>
    %477 = arith.addf %471, %476 : vector<64x8xf32>
    %478 = vector.extract_strided_slice %428 {offsets = [2, 2, 0], sizes = [8, 8, 8], strides = [1, 1, 1]} : vector<10x10x8xf32> to vector<8x8x8xf32>
    %479 = vector.shape_cast %478 : vector<8x8x8xf32> to vector<64x8xf32>
    %480 = vector.extract_strided_slice %338 {offsets = [8, 0, 0], sizes = [1, 8, 8], strides = [1, 1, 1]} : vector<9x8x8xf32> to vector<1x8x8xf32>
    %481 = vector.shape_cast %480 : vector<1x8x8xf32> to vector<8x8xf32>
    %cst_117 = arith.constant dense<0.000000e+00> : vector<64x8xf32>
    %482 = tpu.matmul %479, %481, %cst_117 {dimension_numbers = #tpu.dot_dimension_numbers<[1], [0], [0], [1], [0, 0, 1, 1], [], []>} : vector<64x8xf32>, vector<8x8xf32>, vector<64x8xf32> -> vector<64x8xf32>
    %483 = arith.addf %477, %482 : vector<64x8xf32>
    %484 = vector.broadcast %339 : vector<1x8xf32> to vector<64x8xf32>
    %485 = arith.addf %483, %484 : vector<64x8xf32>
    %cst_118 = arith.constant dense<0.000000e+00> : vector<8xf32>
    %486 = vector.multi_reduction <add>, %485, %cst_118 [0] : vector<64x8xf32> to vector<8xf32>
    %487 = vector.shape_cast %486 : vector<8xf32> to vector<1x8xf32>
    %cst_119 = arith.constant 6.400000e+01 : f32
    %488 = vector.broadcast %cst_119 : f32 to vector<1x8xf32>
    %489 = arith.divf %487, %488 : vector<1x8xf32>
    %490 = vector.broadcast %489 : vector<1x8xf32> to vector<64x8xf32>
    %491 = arith.subf %485, %490 : vector<64x8xf32>
    %492 = arith.mulf %491, %491 : vector<64x8xf32>
    %cst_120 = arith.constant dense<0.000000e+00> : vector<8xf32>
    %493 = vector.multi_reduction <add>, %492, %cst_120 [0] : vector<64x8xf32> to vector<8xf32>
    %494 = vector.shape_cast %493 : vector<8xf32> to vector<1x8xf32>
    %cst_121 = arith.constant 6.400000e+01 : f32
    %495 = vector.broadcast %cst_121 : f32 to vector<1x8xf32>
    %496 = arith.divf %494, %495 : vector<1x8xf32>
    %cst_122 = arith.constant 9.99999974E-6 : f32
    %497 = vector.broadcast %cst_122 : f32 to vector<1x8xf32>
    %498 = arith.addf %496, %497 : vector<1x8xf32>
    %499 = math.rsqrt %498 : vector<1x8xf32>
    %500 = vector.broadcast %499 : vector<1x8xf32> to vector<64x8xf32>
    %501 = arith.mulf %491, %500 : vector<64x8xf32>
    %502 = arith.addf %335, %501 : vector<64x8xf32>
    %503 = tpu.transpose %502, [1, 0] : vector<64x8xf32> -> vector<8x64xf32>
    %504 = vector.shape_cast %503 : vector<8x64xf32> to vector<1x8x64xf32>
    %c0_123 = arith.constant 0 : index
    %c0_124 = arith.constant 0 : index
    %c0_125 = arith.constant 0 : index
    %505 = vector.load %arg14[%c0_123, %c0_124, %c0_125] : memref<1x8x64xf32, #tpu.memory_space<vmem>>, vector<1x8x64xf32>
    tpu.vector_store %arg14[%c0_123, %c0_124, %c0_125], %504 {strides = array<i32>} : memref<1x8x64xf32, #tpu.memory_space<vmem>>, vector<1x8x64xf32>,
    return
  }
  func.func @transform_0(%arg0: i32) -> (i32, i32, i32, i32) {
    %c0_i32 = arith.constant 0 : i32
    %c0_i32_0 = arith.constant 0 : i32
    %c0_i32_1 = arith.constant 0 : i32
    %c0_i32_2 = arith.constant 0 : i32
    return %arg0, %c0_i32, %c0_i32_0, %c0_i32_1 : i32, i32, i32, i32
  }
  func.func @transform_1(%arg0: i32) -> (i32, i32) {
    %c0_i32 = arith.constant 0 : i32
    %c0_i32_0 = arith.constant 0 : i32
    %c0_i32_1 = arith.constant 0 : i32
    return %c0_i32, %c0_i32_0 : i32, i32
  }
  func.func @transform_2(%arg0: i32) -> (i32, i32) {
    %c0_i32 = arith.constant 0 : i32
    %c0_i32_0 = arith.constant 0 : i32
    %c0_i32_1 = arith.constant 0 : i32
    return %c0_i32, %c0_i32_0 : i32, i32
  }
  func.func @transform_3(%arg0: i32) -> (i32, i32, i32) {
    %c0_i32 = arith.constant 0 : i32
    %c0_i32_0 = arith.constant 0 : i32
    %c0_i32_1 = arith.constant 0 : i32
    %c0_i32_2 = arith.constant 0 : i32
    return %c0_i32, %c0_i32_0, %c0_i32_1 : i32, i32, i32
  }
  func.func @transform_4(%arg0: i32) -> (i32, i32) {
    %c0_i32 = arith.constant 0 : i32
    %c0_i32_0 = arith.constant 0 : i32
    %c0_i32_1 = arith.constant 0 : i32
    return %c0_i32, %c0_i32_0 : i32, i32
  }
  func.func @transform_5(%arg0: i32) -> (i32, i32, i32) {
    %c0_i32 = arith.constant 0 : i32
    %c0_i32_0 = arith.constant 0 : i32
    %c0_i32_1 = arith.constant 0 : i32
    %c0_i32_2 = arith.constant 0 : i32
    return %c0_i32, %c0_i32_0, %c0_i32_1 : i32, i32, i32
  }
  func.func @transform_6(%arg0: i32) -> (i32, i32) {
    %c0_i32 = arith.constant 0 : i32
    %c0_i32_0 = arith.constant 0 : i32
    %c0_i32_1 = arith.constant 0 : i32
    return %c0_i32, %c0_i32_0 : i32, i32
  }
  func.func @transform_7(%arg0: i32) -> (i32, i32, i32) {
    %c0_i32 = arith.constant 0 : i32
    %c0_i32_0 = arith.constant 0 : i32
    %c0_i32_1 = arith.constant 0 : i32
    %c0_i32_2 = arith.constant 0 : i32
    return %c0_i32, %c0_i32_0, %c0_i32_1 : i32, i32, i32
  }
  func.func @transform_8(%arg0: i32) -> (i32, i32) {
    %c0_i32 = arith.constant 0 : i32
    %c0_i32_0 = arith.constant 0 : i32
    %c0_i32_1 = arith.constant 0 : i32
    return %c0_i32, %c0_i32_0 : i32, i32
  }
  func.func @transform_9(%arg0: i32) -> (i32, i32, i32) {
    %c0_i32 = arith.constant 0 : i32
    %c0_i32_0 = arith.constant 0 : i32
    %c0_i32_1 = arith.constant 0 : i32
    %c0_i32_2 = arith.constant 0 : i32
    return %c0_i32, %c0_i32_0, %c0_i32_1 : i32, i32, i32
  }
  func.func @transform_10(%arg0: i32) -> (i32, i32) {
    %c0_i32 = arith.constant 0 : i32
    %c0_i32_0 = arith.constant 0 : i32
    %c0_i32_1 = arith.constant 0 : i32
    return %c0_i32, %c0_i32_0 : i32, i32
  }
  func.func @transform_11(%arg0: i32) -> (i32, i32, i32) {
    %c0_i32 = arith.constant 0 : i32
    %c0_i32_0 = arith.constant 0 : i32
    %c0_i32_1 = arith.constant 0 : i32
    %c0_i32_2 = arith.constant 0 : i32
    return %c0_i32, %c0_i32_0, %c0_i32_1 : i32, i32, i32
  }
  func.func @transform_12(%arg0: i32) -> (i32, i32) {
    %c0_i32 = arith.constant 0 : i32
    %c0_i32_0 = arith.constant 0 : i32
    %c0_i32_1 = arith.constant 0 : i32
    return %c0_i32, %c0_i32_0 : i32, i32
  }
  func.func @transform_13(%arg0: i32) -> (i32, i32, i32) {
    %c0_i32 = arith.constant 0 : i32
    %c0_i32_0 = arith.constant 0 : i32
    %c0_i32_1 = arith.constant 0 : i32
    return %arg0, %c0_i32, %c0_i32_0 : i32, i32, i32
  }
}

</mosaic_0001>

<bundles_post_ra>
// kernel: pathology_block_forward.1
= control target key start
LH: loop header
LB: loop body
LE: loop exit
PB: predicated region body
PF: predicated region fallthrough
CT: control target
= control target key end

     0   :  { %s10417_s25 = smov 0   ;;  %s13173_s0 = inlined_call_operand.vmem [shape: f32[2,32,8,12], index: 0, kind: input, shape index: {}]   ;;  %s13174_s1 = inlined_call_operand.vmem [shape: f32[12,8], index: 1, kind: input, shape index: {}]   ;;  %s13175_s2 = inlined_call_operand.vmem [shape: f32[1,8], index: 2, kind: input, shape index: {}]   ;;  %s13176_s3 = inlined_call_operand.vmem [shape: f32[16,8,8], index: 3, kind: input, shape index: {}]   ;;  %s13177_s4 = inlined_call_operand.vmem [shape: f32[1,8], index: 4, kind: input, shape index: {}]   ;;  %s13178_s5 = inlined_call_operand.vmem [shape: f32[9,8,8], index: 5, kind: input, shape index: {}]   ;;  %s13179_s6 = inlined_call_operand.vmem [shape: f32[1,8], index: 6, kind: input, shape index: {}]   ;;  %s13180_s7 = inlined_call_operand.vmem [shape: f32[9,8,8], index: 7, kind: input, shape index: {}]   ;;  %s13181_s8 = inlined_call_operand.vmem [shape: f32[1,8], index: 8, kind: input, shape index: {}]   ;;  %s13182_s9 = inlined_call_operand.vmem [shape: f32[9,8,8], index: 9, kind: input, shape index: {}]   ;;  %s13183_s10 = inlined_call_operand.vmem [shape: f32[1,8], index: 10, kind: input, shape index: {}]   ;;  %s13184_s11 = inlined_call_operand.vmem [shape: f32[9,8,8], index: 11, kind: input, shape index: {}]   ;;  %s13185_s12 = inlined_call_operand.vmem [shape: f32[1,8], index: 12, kind: input, shape index: {}]   ;;  %s13186_s13 = inlined_call_operand.vmem [shape: f32[2,8,64], index: 13, kind: output, shape index: {}]  }
   0x1 LB: > { %s8554_s26 = sadd.s32 4294967295, %s10345_s25   ;;  %p8558_p0 = scmp.ge.s32.totalorder %s10345_s25, 1  ;;  %s10345_s25 = sphi %s10417_s25, %s23_s25  }
   0x2   : > { %p387_p1 = scmp.lt.s32.totalorder %s10345_s25, 3 }
   0x4   : > { %p388_p2 = pnand %p8558_p0, %p387_p1 }
   0x6   : > { %391 = sbr.rel (%p388_p2) target bundleno = 2372 (0x944), region = 72 }
   0xb   : > { %v440_v0 = vld [vmem:[%s13174_s1 + $0x8] sm:$0xf]  ;;  %vm594_vm0 = vcmask 1043456   ;;  %v439_v1 = vld [vmem:[%s13174_s1] sm:$0xff]  ;;  %p430_p3 = scmp.lt.s32.totalorder %s8554_s26, 1  ;;  %vm497_vm1 = vcmask 97280  }
   0xc   : > { %9538 = vmatprep.subr.msk.mxu0 %vm594_vm0, %v440_v0  ;;  %v10506_v35 = vld [vmem:[%s13175_s2] ss:$0 sm:$0xff]  ;;  %vm823_vm2 = vcmask 64512   ;;  %vm1437_vm3 = vcmask 1046528   ;;  %vm1119_vm4 = vcmask 1040384   ;;  %vm3683_vm5 = vcmask 1045504  }
   0xd   : > { %9539 = vmatpush3.msk.msra.mxu0 %vm594_vm0, %v440_v0  ;;  %s13298_s26 = smov (!%p430_p3, %s8554_s26), 1  ;;  %vm8499_vm6 = vcmask 523264  }
   0xe   : > { %9540 = vmatprep.subr.mxu0 %v439_v1  ;;  %s9035_s14 = sshll.u32 %s13298_s26, 8 }
   0xf   : > { %9541 = vmatpush3.msra.mxu0 %v439_v1  ;;  %s10437_s17 = scalar_lea.vmem %s13173_s0, %s9035_s14  ;;  %s8561_s14 = sshll.u32 %s13298_s26, 3 }
  0x10   : > { %v459_v2 = vld [vmem:[%s10437_s17] sm:$0xff]  ;;  %v460_v3 = vld [vmem:[%s10437_s17 + $0x8] sm:$0xff]  ;;  %v461_v4 = vld [vmem:[%s10437_s17 + $0x10] sm:$0xff] }
  0x11   : > { %9542 = vmatprep.mubr.msk.f32.mxu0 %vm497_vm1, %v459_v2  ;;  %v462_v5 = vld [vmem:[%s10437_s17 + $0x18] sm:$0xff]  ;;  %v463_v6 = vld [vmem:[%s10437_s17 + $0x20] sm:$0xff]  ;;  %v464_v7 = vld [vmem:[%s10437_s17 + $0x28] sm:$0xff] }
  0x12   : > { %9543 = vmatmul.mubr.msk.f32.vlgmr.msra.gmra.mxu0 %vm497_vm1, %v460_v3  ;;  %v465_v8 = vld [vmem:[%s10437_s17 + $0x30] sm:$0xff]  ;;  %v466_v9 = vld [vmem:[%s10437_s17 + $0x38] sm:$0xff]  ;;  %v467_v10 = vld [vmem:[%s10437_s17 + $0x40] sm:$0xff] }
  0x13   : > { %9545 = vmatprep.mubr.msk.f32.mxu0 %vm497_vm1, %v461_v4  ;;  %v468_v11 = vld [vmem:[%s10437_s17 + $0x48] sm:$0xff]  ;;  %v469_v12 = vld [vmem:[%s10437_s17 + $0x50] sm:$0xff]  ;;  %v470_v13 = vld [vmem:[%s10437_s17 + $0x58] sm:$0xff] }
  0x14   : > { %v471_v14 = vld [vmem:[%s10437_s17 + $0x60] sm:$0xff]  ;;  %v472_v15 = vld [vmem:[%s10437_s17 + $0x68] sm:$0xff]  ;;  %v473_v16 = vld [vmem:[%s10437_s17 + $0x70] sm:$0xff] }
  0x15   : > { %v474_v17 = vld [vmem:[%s10437_s17 + $0x78] sm:$0xff]  ;;  %v475_v18 = vld [vmem:[%s10437_s17 + $0x80] sm:$0xff]  ;;  %v476_v19 = vld [vmem:[%s10437_s17 + $0x88] sm:$0xff] }
  0x16   : > { %9546 = vmatmul.mubr.msk.f32.gmra.mxu0 %vm497_vm1, %v462_v5  ;;  %v477_v20 = vld [vmem:[%s10437_s17 + $0x90] sm:$0xff]  ;;  %v478_v21 = vld [vmem:[%s10437_s17 + $0x98] sm:$0xff]  ;;  %v479_v22 = vld [vmem:[%s10437_s17 + $0xa0] sm:$0xff] }
  0x17   : > { %9548 = vmatprep.mubr.msk.f32.mxu0 %vm497_vm1, %v463_v6  ;;  %v480_v23 = vld [vmem:[%s10437_s17 + $0xa8] sm:$0xff]  ;;  %v481_v24 = vld [vmem:[%s10437_s17 + $0xb0] sm:$0xff]  ;;  %v482_v25 = vld [vmem:[%s10437_s17 + $0xb8] sm:$0xff] }
  0x18   : > { %v483_v26 = vld [vmem:[%s10437_s17 + $0xc0] sm:$0xff]  ;;  %v484_v27 = vld [vmem:[%s10437_s17 + $0xc8] sm:$0xff]  ;;  %v485_v28 = vld [vmem:[%s10437_s17 + $0xd0] sm:$0xff] }
  0x19   : > { %v486_v29 = vld [vmem:[%s10437_s17 + $0xd8] sm:$0xff]  ;;  %v487_v30 = vld [vmem:[%s10437_s17 + $0xe0] sm:$0xff]  ;;  %v488_v31 = vld [vmem:[%s10437_s17 + $0xe8] sm:$0xff] }
  0x1a   : > { %9549 = vmatmul.mubr.msk.f32.gmra.mxu0 %vm497_vm1, %v464_v7  ;;  %v489_v32 = vld [vmem:[%s10437_s17 + $0xf0] sm:$0xff]  ;;  %v490_v33 = vld [vmem:[%s10437_s17 + $0xf8] sm:$0xff]  ;;  %s438_s17 = scalar_lea.vmem %s13186_s13, %s8561_s14 }
  0x1b   : > { %9551 = vmatprep.mubr.msk.f32.mxu0 %vm497_vm1, %v465_v8 }
  0x1e   : > { %9552 = vmatmul.mubr.msk.f32.gmra.mxu0 %vm497_vm1, %v466_v9 }
  0x1f   : > { %9554 = vmatprep.mubr.msk.f32.mxu0 %vm497_vm1, %v467_v10 }
  0x22   : > { %9555 = vmatmul.mubr.msk.f32.gmra.mxu0 %vm497_vm1, %v468_v11 }
  0x23   : > { %9557 = vmatprep.mubr.msk.f32.mxu0 %vm497_vm1, %v469_v12 }
  0x26   : > { %9558 = vmatmul.mubr.msk.f32.gmra.mxu0 %vm497_vm1, %v470_v13 }
  0x27   : > { %9560 = vmatprep.mubr.msk.f32.mxu0 %vm497_vm1, %v471_v14 }
  0x2a   : > { %9561 = vmatmul.mubr.msk.f32.gmra.mxu0 %vm497_vm1, %v472_v15 }
  0x2b   : > { %9563 = vmatprep.mubr.msk.f32.mxu0 %vm497_vm1, %v473_v16 }
  0x2e   : > { %9564 = vmatmul.mubr.msk.f32.gmra.mxu0 %vm497_vm1, %v474_v17 }
  0x2f   : > { %9566 = vmatprep.mubr.msk.f32.mxu0 %vm497_vm1, %v475_v18 }
  0x32   : > { %9567 = vmatmul.mubr.msk.f32.gmra.mxu0 %vm497_vm1, %v476_v19 }
  0x33   : > { %9569 = vmatprep.mubr.msk.f32.mxu0 %vm497_vm1, %v477_v20 }
  0x36   : > { %9570 = vmatmul.mubr.msk.f32.gmra.mxu0 %vm497_vm1, %v478_v21 }
  0x37   : > { %9572 = vmatprep.mubr.msk.f32.mxu0 %vm497_vm1, %v479_v22 }
  0x3a   : > { %9573 = vmatmul.mubr.msk.f32.gmra.mxu0 %vm497_vm1, %v480_v23 }
  0x3b   : > { %9575 = vmatprep.mubr.msk.f32.mxu0 %vm497_vm1, %v481_v24 }
  0x3e   : > { %9576 = vmatmul.mubr.msk.f32.gmra.mxu0 %vm497_vm1, %v482_v25 }
  0x3f   : > { %9578 = vmatprep.mubr.msk.f32.mxu0 %vm497_vm1, %v483_v26 }
  0x42   : > { %9579 = vmatmul.mubr.msk.f32.gmra.mxu0 %vm497_vm1, %v484_v27 }
  0x43   : > { %9581 = vmatprep.mubr.msk.f32.mxu0 %vm497_vm1, %v485_v28 }
  0x46   : > { %9582 = vmatmul.mubr.msk.f32.gmra.mxu0 %vm497_vm1, %v486_v29 }
  0x47   : > { %9584 = vmatprep.mubr.msk.f32.mxu0 %vm497_vm1, %v487_v30 }
  0x4a   : > { %9585 = vmatmul.mubr.msk.f32.gmra.mxu0 %vm497_vm1, %v488_v31 }
  0x4b   : > { %9587 = vmatprep.mubr.msk.f32.mxu0 %vm497_vm1, %v489_v32 }
  0x4e   : > { %9588 = vmatmul.mubr.msk.f32.gmra.mxu0 %vm497_vm1, %v490_v33 }
  0xd2   : > { %v9544_v34 = vpop.f32.mrf.mxu0 }
  0xd3   : > { %v10509_v37 = vadd.f32 %v9544_v34, %v10506_v35 }
  0xd4   : > { %v664_v36 = vpop.f32.mrf.mxu0 }
  0xd5   : > { %v10512_v38 = vadd.f32 %v10506_v35, %v664_v36  ;;  %v825_v42 = vsel %vm823_vm2, %v10509_v37, 0.0 }
  0xd6   : > { %v9547_v39 = vpop.f32.mrf.mxu0 }
  0xd7   : > { %v824_v40 = vsel %vm823_vm2, %v10512_v38, 0.0  ;;  %v10519_v43 = vadd.f32 %v9547_v39, %v10506_v35 }
  0xd8   : > { %v674_v41 = vpop.f32.mrf.mxu0  ;;  %v826_v45 = vadd.f32 %v825_v42, %v824_v40 }
  0xd9   : > { %v10522_v44 = vadd.f32 %v10506_v35, %v674_v41  ;;  %v829_v50 = vsel %vm823_vm2, %v10519_v43, 0.0 }
  0xda   : > { %v9550_v46 = vpop.f32.mrf.mxu0 }
  0xdb   : > { %v827_v47 = vsel %vm823_vm2, %v10522_v44, 0.0  ;;  %v10529_v51 = vadd.f32 %v9550_v46, %v10506_v35 }
  0xdc   : > { %v828_v48 = vadd.f32 %v827_v47, %v826_v45  ;;  %v684_v49 = vpop.f32.mrf.mxu0 }
  0xdd   : > { %v10532_v52 = vadd.f32 %v10506_v35, %v684_v49  ;;  %v833_v58 = vsel %vm823_vm2, %v10529_v51, 0.0 }
  0xde   : > { %v830_v53 = vadd.f32 %v829_v50, %v828_v48  ;;  %v9553_v54 = vpop.f32.mrf.mxu0 }
  0xdf   : > { %v831_v55 = vsel %vm823_vm2, %v10532_v52, 0.0  ;;  %v10539_v59 = vadd.f32 %v9553_v54, %v10506_v35 }
  0xe0   : > { %v832_v56 = vadd.f32 %v831_v55, %v830_v53  ;;  %v694_v57 = vpop.f32.mrf.mxu0 }
  0xe1   : > { %v10542_v60 = vadd.f32 %v10506_v35, %v694_v57  ;;  %v837_v2 = vsel %vm823_vm2, %v10539_v59, 0.0 }
  0xe2   : > { %v834_v61 = vadd.f32 %v833_v58, %v832_v56  ;;  %v9556_v62 = vpop.f32.mrf.mxu0 }
  0xe3   : > { %v835_v63 = vsel %vm823_vm2, %v10542_v60, 0.0  ;;  %v10549_v3 = vadd.f32 %v9556_v62, %v10506_v35 }
  0xe4   : > { %v836_v0 = vadd.f32 %v835_v63, %v834_v61  ;;  %v704_v1 = vpop.f32.mrf.mxu0 }
  0xe5   : > { %v10552_v4 = vadd.f32 %v10506_v35, %v704_v1  ;;  %v841_v10 = vsel %vm823_vm2, %v10549_v3, 0.0 }
  0xe6   : > { %v838_v5 = vadd.f32 %v837_v2, %v836_v0  ;;  %v9559_v6 = vpop.f32.mrf.mxu0 }
  0xe7   : > { %v839_v7 = vsel %vm823_vm2, %v10552_v4, 0.0  ;;  %v10559_v11 = vadd.f32 %v9559_v6, %v10506_v35 }
  0xe8   : > { %v840_v8 = vadd.f32 %v839_v7, %v838_v5  ;;  %v714_v9 = vpop.f32.mrf.mxu0 }
  0xe9   : > { %v10562_v12 = vadd.f32 %v10506_v35, %v714_v9  ;;  %v845_v18 = vsel %vm823_vm2, %v10559_v11, 0.0 }
  0xea   : > { %v842_v13 = vadd.f32 %v841_v10, %v840_v8  ;;  %v9562_v14 = vpop.f32.mrf.mxu0 }
  0xeb   : > { %v843_v15 = vsel %vm823_vm2, %v10562_v12, 0.0  ;;  %v10569_v19 = vadd.f32 %v9562_v14, %v10506_v35 }
  0xec   : > { %v844_v16 = vadd.f32 %v843_v15, %v842_v13  ;;  %v724_v17 = vpop.f32.mrf.mxu0 }
  0xed   : > { %v10572_v20 = vadd.f32 %v10506_v35, %v724_v17  ;;  %v849_v26 = vsel %vm823_vm2, %v10569_v19, 0.0 }
  0xee   : > { %v846_v21 = vadd.f32 %v845_v18, %v844_v16  ;;  %v9565_v22 = vpop.f32.mrf.mxu0 }
  0xef   : > { %v847_v23 = vsel %vm823_vm2, %v10572_v20, 0.0  ;;  %v10579_v27 = vadd.f32 %v9565_v22, %v10506_v35 }
  0xf0   : > { %v848_v24 = vadd.f32 %v847_v23, %v846_v21  ;;  %v734_v25 = vpop.f32.mrf.mxu0 }
  0xf1   : > { %v10582_v28 = vadd.f32 %v10506_v35, %v734_v25  ;;  %v853_v34 = vsel %vm823_vm2, %v10579_v27, 0.0 }
  0xf2   : > { %v850_v29 = vadd.f32 %v849_v26, %v848_v24  ;;  %v9568_v30 = vpop.f32.mrf.mxu0 }
  0xf3   : > { %v851_v31 = vsel %vm823_vm2, %v10582_v28, 0.0  ;;  %v10589_v36 = vadd.f32 %v9568_v30, %v10506_v35 }
  0xf4   : > { %v852_v32 = vadd.f32 %v851_v31, %v850_v29  ;;  %v744_v33 = vpop.f32.mrf.mxu0 }
  0xf5   : > { %v10592_v39 = vadd.f32 %v10506_v35, %v744_v33  ;;  %v857_v47 = vsel %vm823_vm2, %v10589_v36, 0.0 }
  0xf6   : > { %v854_v40 = vadd.f32 %v853_v34, %v852_v32  ;;  %v9571_v41 = vpop.f32.mrf.mxu0 }
  0xf7   : > { %v855_v42 = vsel %vm823_vm2, %v10592_v39, 0.0  ;;  %v10599_v48 = vadd.f32 %v9571_v41, %v10506_v35 }
  0xf8   : > { %v856_v45 = vadd.f32 %v855_v42, %v854_v40  ;;  %v754_v46 = vpop.f32.mrf.mxu0 }
  0xf9   : > { %v10602_v49 = vadd.f32 %v10506_v35, %v754_v46  ;;  %v861_v57 = vsel %vm823_vm2, %v10599_v48, 0.0 }
  0xfa   : > { %v858_v50 = vadd.f32 %v857_v47, %v856_v45  ;;  %v9574_v53 = vpop.f32.mrf.mxu0 }
  0xfb   : > { %v859_v54 = vsel %vm823_vm2, %v10602_v49, 0.0  ;;  %v10609_v58 = vadd.f32 %v9574_v53, %v10506_v35 }
  0xfc   : > { %v860_v55 = vadd.f32 %v859_v54, %v858_v50  ;;  %v764_v56 = vpop.f32.mrf.mxu0 }
  0xfd   : > { %v10612_v61 = vadd.f32 %v10506_v35, %v764_v56  ;;  %v865_v5 = vsel %vm823_vm2, %v10609_v58, 0.0 }
  0xfe   : > { %v862_v62 = vadd.f32 %v861_v57, %v860_v55  ;;  %v9577_v63 = vpop.f32.mrf.mxu0 }
  0xff   : > { %v863_v0 = vsel %vm823_vm2, %v10612_v61, 0.0  ;;  %v10619_v6 = vadd.f32 %v9577_v63, %v10506_v35 }
 0x100   : > { %v864_v1 = vadd.f32 %v863_v0, %v862_v62  ;;  %v774_v2 = vpop.f32.mrf.mxu0 }
 0x101   : > { %v10622_v7 = vadd.f32 %v10506_v35, %v774_v2  ;;  %v869_v15 = vsel %vm823_vm2, %v10619_v6, 0.0 }
 0x102   : > { %v866_v8 = vadd.f32 %v865_v5, %v864_v1  ;;  %v9580_v9 = vpop.f32.mrf.mxu0 }
 0x103   : > { %v867_v10 = vsel %vm823_vm2, %v10622_v7, 0.0  ;;  %v10629_v16 = vadd.f32 %v9580_v9, %v10506_v35 }
 0x104   : > { %v868_v13 = vadd.f32 %v867_v10, %v866_v8  ;;  %v784_v14 = vpop.f32.mrf.mxu0  ;;  %v443_v8 = vld [vmem:[%s13176_s3 + $0x8] sm:$0xff] }
 0x105   : > { %v10632_v17 = vadd.f32 %v10506_v35, %v784_v14  ;;  %v873_v25 = vsel %vm823_vm2, %v10629_v16, 0.0  ;;  %9590 = vmatprep.subr.mxu1 %v443_v8  ;;  %v10677_v14 = vld [vmem:[%s13176_s3] sm:$0xff] }
 0x106   : > { %v870_v18 = vadd.f32 %v869_v15, %v868_v13  ;;  %v9583_v21 = vpop.f32.mrf.mxu0  ;;  %9591 = vmatpush3.msra.mxu1 %v443_v8  ;;  %v447_v13 = vld [vmem:[%s13176_s3 + $0x28] sm:$0xff] }
 0x107   : > { %v871_v22 = vsel %vm823_vm2, %v10632_v17, 0.0  ;;  %v10639_v26 = vadd.f32 %v9583_v21, %v10506_v35  ;;  %9660 = vmatprep.subr.mxu0 %v447_v13  ;;  %9604 = vmatprep.subr.mxu1 %v10677_v14 }
 0x108   : > { %v872_v23 = vadd.f32 %v871_v22, %v870_v18  ;;  %v794_v24 = vpop.f32.mrf.mxu0  ;;  %9661 = vmatpush3.msra.mxu0 %v447_v13 }
 0x109   : > { %v10642_v29 = vadd.f32 %v10506_v35, %v794_v24  ;;  %v877_v40 = vsel %vm823_vm2, %v10639_v26, 0.0 }
 0x10a   : > { %v874_v30 = vadd.f32 %v873_v25, %v872_v23  ;;  %v9586_v31 = vpop.f32.mrf.mxu0  ;;  %v10693_v23 = vld [vmem:[%s13176_s3 + $0x38] sm:$0xff] }
 0x10b   : > { %v875_v32 = vsel %vm823_vm2, %v10642_v29, 0.0  ;;  %v10649_v41 = vadd.f32 %v9586_v31, %v10506_v35  ;;  %9688 = vmatprep.subr.mxu0 %v10693_v23 }
 0x10c   : > { %v876_v33 = vadd.f32 %v875_v32, %v874_v30  ;;  %v804_v34 = vpop.f32.mrf.mxu0 }
 0x10d   : > { %v10652_v42 = vadd.f32 %v10506_v35, %v804_v34  ;;  %v881_v54 = vsel %vm823_vm2, %v10649_v41, 0.0 }
 0x10e   : > { %v878_v45 = vadd.f32 %v877_v40, %v876_v33  ;;  %v9589_v46 = vpop.f32.mrf.mxu0 }
 0x10f   : > { %v879_v47 = vsel %vm823_vm2, %v10652_v42, 0.0  ;;  %v10659_v55 = vadd.f32 %v9589_v46, %v10506_v35 }
 0x110   : > { %v880_v50 = vadd.f32 %v879_v47, %v878_v45  ;;  %v814_v53 = vpop.f32.mrf.mxu0 }
 0x111   : > { %v10662_v56 = vadd.f32 %v10506_v35, %v814_v53  ;;  %v885_v0 = vsel %vm823_vm2, %v10659_v55, 0.0 }
 0x112   : > { %v882_v57 = vadd.f32 %v881_v54, %v880_v50 }
 0x113   : > { %v883_v62 = vsel %vm823_vm2, %v10662_v56, 0.0 }
 0x114   : > { %v884_v63 = vadd.f32 %v883_v62, %v882_v57 }
 0x116   : > { %v886_v1 = vadd.f32 %v885_v0, %v884_v63 }
 0x118   : > { %v887_v2 = vrot.slane %v886_v1, 4 }
 0x11a   : > { %v888_v5 = vadd.f32 %v887_v2, %v886_v1 }
 0x11c   : > { %v889_v9 = vrot.slane %v888_v5, 2 }
 0x11e   : > { %v890_v35 = vadd.f32 %v889_v9, %v888_v5 }
 0x120   : > { %v891_v10 = vrot.slane %v890_v35, 1 }
 0x122   : > { %v892_v15 = vadd.f32 %v891_v10, %v890_v35 }
 0x124   : > { %v10680_v18 = vmul.f32 0.00390625, %v892_v15 }
 0x126   : > { %v10684_v21 = vsub.f32 %v10512_v38, %v10680_v18  ;;  %v10688_v22 = vsub.f32 %v10509_v37, %v10680_v18  ;;  %v10697_v24 = vsub.f32 %v10522_v44, %v10680_v18  ;;  %v10702_v25 = vsub.f32 %v10519_v43, %v10680_v18 }
 0x127   : > { %v10710_v30 = vsub.f32 %v10532_v52, %v10680_v18  ;;  %v10716_v31 = vsub.f32 %v10529_v51, %v10680_v18  ;;  %v10724_v40 = vsub.f32 %v10542_v60, %v10680_v18  ;;  %v10731_v51 = vsub.f32 %v10539_v59, %v10680_v18 }
 0x128   : > { %v927_v38 = vmul.f32 %v10684_v21, %v10684_v21  ;;  %v928_v37 = vmul.f32 %v10688_v22, %v10688_v22  ;;  %v929_v44 = vmul.f32 %v10697_v24, %v10697_v24  ;;  %v930_v43 = vmul.f32 %v10702_v25, %v10702_v25 }
 0x129   : > { %v931_v52 = vmul.f32 %v10710_v30, %v10710_v30  ;;  %v932_v47 = vmul.f32 %v10716_v31, %v10716_v31  ;;  %v10738_v60 = vsub.f32 %v10552_v4, %v10680_v18  ;;  %v933_v54 = vmul.f32 %v10724_v40, %v10724_v40 }
 0x12a   : > { %v959_v32 = vsel %vm823_vm2, %v927_v38, 0.0  ;;  %v960_v33 = vsel %vm823_vm2, %v928_v37, 0.0  ;;  %v962_v45 = vsel %vm823_vm2, %v929_v44, 0.0  ;;  %v964_v50 = vsel %vm823_vm2, %v930_v43, 0.0 }
 0x12b   : > { %v961_v34 = vadd.f32 %v960_v33, %v959_v32  ;;  %v966_v57 = vsel %vm823_vm2, %v931_v52, 0.0  ;;  %v10745_v59 = vsub.f32 %v10549_v3, %v10680_v18  ;;  %v934_v63 = vmul.f32 %v10731_v51, %v10731_v51 }
 0x12c   : > { %v968_v0 = vsel %vm823_vm2, %v932_v47, 0.0  ;;  %v10752_v4 = vsub.f32 %v10562_v12, %v10680_v18  ;;  %v935_v2 = vmul.f32 %v10738_v60, %v10738_v60  ;;  %v970_v5 = vsel %vm823_vm2, %v933_v54, 0.0 }
 0x12d   : > { %v963_v46 = vadd.f32 %v962_v45, %v961_v34  ;;  %v10759_v3 = vsub.f32 %v10559_v11, %v10680_v18  ;;  %v936_v9 = vmul.f32 %v10745_v59, %v10745_v59  ;;  %v972_v35 = vsel %vm823_vm2, %v934_v63, 0.0 }
 0x12e   : > { %v10766_v12 = vsub.f32 %v10572_v20, %v10680_v18  ;;  %v937_v13 = vmul.f32 %v10752_v4, %v10752_v4  ;;  %v974_v15 = vsel %vm823_vm2, %v935_v2, 0.0  ;;  %v10773_v11 = vsub.f32 %v10569_v19, %v10680_v18 }
 0x12f   : > { %v965_v53 = vadd.f32 %v964_v50, %v963_v46  ;;  %v938_v37 = vmul.f32 %v10759_v3, %v10759_v3  ;;  %v976_v44 = vsel %vm823_vm2, %v936_v9, 0.0  ;;  %v10780_v20 = vsub.f32 %v10582_v28, %v10680_v18 }
 0x130   : > { %v939_v32 = vmul.f32 %v10766_v12, %v10766_v12  ;;  %v978_v33 = vsel %vm823_vm2, %v937_v13, 0.0  ;;  %v10787_v19 = vsub.f32 %v10579_v27, %v10680_v18  ;;  %v940_v52 = vmul.f32 %v10773_v11, %v10773_v11 }
 0x131   : > { %v967_v62 = vadd.f32 %v966_v57, %v965_v53  ;;  %v980_v45 = vsel %vm823_vm2, %v938_v37, 0.0  ;;  %v10794_v28 = vsub.f32 %v10592_v39, %v10680_v18  ;;  %v941_v47 = vmul.f32 %v10780_v20, %v10780_v20 }
 0x132   : > { %v982_v50 = vsel %vm823_vm2, %v939_v32, 0.0  ;;  %v10801_v27 = vsub.f32 %v10589_v36, %v10680_v18  ;;  %v942_v54 = vmul.f32 %v10787_v19, %v10787_v19  ;;  %v984_v57 = vsel %vm823_vm2, %v940_v52, 0.0 }
 0x133   : > { %v969_v1 = vadd.f32 %v968_v0, %v967_v62  ;;  %v10808_v39 = vsub.f32 %v10602_v49, %v10680_v18  ;;  %v943_v63 = vmul.f32 %v10794_v28, %v10794_v28  ;;  %v986_v0 = vsel %vm823_vm2, %v941_v47, 0.0 }
 0x134   : > { %v10815_v36 = vsub.f32 %v10599_v48, %v10680_v18  ;;  %v944_v2 = vmul.f32 %v10801_v27, %v10801_v27  ;;  %v10822_v49 = vsub.f32 %v10612_v61, %v10680_v18  ;;  %v10829_v48 = vsub.f32 %v10609_v58, %v10680_v18 }
 0x135   : > { %v971_v8 = vadd.f32 %v970_v5, %v969_v1  ;;  %v988_v5 = vsel %vm823_vm2, %v942_v54, 0.0  ;;  %v945_v9 = vmul.f32 %v10808_v39, %v10808_v39  ;;  %v10836_v61 = vsub.f32 %v10622_v7, %v10680_v18 }
 0x136   : > { %v946_v13 = vmul.f32 %v10815_v36, %v10815_v36  ;;  %v947_v37 = vmul.f32 %v10822_v49, %v10822_v49  ;;  %v10843_v58 = vsub.f32 %v10619_v6, %v10680_v18  ;;  %v948_v32 = vmul.f32 %v10829_v48, %v10829_v48 }
 0x137   : > { %v973_v10 = vadd.f32 %v972_v35, %v971_v8  ;;  %v990_v35 = vsel %vm823_vm2, %v943_v63, 0.0  ;;  %v919_v7 = vsub.f32 %v10632_v17, %v10680_v18  ;;  %v949_v52 = vmul.f32 %v10836_v61, %v10836_v61 }
 0x138   : > { %v10855_v47 = vsub.f32 %v10629_v16, %v10680_v18  ;;  %v950_v6 = vmul.f32 %v10843_v58, %v10843_v58  ;;  %v10862_v54 = vsub.f32 %v10642_v29, %v10680_v18  ;;  %v10867_v63 = vsub.f32 %v10639_v26, %v10680_v18 }
 0x139   : > { %v975_v38 = vadd.f32 %v974_v15, %v973_v10  ;;  %v992_v15 = vsel %vm823_vm2, %v944_v2, 0.0  ;;  %v951_v17 = vmul.f32 %v919_v7, %v919_v7  ;;  %v10874_v2 = vsub.f32 %v10652_v42, %v10680_v18 }
 0x13a   : > { %v952_v16 = vmul.f32 %v10855_v47, %v10855_v47  ;;  %v953_v29 = vmul.f32 %v10862_v54, %v10862_v54  ;;  %v10881_v26 = vsub.f32 %v10649_v41, %v10680_v18  ;;  %v10888_v42 = vsub.f32 %v10662_v56, %v10680_v18 }
 0x13b   : > { %v977_v43 = vadd.f32 %v976_v44, %v975_v38  ;;  %v994_v44 = vsel %vm823_vm2, %v945_v9, 0.0  ;;  %v954_v9 = vmul.f32 %v10867_v63, %v10867_v63  ;;  %v10895_v41 = vsub.f32 %v10659_v55, %v10680_v18 }
 0x13c   : > { %v957_v56 = vmul.f32 %v10888_v42, %v10888_v42 }
 0x13d   : > { %v979_v34 = vadd.f32 %v978_v33, %v977_v43  ;;  %v996_v33 = vsel %vm823_vm2, %v946_v13, 0.0  ;;  %v955_v13 = vmul.f32 %v10874_v2, %v10874_v2 }
 0x13e   : > { %v1018_v55 = vsel %vm823_vm2, %v957_v56, 0.0 }
 0x13f   : > { %v981_v46 = vadd.f32 %v980_v45, %v979_v34  ;;  %v998_v45 = vsel %vm823_vm2, %v947_v37, 0.0  ;;  %v956_v37 = vmul.f32 %v10881_v26, %v10881_v26 }
 0x141   : > { %v983_v53 = vadd.f32 %v982_v50, %v981_v46  ;;  %v1000_v50 = vsel %vm823_vm2, %v948_v32, 0.0  ;;  %v1014_v32 = vsel %vm823_vm2, %v955_v13, 0.0 }
 0x143   : > { %v985_v62 = vadd.f32 %v984_v57, %v983_v53  ;;  %v1002_v57 = vsel %vm823_vm2, %v949_v52, 0.0  ;;  %v1016_v52 = vsel %vm823_vm2, %v956_v37, 0.0 }
 0x145   : > { %v987_v1 = vadd.f32 %v986_v0, %v985_v62  ;;  %v1004_v0 = vsel %vm823_vm2, %v950_v6, 0.0 }
 0x147   : > { %v989_v8 = vadd.f32 %v988_v5, %v987_v1  ;;  %v1006_v5 = vsel %vm823_vm2, %v951_v17, 0.0 }
 0x149   : > { %v991_v10 = vadd.f32 %v990_v35, %v989_v8  ;;  %v1008_v35 = vsel %vm823_vm2, %v952_v16, 0.0 }
 0x14b   : > { %v993_v38 = vadd.f32 %v992_v15, %v991_v10  ;;  %v1010_v15 = vsel %vm823_vm2, %v953_v29, 0.0 }
 0x14d   : > { %v995_v43 = vadd.f32 %v994_v44, %v993_v38  ;;  %v1012_v44 = vsel %vm823_vm2, %v954_v9, 0.0 }
 0x14f   : > { %v997_v34 = vadd.f32 %v996_v33, %v995_v43 }
 0x151   : > { %v999_v46 = vadd.f32 %v998_v45, %v997_v34  ;;  %v958_v34 = vmul.f32 %v10895_v41, %v10895_v41 }
 0x153   : > { %v1001_v53 = vadd.f32 %v1000_v50, %v999_v46  ;;  %v1020_v46 = vsel %vm823_vm2, %v958_v34, 0.0 }
 0x155   : > { %v1003_v62 = vadd.f32 %v1002_v57, %v1001_v53 }
 0x157   : > { %v1005_v1 = vadd.f32 %v1004_v0, %v1003_v62 }
 0x159   : > { %v1007_v8 = vadd.f32 %v1006_v5, %v1005_v1 }
 0x15b   : > { %v1009_v10 = vadd.f32 %v1008_v35, %v1007_v8 }
 0x15d   : > { %v1011_v38 = vadd.f32 %v1010_v15, %v1009_v10 }
 0x15f   : > { %v1013_v43 = vadd.f32 %v1012_v44, %v1011_v38 }
 0x161   : > { %v1015_v33 = vadd.f32 %v1014_v32, %v1013_v43 }
 0x163   : > { %v1017_v45 = vadd.f32 %v1016_v52, %v1015_v33 }
 0x165   : > { %v1019_v18 = vadd.f32 %v1018_v55, %v1017_v45 }
 0x167   : > { %v1021_v6 = vadd.f32 %v1020_v46, %v1019_v18 }
 0x169   : > { %v1022_v50 = vrot.slane %v1021_v6, 4 }
 0x16b   : > { %v1023_v53 = vadd.f32 %v1022_v50, %v1021_v6 }
 0x16d   : > { %v1024_v17 = vrot.slane %v1023_v53, 2 }
 0x16f   : > { %v1025_v57 = vadd.f32 %v1024_v17, %v1023_v53 }
 0x171   : > { %v1026_v62 = vrot.slane %v1025_v57, 1 }
 0x173   : > { %v1027_v16 = vadd.f32 %v1026_v62, %v1025_v57 }
 0x175   : > { %v1028_v0 = vmul.f32 0.00390625, %v1027_v16 }
 0x177   : > { %v1029_v1 = vadd.f32 1e-05, %v1028_v0 }
 0x179   : > { %10327 = vrsqrt.f32 %v1029_v1 }
 0x186   : > { %v10908_v29 = vpop.eup %10327 }
 0x187   : > { %v1031_v5 = vmul.f32 %v10908_v29, %v10684_v21  ;;  %v1032_v8 = vmul.f32 %v10908_v29, %v10688_v22  ;;  %v1033_v9 = vmul.f32 %v10908_v29, %v10697_v24  ;;  %v10917_v35 = vmul.f32 %v10908_v29, %v919_v7  ;;  %v10933_v22 = vld [vmem:[%s13176_s3 + $0x48] sm:$0xff] }
 0x188   : > { %v1047_v10 = vmul.f32 %v10908_v29, %v10794_v28  ;;  %v1034_v38 = vmul.f32 %v10908_v29, %v10702_v25  ;;  %v1048_v21 = vmul.f32 %v10908_v29, %v10801_v27  ;;  %v1035_v24 = vmul.f32 %v10908_v29, %v10710_v30 }
 0x189   : > { %v1063_v13 = vmax.f32 %v1031_v5, 0.0  ;;  %v10921_v15 = vmax.f32 %v1032_v8, 0.0  ;;  %v10927_v37 = vmax.f32 %v1033_v9, 0.0  ;;  %v1036_v25 = vmul.f32 %v10908_v29, %v10716_v31  ;;  %v453_v5 = vld [vmem:[%s13176_s3 + $0x58] sm:$0xff] }
 0x18a   : > { %v10939_v28 = vmax.f32 %v1047_v10, 0.0  ;;  %v1049_v27 = vmul.f32 %v10908_v29, %v10808_v39  ;;  %v10948_v7 = vmax.f32 %v1034_v38, 0.0  ;;  %v1037_v30 = vmul.f32 %v10908_v29, %v10724_v40 }
 0x18b   : > { %9662 = vmatprep.mubr.msk.f32.mxu0 %vm823_vm2, %v1063_v13  ;;  %v1050_v44 = vmul.f32 %v10908_v29, %v10815_v36  ;;  %v10955_v43 = vmax.f32 %v1048_v21, 0.0  ;;  %v10964_v31 = vmax.f32 %v1035_v24, 0.0  ;;  %v1038_v40 = vmul.f32 %v10908_v29, %v10731_v51  ;;  %v445_v21 = vld [vmem:[%s13176_s3 + $0x18] sm:$0xff] }
 0x18c   : > { %9663 = vmatmul.mubr.msk.f32.vlgmr.msra.gmra.mxu0 %vm823_vm2, %v10921_v15  ;;  %9592 = vmatprep.mubr.msk.f32.mxu1 %vm823_vm2, %v10939_v28  ;;  %v1051_v39 = vmul.f32 %v10908_v29, %v10822_v49  ;;  %v10977_v36 = vmax.f32 %v1036_v25, 0.0  ;;  %v10979_v56 = vmax.f32 %v1049_v27, 0.0  ;;  %v10986_v32 = vmax.f32 %v1037_v30, 0.0 }
 0x18d   : > { %9665 = vmatprep.mubr.msk.f32.mxu0 %vm823_vm2, %v10927_v37  ;;  %9689 = vmatpush3.msra.mxu0 %v10693_v23  ;;  %v10962_v23 = vld [vmem:[%s13176_s3 + $0x10] sm:$0xff]  ;;  %v10988_v33 = vmax.f32 %v1050_v44, 0.0  ;;  %v1056_v51 = vmul.f32 %v10908_v29, %v10855_v47  ;;  %v1087_v49 = vmax.f32 %v10917_v35, 0.0  ;;  %v2153_v34 = vrot.slane %v1063_v13, 1 }
 0x18e   : > { %9716 = vmatprep.subr.mxu0 %v10933_v22  ;;  %9593 = vmatmul.mubr.msk.f32.vlgmr.msra.gmra.mxu1 %vm823_vm2, %v10939_v28  ;;  %v11003_v47 = vmax.f32 %v1038_v40, 0.0  ;;  %v11005_v52 = vmax.f32 %v1051_v39, 0.0  ;;  %v1057_v45 = vmul.f32 %v10908_v29, %v10862_v54  ;;  %v1058_v55 = vmul.f32 %v10908_v29, %v10867_v63 }
 0x18f   : > { %9605 = vmatpush3.msra.mxu1 %v10677_v14  ;;  %9595 = vmatprep.mubr.msk.f32.mxu1 %vm823_vm2, %v10955_v43  ;;  %v1052_v14 = vmul.f32 %v10908_v29, %v10829_v48  ;;  %v1053_v48 = vmul.f32 %v10908_v29, %v10836_v61  ;;  %v2156_v46 = vrot.slane %v10921_v15, 1  ;;  %v1088_v6 = vmax.f32 %v1056_v51, 0.0 }
 0x190   : > { %9666 = vmatmul.mubr.msk.f32.gmra.mxu0 %vm823_vm2, %v10948_v7  ;;  %9618 = vmatprep.subr.mxu1 %v10962_v23  ;;  %v11018_v61 = vrot.slane %v1087_v49, 7  ;;  %v2155_v50 = vsel %vm1437_vm3, %v2153_v34, %v1063_v13  ;;  %v2159_v54 = vrot.slane %v10927_v37, 1  ;;  %v1059_v63 = vmul.f32 %v10908_v29, %v10874_v2 }
 0x191   : > { %9668 = vmatprep.mubr.msk.f32.mxu0 %vm823_vm2, %v10964_v31  ;;  %v11011_v18 = vmax.f32 %v1052_v14, 0.0  ;;  %v11027_v53 = vmax.f32 %v1053_v48, 0.0  ;;  %v1060_v17 = vmul.f32 %v10908_v29, %v10881_v26  ;;  %v1089_v57 = vmax.f32 %v1057_v45, 0.0 }
 0x192   : > { %9596 = vmatmul.mubr.msk.f32.gmra.mxu1 %vm823_vm2, %v10979_v56  ;;  %v11033_v62 = vsel %vm1437_vm3, %v2156_v46, %v10921_v15  ;;  %v2162_v16 = vrot.slane %v10948_v7, 1  ;;  %v1090_v0 = vmax.f32 %v1058_v55, 0.0  ;;  %v11036_v1 = vrot.slane %v1088_v6, 7 }
 0x193   : > { %9598 = vmatprep.mubr.msk.f32.mxu1 %vm823_vm2, %v10988_v33  ;;  %v11042_v2 = vsel %vm1119_vm4, %v1087_v49, %v11018_v61  ;;  %v11048_v26 = vsel %vm1437_vm3, %v2159_v54, %v10927_v37  ;;  %v2165_v8 = vrot.slane %v10964_v31, 1  ;;  %v1061_v9 = vmul.f32 %v10908_v29, %v10888_v42 }
 0x194   : > { %9669 = vmatmul.mubr.msk.f32.gmra.mxu0 %vm823_vm2, %v10977_v36  ;;  %v1091_v35 = vmax.f32 %v1059_v63, 0.0  ;;  %v11061_v10 = vrot.slane %v1089_v57, 7  ;;  %v11065_v13 = vsel %vm1437_vm3, %v2162_v16, %v10948_v7  ;;  %v2168_v38 = vrot.slane %v10977_v36, 1 }
 0x195   : > { %9671 = vmatprep.mubr.msk.f32.mxu0 %vm823_vm2, %v10986_v32  ;;  %v1092_v24 = vmax.f32 %v1060_v17, 0.0  ;;  %v11071_v25 = vrot.slane %v1090_v0, 7  ;;  %v11077_v42 = vsel %vm1119_vm4, %v1088_v6, %v11036_v1  ;;  %v11087_v27 = vsel %vm1437_vm3, %v2165_v8, %v10964_v31  ;;  %v455_v17 = vld [vmem:[%s13176_s3 + $0x68] sm:$0xff] }
 0x196   : > { %9599 = vmatmul.mubr.msk.f32.gmra.mxu1 %vm823_vm2, %v11005_v52  ;;  %v1093_v30 = vmax.f32 %v1061_v9, 0.0  ;;  %v11093_v44 = vsel %vm1119_vm4, %v1089_v57, %v11061_v10  ;;  %v1107_v40 = vrot.slane %v1091_v35, 7  ;;  %v2174_v39 = vrot.slane %v11003_v47, 1 }
 0x197   : > { %9601 = vmatprep.mubr.msk.f32.mxu1 %vm823_vm2, %v11011_v18  ;;  %v1108_v14 = vrot.slane %v1092_v24, 7  ;;  %v11104_v51 = vsel %vm1119_vm4, %v1090_v0, %v11071_v25  ;;  %v1438_v55 = vrot.slane %v11042_v2, 1  ;;  %v1439_v6 = vrot.slane %v11018_v61, 1  ;;  %v446_v0 = vld [vmem:[%s13176_s3 + $0x20] sm:$0xff] }
 0x198   : > { %9672 = vmatmul.mubr.msk.f32.gmra.mxu0 %vm823_vm2, %v11003_v47  ;;  %v11117_v34 = vsel %vm1119_vm4, %v1091_v35, %v1107_v40  ;;  %v1109_v48 = vrot.slane %v1093_v30, 7  ;;  %v11121_v45 = vsel %vm1437_vm3, %v2174_v39, %v11003_v47  ;;  %v1441_v54 = vrot.slane %v11077_v42, 1 }
 0x199   : > { %9690 = vmatprep.mubr.msk.f32.mxu0 %vm823_vm2, %v2155_v50  ;;  %v11127_v46 = vsel %vm1119_vm4, %v1092_v24, %v1108_v14  ;;  %v11143_v63 = vsel %vm1437_vm3, %v1438_v55, %v1439_v6  ;;  %v1442_v61 = vrot.slane %v11036_v1, 1  ;;  %v1444_v57 = vrot.slane %v11093_v44, 1 }
 0x19a   : > { %9602 = vmatmul.mubr.msk.f32.gmra.mxu1 %vm823_vm2, %v11027_v53  ;;  %v11137_v50 = vsel %vm1119_vm4, %v1093_v30, %v1109_v48  ;;  %v1445_v16 = vrot.slane %v11061_v10, 1  ;;  %v1447_v1 = vrot.slane %v11104_v51, 1  ;;  %v1054_v9 = vmul.f32 %v10908_v29, %v10843_v58 }
 0x19b   : > { %9606 = vmatprep.mubr.msk.f32.mxu1 %vm823_vm2, %v11042_v2  ;;  %v11164_v8 = vsel %vm1437_vm3, %v1441_v54, %v1442_v61  ;;  %v1450_v35 = vrot.slane %v11117_v34, 1  ;;  %v1453_v24 = vrot.slane %v11127_v46, 1  ;;  %v1454_v58 = vrot.slane %v1108_v14, 1 }
 0x19c   : > { %9691 = vmatmul.mubr.msk.f32.vlgmr.msra.gmra.mxu0 %vm823_vm2, %v11033_v62  ;;  %v11177_v10 = vsel %vm1437_vm3, %v1444_v57, %v1445_v16  ;;  %v1456_v30 = vrot.slane %v11137_v50, 1  ;;  %v1457_v39 = vrot.slane %v1109_v48, 1  ;;  %v1589_v55 = vrot.slane %v10955_v43, 1  ;;  %v457_v16 = vld [vmem:[%s13176_s3 + $0x78] sm:$0xff] }
 0x19d   : > { %9693 = vmatprep.mubr.msk.f32.mxu0 %vm823_vm2, %v11048_v26  ;;  %9717 = vmatpush3.msra.mxu0 %v10933_v22  ;;  %v2171_v22 = vrot.slane %v10986_v32, 1  ;;  %v11200_v14 = vsel %vm1437_vm3, %v1453_v24, %v1454_v58  ;;  %v1592_v54 = vrot.slane %v10979_v56, 1  ;;  %v1595_v57 = vrot.slane %v10988_v33, 1 }
 0x19e   : > { %9744 = vmatprep.subr.mxu0 %v453_v5  ;;  %9607 = vmatmul.mubr.msk.f32.vlgmr.msra.gmra.mxu1 %vm823_vm2, %v11042_v2  ;;  %v11210_v48 = vsel %vm1437_vm3, %v1456_v30, %v1457_v39  ;;  %v1591_v61 = vsel %vm1437_vm3, %v1589_v55, %v10955_v43  ;;  %v1041_v24 = vmul.f32 %v10908_v29, %v10752_v4 }
 0x19f   : > { %9619 = vmatpush3.msra.mxu1 %v10962_v23  ;;  %9609 = vmatprep.mubr.msk.f32.mxu1 %vm823_vm2, %v11077_v42  ;;  %v11097_v23 = vsel %vm1437_vm3, %v2168_v38, %v10977_v36  ;;  %v11110_v49 = vsel %vm1437_vm3, %v2171_v22, %v10986_v32  ;;  %v1451_v38 = vrot.slane %v1107_v40, 1  ;;  %v1086_v22 = vmax.f32 %v1054_v9, 0.0 }
 0x1a0   : > { %9694 = vmatmul.mubr.msk.f32.gmra.mxu0 %vm823_vm2, %v11065_v13  ;;  %9632 = vmatprep.subr.mxu1 %v445_v21  ;;  %v1039_v9 = vmul.f32 %v10908_v29, %v10738_v60  ;;  %v1043_v4 = vmul.f32 %v10908_v29, %v10766_v12 }
 0x1a1   : > { %9696 = vmatprep.mubr.msk.f32.mxu0 %vm823_vm2, %v11087_v27  ;;  %v11194_v40 = vsel %vm1437_vm3, %v1450_v35, %v1451_v38  ;;  %v1604_v35 = vrot.slane %v11027_v53, 1  ;;  %v2655_v38 = vrot.slane %v1086_v22, 1 }
 0x1a2   : > { %9610 = vmatmul.mubr.msk.f32.gmra.mxu1 %vm823_vm2, %v11093_v44  ;;  %v1071_v58 = vmax.f32 %v1039_v9, 0.0  ;;  %v1075_v12 = vmax.f32 %v1043_v4, 0.0 }
 0x1a3   : > { %9612 = vmatprep.mubr.msk.f32.mxu1 %vm823_vm2, %v11104_v51 }
 0x1a4   : > { %9697 = vmatmul.mubr.msk.f32.gmra.mxu0 %vm823_vm2, %v11097_v23  ;;  %v1152_v30 = vrot.slane %v1071_v58, 7 }
 0x1a5   : > { %9699 = vmatprep.mubr.msk.f32.mxu0 %vm823_vm2, %v11110_v49 }
 0x1a6   : > { %9613 = vmatmul.mubr.msk.f32.gmra.mxu1 %vm823_vm2, %v11117_v34  ;;  %v1168_v55 = vsel %vm1119_vm4, %v1071_v58, %v1152_v30  ;;  %v452_v58 = vld [vmem:[%s13176_s3 + $0x50] sm:$0xff] }
 0x1a7   : > { %9615 = vmatprep.mubr.msk.f32.mxu1 %vm823_vm2, %v11127_v46 }
 0x1a8   : > { %9700 = vmatmul.mubr.msk.f32.gmra.mxu0 %vm823_vm2, %v11121_v45 }
 0x1a9   : > { %9718 = vmatprep.mubr.msk.f32.mxu0 %vm823_vm2, %v10939_v28 }
 0x1aa   : > { %9616 = vmatmul.mubr.msk.f32.gmra.mxu1 %vm823_vm2, %v11137_v50 }
 0x1ab   : > { %9620 = vmatprep.mubr.msk.f32.mxu1 %vm823_vm2, %v11143_v63 }
 0x1ac   : > { %9719 = vmatmul.mubr.msk.f32.vlgmr.msra.gmra.mxu0 %vm823_vm2, %v10955_v43  ;;  %v1598_v43 = vrot.slane %v11005_v52, 1 }
 0x1ad   : > { %9721 = vmatprep.mubr.msk.f32.mxu0 %vm823_vm2, %v10979_v56  ;;  %9745 = vmatpush3.msra.mxu0 %v453_v5  ;;  %v1448_v5 = vrot.slane %v11071_v25, 1  ;;  %v1586_v25 = vrot.slane %v10939_v28, 1 }
 0x1ae   : > { %9772 = vmatprep.subr.mxu0 %v455_v17  ;;  %9621 = vmatmul.mubr.msk.f32.vlgmr.msra.gmra.mxu1 %vm823_vm2, %v11143_v63 }
 0x1af   : > { %9633 = vmatpush3.msra.mxu1 %v445_v21  ;;  %9623 = vmatprep.mubr.msk.f32.mxu1 %vm823_vm2, %v11164_v8  ;;  %v11183_v21 = vsel %vm1437_vm3, %v1447_v1, %v1448_v5  ;;  %v1588_v6 = vsel %vm1437_vm3, %v1586_v25, %v10939_v28  ;;  %v1594_v28 = vsel %vm1437_vm3, %v1592_v54, %v10979_v56  ;;  %v1601_v5 = vrot.slane %v11011_v18, 1  ;;  %v448_v56 = vld [vmem:[%s13176_s3 + $0x30] sm:$0xff] }
 0x1b0   : > { %9722 = vmatmul.mubr.msk.f32.gmra.mxu0 %vm823_vm2, %v10988_v33  ;;  %9646 = vmatprep.subr.mxu1 %v446_v0  ;;  %v1597_v1 = vsel %vm1437_vm3, %v1595_v57, %v10988_v33  ;;  %v1600_v33 = vsel %vm1437_vm3, %v1598_v43, %v11005_v52  ;;  %v1073_v25 = vmax.f32 %v1041_v24, 0.0 }
 0x1b1   : > { %9724 = vmatprep.mubr.msk.f32.mxu0 %vm823_vm2, %v11005_v52  ;;  %v1603_v60 = vsel %vm1437_vm3, %v1601_v5, %v11011_v18  ;;  %v1606_v52 = vsel %vm1437_vm3, %v1604_v35, %v11027_v53  ;;  %v2000_v5 = vrot.slane %v1168_v55, 1 }
 0x1b2   : > { %9624 = vmatmul.mubr.msk.f32.gmra.mxu1 %vm823_vm2, %v11177_v10 }
 0x1b3   : > { %9626 = vmatprep.mubr.msk.f32.mxu1 %vm823_vm2, %v11183_v21 }
 0x1b4   : > { %9725 = vmatmul.mubr.msk.f32.gmra.mxu0 %vm823_vm2, %v11011_v18 }
 0x1b5   : > { %9727 = vmatprep.mubr.msk.f32.mxu0 %vm823_vm2, %v11027_v53 }
 0x1b6   : > { %9627 = vmatmul.mubr.msk.f32.gmra.mxu1 %vm823_vm2, %v11194_v40 }
 0x1b7   : > { %9629 = vmatprep.mubr.msk.f32.mxu1 %vm823_vm2, %v11200_v14 }
 0x1b8   : > { %9728 = vmatmul.mubr.msk.f32.gmra.mxu0 %vm823_vm2, %v1086_v22 }
 0x1b9   : > { %9746 = vmatprep.mubr.msk.f32.mxu0 %vm823_vm2, %v1588_v6 }
 0x1ba   : > { %9630 = vmatmul.mubr.msk.f32.gmra.mxu1 %vm823_vm2, %v11210_v48 }
 0x1bb   : > { %9634 = vmatprep.mubr.msk.f32.mxu1 %vm823_vm2, %v1588_v6 }
 0x1bc   : > { %9747 = vmatmul.mubr.msk.f32.vlgmr.msra.gmra.mxu0 %vm823_vm2, %v1591_v61 }
 0x1bd   : > { %9749 = vmatprep.mubr.msk.f32.mxu0 %vm823_vm2, %v1594_v28  ;;  %9773 = vmatpush3.msra.mxu0 %v455_v17  ;;  %v1040_v17 = vmul.f32 %v10908_v29, %v10745_v59  ;;  %v1042_v59 = vmul.f32 %v10908_v29, %v10759_v3  ;;  %v1044_v3 = vmul.f32 %v10908_v29, %v10773_v11 }
 0x1be   : > { %9800 = vmatprep.subr.mxu0 %v457_v16  ;;  %9635 = vmatmul.mubr.msk.f32.vlgmr.msra.gmra.mxu1 %vm823_vm2, %v1588_v6  ;;  %v1154_v6 = vrot.slane %v1073_v25, 7  ;;  %v1046_v11 = vmul.f32 %v10908_v29, %v10787_v19  ;;  %v1156_v19 = vrot.slane %v1075_v12, 7 }
 0x1bf   : > { %9647 = vmatpush3.msra.mxu1 %v446_v0  ;;  %9637 = vmatprep.mubr.msk.f32.mxu1 %vm823_vm2, %v1591_v61  ;;  %v1072_v18 = vmax.f32 %v1040_v17, 0.0  ;;  %v2657_v0 = vsel %vm1437_vm3, %v2655_v38, %v1086_v22  ;;  %v1074_v53 = vmax.f32 %v1042_v59, 0.0  ;;  %v1045_v22 = vmul.f32 %v10908_v29, %v10780_v20  ;;  %v450_v61 = vld [vmem:[%s13176_s3 + $0x40] sm:$0xff] }
 0x1c0   : > { %9750 = vmatmul.mubr.msk.f32.gmra.mxu0 %vm823_vm2, %v1597_v1  ;;  %9674 = vmatprep.subr.mxu1 %v448_v56  ;;  %v11285_v57 = vsel %vm1119_vm4, %v1073_v25, %v1154_v6  ;;  %v11299_v43 = vsel %vm1119_vm4, %v1075_v12, %v1156_v19 }
 0x1c1   : > { %9752 = vmatprep.mubr.msk.f32.mxu0 %vm823_vm2, %v1600_v33  ;;  %v1153_v39 = vrot.slane %v1072_v18, 7  ;;  %v1155_v20 = vrot.slane %v1074_v53, 7  ;;  %v2006_v17 = vrot.slane %v11285_v57, 1 }
 0x1c2   : > { %9638 = vmatmul.mubr.msk.f32.gmra.mxu1 %vm823_vm2, %v1594_v28 }
 0x1c3   : > { %9640 = vmatprep.mubr.msk.f32.mxu1 %vm823_vm2, %v1597_v1  ;;  %v11277_v54 = vsel %vm1119_vm4, %v1072_v18, %v1153_v39  ;;  %v2004_v9 = vrot.slane %v1153_v39, 1  ;;  %v2010_v24 = vrot.slane %v1155_v20, 1  ;;  %v1062_v39 = vmul.f32 %v10908_v29, %v10895_v41 }
 0x1c4   : > { %9753 = vmatmul.mubr.msk.f32.gmra.mxu0 %vm823_vm2, %v1603_v60  ;;  %v2003_v35 = vrot.slane %v11277_v54, 1 }
 0x1c5   : > { %9755 = vmatprep.mubr.msk.f32.mxu0 %vm823_vm2, %v1606_v52 }
 0x1c6   : > { %9641 = vmatmul.mubr.msk.f32.gmra.mxu1 %vm823_vm2, %v1600_v33  ;;  %v11336_v38 = vsel %vm1437_vm3, %v2003_v35, %v2004_v9 }
 0x1c7   : > { %9643 = vmatprep.mubr.msk.f32.mxu1 %vm823_vm2, %v1603_v60  ;;  %v2007_v60 = vrot.slane %v1154_v6, 1 }
 0x1c8   : > { %9756 = vmatmul.mubr.msk.f32.gmra.mxu0 %vm823_vm2, %v2657_v0 }
 0x1c9   : > { %9774 = vmatprep.mubr.msk.f32.mxu0 %vm823_vm2, %v10921_v15  ;;  %v1076_v15 = vmax.f32 %v1044_v3, 0.0 }
 0x1ca   : > { %9644 = vmatmul.mubr.msk.f32.gmra.mxu1 %vm823_vm2, %v1606_v52  ;;  %v2012_v52 = vrot.slane %v11299_v43, 1 }
 0x1cb   : > { %9648 = vmatprep.mubr.msk.f32.mxu1 %vm823_vm2, %v1168_v55  ;;  %v1157_v28 = vrot.slane %v1076_v15, 7 }
 0x1cc   : > { %9775 = vmatmul.mubr.msk.f32.vlgmr.msra.gmra.mxu0 %vm823_vm2, %v10927_v37  ;;  %v1077_v37 = vmax.f32 %v1045_v22, 0.0  ;;  %v454_v22 = vld [vmem:[%s13176_s3 + $0x60] sm:$0xff] }
 0x1cd   : > { %9777 = vmatprep.mubr.msk.f32.mxu0 %vm823_vm2, %v10948_v7  ;;  %9801 = vmatpush3.msra.mxu0 %v457_v16  ;;  %v1078_v7 = vmax.f32 %v1046_v11, 0.0  ;;  %v11294_v16 = vsel %vm1119_vm4, %v1074_v53, %v1155_v20  ;;  %v11308_v1 = vsel %vm1119_vm4, %v1076_v15, %v1157_v28  ;;  %v2016_v0 = vrot.slane %v1157_v28, 1 }
 0x1ce   : > { %9649 = vmatmul.mubr.msk.f32.vlgmr.msra.gmra.mxu1 %vm823_vm2, %v11277_v54  ;;  %v2015_v59 = vrot.slane %v11308_v1, 1 }
 0x1cf   : > { %9675 = vmatpush3.msra.mxu1 %v448_v56  ;;  %9651 = vmatprep.mubr.msk.f32.mxu1 %vm823_vm2, %v11285_v57 }
 0x1d0   : > { %9778 = vmatmul.mubr.msk.f32.gmra.mxu0 %vm823_vm2, %v10964_v31  ;;  %9702 = vmatprep.subr.mxu1 %v450_v61  ;;  %v1158_v31 = vrot.slane %v1077_v37, 7 }
 0x1d1   : > { %9780 = vmatprep.mubr.msk.f32.mxu0 %vm823_vm2, %v10977_v36  ;;  %v1159_v36 = vrot.slane %v1078_v7, 7 }
 0x1d2   : > { %9652 = vmatmul.mubr.msk.f32.gmra.mxu1 %vm823_vm2, %v11294_v16  ;;  %v11313_v56 = vsel %vm1119_vm4, %v1077_v37, %v1158_v31  ;;  %v2019_v25 = vrot.slane %v1158_v31, 1 }
 0x1d3   : > { %9654 = vmatprep.mubr.msk.f32.mxu1 %vm823_vm2, %v11299_v43  ;;  %v11323_v33 = vsel %vm1119_vm4, %v1078_v7, %v1159_v36  ;;  %v2018_v4 = vrot.slane %v11313_v56, 1  ;;  %v2022_v3 = vrot.slane %v1159_v36, 1 }
 0x1d4   : > { %9781 = vmatmul.mubr.msk.f32.gmra.mxu0 %vm823_vm2, %v10986_v32  ;;  %v2001_v32 = vrot.slane %v1152_v30, 1  ;;  %v2017_v30 = vsel %vm1437_vm3, %v2015_v59, %v2016_v0 }
 0x1d5   : > { %9783 = vmatprep.mubr.msk.f32.mxu0 %vm823_vm2, %v11003_v47  ;;  %v2020_v53 = vsel %vm1437_vm3, %v2018_v4, %v2019_v25 }
 0x1d6   : > { %9655 = vmatmul.mubr.msk.f32.gmra.mxu1 %vm823_vm2, %v11308_v1 }
 0x1d7   : > { %9657 = vmatprep.mubr.msk.f32.mxu1 %vm823_vm2, %v11313_v56 }
 0x1d8   : > { %9784 = vmatmul.mubr.msk.f32.gmra.mxu0 %vm823_vm2, %v11003_v47  ;;  %v2002_v47 = vsel %vm1437_vm3, %v2000_v5, %v2001_v32 }
 0x1d9   : > { %9802 = vmatprep.mubr.msk.f32.mxu0 %vm823_vm2, %v11033_v62  ;;  %v2009_v62 = vrot.slane %v11294_v16, 1 }
 0x1da   : > { %9658 = vmatmul.mubr.msk.f32.gmra.mxu1 %vm823_vm2, %v11323_v33 }
 0x1db   : > { %9676 = vmatprep.mubr.msk.f32.mxu1 %vm823_vm2, %v2002_v47  ;;  %v2011_v18 = vsel %vm1437_vm3, %v2009_v62, %v2010_v24 }
 0x1dc   : > { %9803 = vmatmul.mubr.msk.f32.vlgmr.msra.gmra.mxu0 %vm823_vm2, %v11048_v26  ;;  %v11345_v26 = vsel %vm1437_vm3, %v2006_v17, %v2007_v60 }
 0x1dd   : > { %9805 = vmatprep.mubr.msk.f32.mxu0 %vm823_vm2, %v11065_v13  ;;  %v2013_v13 = vrot.slane %v1156_v19, 1 }
 0x1de   : > { %9677 = vmatmul.mubr.msk.f32.vlgmr.msra.gmra.mxu1 %vm823_vm2, %v11336_v38 }
 0x1df   : > { %9703 = vmatpush3.msra.mxu1 %v450_v61  ;;  %9679 = vmatprep.mubr.msk.f32.mxu1 %vm823_vm2, %v11345_v26 }
 0x1e0   : > { %9806 = vmatmul.mubr.msk.f32.gmra.mxu0 %vm823_vm2, %v11087_v27  ;;  %9730 = vmatprep.subr.mxu1 %v452_v58  ;;  %v2014_v27 = vsel %vm1437_vm3, %v2012_v52, %v2013_v13 }
 0x1e1   : > { %9808 = vmatprep.mubr.msk.f32.mxu0 %vm823_vm2, %v11097_v23  ;;  %v2021_v23 = vrot.slane %v11323_v33, 1 }
 0x1e2   : > { %9680 = vmatmul.mubr.msk.f32.gmra.mxu1 %vm823_vm2, %v2011_v18 }
 0x1e3   : > { %9682 = vmatprep.mubr.msk.f32.mxu1 %vm823_vm2, %v2014_v27 }
 0x1e4   : > { %9809 = vmatmul.mubr.msk.f32.gmra.mxu0 %vm823_vm2, %v11110_v49  ;;  %v2023_v49 = vsel %vm1437_vm3, %v2021_v23, %v2022_v3 }
 0x1e5   : > { %9811 = vmatprep.mubr.msk.f32.mxu0 %vm823_vm2, %v11121_v45 }
 0x1e6   : > { %9683 = vmatmul.mubr.msk.f32.gmra.mxu1 %vm823_vm2, %v2017_v30 }
 0x1e7   : > { %9685 = vmatprep.mubr.msk.f32.mxu1 %vm823_vm2, %v2020_v53 }
 0x1e8   : > { %9812 = vmatmul.mubr.msk.f32.gmra.mxu0 %vm823_vm2, %v11121_v45  ;;  %v1094_v45 = vmax.f32 %v1062_v39, 0.0 }
 0x1ea   : > { %9686 = vmatmul.mubr.msk.f32.gmra.mxu1 %vm823_vm2, %v2023_v49  ;;  %v1110_v41 = vrot.slane %v1094_v45, 7 }
 0x1eb   : > { %9704 = vmatprep.mubr.msk.f32.mxu1 %vm823_vm2, %v11042_v2  ;;  %v456_v2 = vld [vmem:[%s13176_s3 + $0x70] sm:$0xff] }
 0x1ec   : > { %v1127_v29 = vsel %vm1119_vm4, %v1094_v45, %v1110_v41 }
 0x1ee   : > { %9705 = vmatmul.mubr.msk.f32.vlgmr.msra.gmra.mxu1 %vm823_vm2, %v11077_v42  ;;  %v2537_v42 = vrot.slane %v1127_v29, 1 }
 0x1ef   : > { %9731 = vmatpush3.msra.mxu1 %v452_v58  ;;  %9707 = vmatprep.mubr.msk.f32.mxu1 %vm823_vm2, %v11093_v44  ;;  %v2538_v44 = vrot.slane %v1110_v41, 1 }
 0x1f0   : > { %9758 = vmatprep.subr.mxu1 %v454_v22 }
 0x1f2   : > { %9708 = vmatmul.mubr.msk.f32.gmra.mxu1 %vm823_vm2, %v11104_v51  ;;  %v2539_v51 = vsel %vm1437_vm3, %v2537_v42, %v2538_v44 }
 0x1f3   : > { %9710 = vmatprep.mubr.msk.f32.mxu1 %vm823_vm2, %v11117_v34 }
 0x1f6   : > { %9711 = vmatmul.mubr.msk.f32.gmra.mxu1 %vm823_vm2, %v11127_v46 }
 0x1f7   : > { %9713 = vmatprep.mubr.msk.f32.mxu1 %vm823_vm2, %v11137_v50 }
 0x1fa   : > { %9714 = vmatmul.mubr.msk.f32.gmra.mxu1 %vm823_vm2, %v1127_v29 }
 0x1fb   : > { %9732 = vmatprep.mubr.msk.f32.mxu1 %vm823_vm2, %v11143_v63 }
 0x1fe   : > { %9733 = vmatmul.mubr.msk.f32.vlgmr.msra.gmra.mxu1 %vm823_vm2, %v11164_v8 }
 0x1ff   : > { %9759 = vmatpush3.msra.mxu1 %v454_v22  ;;  %9735 = vmatprep.mubr.msk.f32.mxu1 %vm823_vm2, %v11177_v10 }
 0x200   : > { %9786 = vmatprep.subr.mxu1 %v456_v2 }
 0x202   : > { %9736 = vmatmul.mubr.msk.f32.gmra.mxu1 %vm823_vm2, %v11183_v21 }
 0x203   : > { %9738 = vmatprep.mubr.msk.f32.mxu1 %vm823_vm2, %v11194_v40 }
 0x206   : > { %9739 = vmatmul.mubr.msk.f32.gmra.mxu1 %vm823_vm2, %v11200_v14 }
 0x207   : > { %9741 = vmatprep.mubr.msk.f32.mxu1 %vm823_vm2, %v11210_v48 }
 0x20a   : > { %9742 = vmatmul.mubr.msk.f32.gmra.mxu1 %vm823_vm2, %v2539_v51 }
 0x20b   : > { %9760 = vmatprep.mubr.msk.f32.mxu1 %vm823_vm2, %v11277_v54 }
 0x20e   : > { %9761 = vmatmul.mubr.msk.f32.vlgmr.msra.gmra.mxu1 %vm823_vm2, %v11285_v57 }
 0x20f   : > { %9787 = vmatpush3.msra.mxu1 %v456_v2  ;;  %9763 = vmatprep.mubr.msk.f32.mxu1 %vm823_vm2, %v11294_v16 }
 0x212   : > { %9764 = vmatmul.mubr.msk.f32.gmra.mxu1 %vm823_vm2, %v11299_v43 }
 0x213   : > { %9766 = vmatprep.mubr.msk.f32.mxu1 %vm823_vm2, %v11308_v1 }
 0x216   : > { %9767 = vmatmul.mubr.msk.f32.gmra.mxu1 %vm823_vm2, %v11313_v56 }
 0x217   : > { %9769 = vmatprep.mubr.msk.f32.mxu1 %vm823_vm2, %v11323_v33 }
 0x21a   : > { %9770 = vmatmul.mubr.msk.f32.gmra.mxu1 %vm823_vm2, %v11323_v33 }
 0x21b   : > { %9788 = vmatprep.mubr.msk.f32.mxu1 %vm823_vm2, %v11336_v38 }
 0x21e   : > { %9789 = vmatmul.mubr.msk.f32.vlgmr.msra.gmra.mxu1 %vm823_vm2, %v11345_v26 }
 0x21f   : > { %9791 = vmatprep.mubr.msk.f32.mxu1 %vm823_vm2, %v2011_v18 }
 0x222   : > { %9792 = vmatmul.mubr.msk.f32.gmra.mxu1 %vm823_vm2, %v2014_v27 }
 0x223   : > { %9794 = vmatprep.mubr.msk.f32.mxu1 %vm823_vm2, %v2017_v30 }
 0x226   : > { %9795 = vmatmul.mubr.msk.f32.gmra.mxu1 %vm823_vm2, %v2020_v53 }
 0x227   : > { %9797 = vmatprep.mubr.msk.f32.mxu1 %vm823_vm2, %v2023_v49 }
 0x22a   : > { %9798 = vmatmul.mubr.msk.f32.gmra.mxu1 %vm823_vm2, %v2023_v49 }
 0x24c   : > { %v11438_v34 = vpop.f32.mrf.mxu0 }
 0x24e   : > { %v11440_v46 = vpop.f32.mrf.mxu0  ;;  %v9594_v50 = vpop.f32.mrf.mxu1 }
 0x250   : > { %v11442_v63 = vpop.f32.mrf.mxu0  ;;  %v11444_v8 = vpop.f32.mrf.mxu1 }
 0x252   : > { %v11446_v10 = vpop.f32.mrf.mxu0  ;;  %v9597_v21 = vpop.f32.mrf.mxu1 }
 0x254   : > { %v11448_v40 = vpop.f32.mrf.mxu0  ;;  %v11450_v14 = vpop.f32.mrf.mxu1 }
 0x256   : > { %v11452_v48 = vpop.f32.mrf.mxu0  ;;  %v9600_v12 = vpop.f32.mrf.mxu1 }
 0x258   : > { %v11454_v55 = vpop.f32.mrf.mxu0  ;;  %v11456_v6 = vpop.f32.mrf.mxu1 }
 0x25a   : > { %v11458_v11 = vpop.f32.mrf.mxu0  ;;  %v9603_v15 = vpop.f32.mrf.mxu1 }
 0x25c   : > { %v11460_v20 = vpop.f32.mrf.mxu0  ;;  %v11462_v54 = vpop.f32.mrf.mxu1 }
 0x25e   : > { %v11464_v61 = vpop.f32.mrf.mxu0  ;;  %v9608_v37 = vpop.f32.mrf.mxu1 }
 0x25f   : > { %v1404_v19 = vadd.f32 %v9608_v37, %v9594_v50 }
 0x260   : > { %v11466_v57 = vpop.f32.mrf.mxu0  ;;  %v11468_v7 = vpop.f32.mrf.mxu1 }
 0x262   : > { %v11470_v28 = vpop.f32.mrf.mxu0  ;;  %v9611_v16 = vpop.f32.mrf.mxu1 }
 0x263   : > { %v1414_v31 = vadd.f32 %v9611_v16, %v9597_v21 }
 0x264   : > { %v11472_v43 = vpop.f32.mrf.mxu0  ;;  %v11474_v36 = vpop.f32.mrf.mxu1 }
 0x266   : > { %v9614_v1 = vpop.f32.mrf.mxu1  ;;  %v11476_v5 = vpop.f32.mrf.mxu0 }
 0x267   : > { %v1424_v56 = vadd.f32 %v9614_v1, %v9600_v12 }
 0x268   : > { %v11478_v32 = vpop.f32.mrf.mxu1  ;;  %v11480_v35 = vpop.f32.mrf.mxu0 }
 0x26a   : > { %v9617_v9 = vpop.f32.mrf.mxu1  ;;  %v11484_v47 = vpop.f32.mrf.mxu0 }
 0x26b   : > { %v1434_v33 = vadd.f32 %v9617_v9, %v9603_v15  ;;  %13209 = vst [vmem:[#allocation2_spill] sm:$0xff] %v11484_v47 }
 0x26c   : > { %v11482_v17 = vpop.f32.mrf.mxu1  ;;  %v11488_v24 = vpop.f32.mrf.mxu0 }
 0x26e   : > { %v9622_v60 = vpop.f32.mrf.mxu1  ;;  %v11492_v13 = vpop.f32.mrf.mxu0 }
 0x26f   : > { %v1579_v62 = vadd.f32 %v9622_v60, %v1404_v19 }
 0x270   : > { %v11486_v38 = vpop.f32.mrf.mxu1  ;;  %v11496_v4 = vpop.f32.mrf.mxu0 }
 0x272   : > { %v9625_v58 = vpop.f32.mrf.mxu1  ;;  %v11500_v30 = vpop.f32.mrf.mxu0 }
 0x273   : > { %v1581_v52 = vadd.f32 %v9625_v58, %v1414_v31 }
 0x274   : > { %v11490_v26 = vpop.f32.mrf.mxu1  ;;  %v11504_v39 = vpop.f32.mrf.mxu0 }
 0x275   : > { %13210 = vst [vmem:[#allocation3_spill] sm:$0xff] %v11504_v39 }
 0x276   : > { %v9628_v59 = vpop.f32.mrf.mxu1  ;;  %v11508_v29 = vpop.f32.mrf.mxu0 }
 0x277   : > { %v1583_v18 = vadd.f32 %v9628_v59, %v1424_v56  ;;  %13211 = vst [vmem:[#allocation4_spill] sm:$0xff] %v11508_v29 }
 0x278   : > { %v11494_v0 = vpop.f32.mrf.mxu1  ;;  %v11512_v51 = vpop.f32.mrf.mxu0 }
 0x279   : > { %13212 = vst [vmem:[#allocation5_spill] sm:$0xff] %v11512_v51 }
 0x27a   : > { %v9631_v27 = vpop.f32.mrf.mxu1  ;;  %v11516_v15 = vpop.f32.mrf.mxu0 }
 0x27b   : > { %v1585_v25 = vadd.f32 %v9631_v27, %v1434_v33  ;;  %13213 = vst [vmem:[#allocation6_spill] sm:$0xff] %v11516_v15 }
 0x27c   : > { %v11498_v23 = vpop.f32.mrf.mxu1  ;;  %v11521_v1 = vpop.f32.mrf.mxu0 }
 0x27d   : > { %13214 = vst [vmem:[#allocation7_spill] sm:$0xff] %v11521_v1 }
 0x27e   : > { %v9636_v3 = vpop.f32.mrf.mxu1 }
 0x27f   : > { %v1727_v53 = vadd.f32 %v9636_v3, %v1579_v62  ;;  %v11526_v62 = vpop.f32.mrf.mxu0 }
 0x280   : > { %v11502_v49 = vpop.f32.mrf.mxu1  ;;  %13215 = vst [vmem:[#allocation8_spill] sm:$0xff] %v11526_v62 }
 0x281   : > { %v11533_v27 = vpop.f32.mrf.mxu0 }
 0x282   : > { %v9639_v22 = vpop.f32.mrf.mxu1  ;;  %13216 = vst [vmem:[#allocation9_spill] sm:$0xff] %v11533_v27  ;;  %v1399_v27 = vadd.f32 %v11468_v7, %v11444_v8 }
 0x283   : > { %v1729_v45 = vadd.f32 %v9639_v22, %v1581_v52 }
 0x284   : > { %v11506_v41 = vpop.f32.mrf.mxu1  ;;  %v1578_v39 = vadd.f32 %v11486_v38, %v1399_v27  ;;  %v1419_v38 = vadd.f32 %v11478_v32, %v11456_v6 }
 0x286   : > { %v9642_v2 = vpop.f32.mrf.mxu1 }
 0x287   : > { %v1731_v42 = vadd.f32 %v9642_v2, %v1583_v18 }
 0x288   : > { %v11510_v44 = vpop.f32.mrf.mxu1 }
 0x28a   : > { %v9645_v50 = vpop.f32.mrf.mxu1 }
 0x28b   : > { %v1733_v21 = vadd.f32 %v9645_v50, %v1585_v25 }
 0x28c   : > { %v11514_v12 = vpop.f32.mrf.mxu1 }
 0x28e   : > { %v9650_v37 = vpop.f32.mrf.mxu1 }
 0x28f   : > { %v1864_v19 = vadd.f32 %v9650_v37, %v1727_v53 }
 0x290   : > { %v1824_v16 = vpop.f32.mrf.mxu1 }
 0x291   : > { %v11519_v31 = vadd.f32 %v11438_v34, %v1864_v19 }
 0x292   : > { %v9653_v56 = vpop.f32.mrf.mxu1 }
 0x293   : > { %v1866_v9 = vadd.f32 %v9653_v56, %v1729_v45 }
 0x294   : > { %v1834_v33 = vpop.f32.mrf.mxu1 }
 0x295   : > { %v11524_v60 = vadd.f32 %v11442_v63, %v1866_v9  ;;  %v11540_v63 = vpop.f32.mrf.mxu0 }
 0x296   : > { %v9656_v58 = vpop.f32.mrf.mxu1  ;;  %13217 = vst [vmem:[#allocation10_spill] sm:$0xff] %v11540_v63 }
 0x297   : > { %v1868_v52 = vadd.f32 %v9656_v58, %v1731_v42  ;;  %v11542_v2 = vpop.f32.mrf.mxu0 }
 0x298   : > { %v11528_v59 = vpop.f32.mrf.mxu1  ;;  %13218 = vst [vmem:[#allocation11_spill] sm:$0xff] %v11542_v2 }
 0x299   : > { %v11531_v18 = vadd.f32 %v11448_v40, %v1868_v52  ;;  %v11544_v37 = vpop.f32.mrf.mxu0 }
 0x29a   : > { %v9659_v34 = vpop.f32.mrf.mxu1  ;;  %13219 = vst [vmem:[#allocation12_spill] sm:$0xff] %v11544_v37 }
 0x29b   : > { %v1870_v25 = vadd.f32 %v9659_v34, %v1733_v21  ;;  %v11550_v21 = vpop.f32.mrf.mxu0 }
 0x29c   : > { %v11535_v3 = vpop.f32.mrf.mxu1  ;;  %13220 = vst [vmem:[#allocation13_spill] sm:$0xff] %v11550_v21  ;;  %v3319_v21 = vld [vmem:[%s13178_s5 + $0x8] sm:$0xff] }
 0x29d   : > { %v11538_v53 = vadd.f32 %v11454_v55, %v1870_v25  ;;  %v11556_v9 = vpop.f32.mrf.mxu0  ;;  %9814 = vmatprep.subr.mxu1 %v3319_v21 }
 0x29e   : > { %v9678_v22 = vpop.f32.mrf.mxu1  ;;  %13221 = vst [vmem:[#allocation14_spill] sm:$0xff] %v11556_v9  ;;  %v3318_v9 = vld [vmem:[%s13178_s5] sm:$0xff]  ;;  %9815 = vmatpush3.msra.mxu1 %v3319_v21 }
 0x29f   : > { %v11558_v34 = vpop.f32.mrf.mxu0  ;;  %9828 = vmatprep.subr.mxu0 %v3318_v9 }
 0x2a0   : > { %v2106_v45 = vpop.f32.mrf.mxu1  ;;  %13222 = vst [vmem:[#allocation15_spill] sm:$0xff] %v11558_v34  ;;  %9829 = vmatpush3.msra.mxu0 %v3318_v9  ;;  %v11595_v9 = vld [vmem:[%s13178_s5 + $0x10] sm:$0xff] }
 0x2a1   : > { %v11564_v37 = vpop.f32.mrf.mxu0  ;;  %9842 = vmatprep.subr.mxu1 %v11595_v9 }
 0x2a2   : > { %v9681_v42 = vpop.f32.mrf.mxu1  ;;  %13223 = vst [vmem:[#allocation16_spill] sm:$0xff] %v11564_v37 }
 0x2a3   : > { %v11576_v51 = vpop.f32.mrf.mxu0 }
 0x2a4   : > { %v2116_v50 = vpop.f32.mrf.mxu1  ;;  %13224 = vst [vmem:[#allocation17_spill] sm:$0xff] %v11576_v51  ;;  %v1409_v51 = vadd.f32 %v11474_v36, %v11450_v14  ;;  %v1582_v36 = vadd.f32 %v11494_v0, %v1419_v38 }
 0x2a5   : > { %v11584_v29 = vpop.f32.mrf.mxu0 }
 0x2a6   : > { %v11546_v40 = vpop.f32.mrf.mxu1  ;;  %13226 = vst [vmem:[#allocation19_spill] sm:$0xff] %v11584_v29  ;;  %v1580_v8 = vadd.f32 %v11490_v26, %v1409_v51  ;;  %v2146_v29 = vadd.f32 %v9678_v22, %v11519_v31  ;;  %v1429_v51 = vadd.f32 %v11482_v17, %v11462_v54  ;;  %v1730_v6 = vadd.f32 %v11510_v44, %v1582_v36 }
 0x2a7   : > { %v11590_v1 = vpop.f32.mrf.mxu0  ;;  %v2148_v31 = vadd.f32 %v9681_v42, %v11524_v60 }
 0x2a8   : > { %v11548_v19 = vpop.f32.mrf.mxu1  ;;  %13227 = vst [vmem:[#allocation20_spill] sm:$0xff] %v11590_v1  ;;  %v1728_v14 = vadd.f32 %v11506_v41, %v1580_v8  ;;  %v1584_v41 = vadd.f32 %v11498_v23, %v1429_v51  ;;  %v1867_v0 = vadd.f32 %v11528_v59, %v1730_v6  ;;  %v11631_v23 = vld [vmem:[%s13178_s5 + $0x18] sm:$0xff] }
 0x2a9   : > { %9856 = vmatprep.subr.mxu0 %v11631_v23 }
 0x2aa   : > { %v11552_v56 = vpop.f32.mrf.mxu1  ;;  %v1865_v1 = vadd.f32 %v1834_v33, %v1728_v14  ;;  %v2299_v33 = vadd.f32 %v11460_v20, %v2146_v29  ;;  %v1732_v54 = vadd.f32 %v11514_v12, %v1584_v41  ;;  %v2150_v20 = vadd.f32 %v11546_v40, %v11531_v18 }
 0x2ab   : > { %v1996_v29 = vadd.f32 %v11452_v48, %v1867_v0  ;;  %v2152_v38 = vadd.f32 %v11552_v56, %v11538_v53 }
 0x2ac   : > { %v11554_v55 = vpop.f32.mrf.mxu1  ;;  %v1869_v60 = vadd.f32 %v11535_v3, %v1732_v54  ;;  %v2303_v48 = vadd.f32 %v11472_v43, %v2150_v20  ;;  %v13235_v20 = vld [vmem:[#allocation5_spill] sm:$0xff] }
 0x2ad   : > { %v2149_v42 = vadd.f32 %v11548_v19, %v1996_v29  ;;  %v2305_v43 = vadd.f32 %v11480_v35, %v2152_v38  ;;  %v13239_v38 = vld [vmem:[#allocation11_spill] sm:$0xff] }
 0x2ae   : > { %v9706_v58 = vpop.f32.mrf.mxu1  ;;  %v1998_v18 = vadd.f32 %v11458_v11, %v1869_v60 }
 0x2af   : > { %v2415_v59 = vadd.f32 %v9706_v58, %v2299_v33 }
 0x2b0   : > { %v2375_v52 = vpop.f32.mrf.mxu1 }
 0x2b1   : > { %v2530_v3 = vadd.f32 %v11488_v24, %v2415_v59  ;;  %v2302_v24 = vadd.f32 %v11476_v5, %v2149_v42  ;;  %v13231_v5 = vld [vmem:[#allocation3_spill] sm:$0xff]  ;;  %v13234_v59 = vld [vmem:[#allocation9_spill] sm:$0xff] }
 0x2b2   : > { %v11560_v25 = vpop.f32.mrf.mxu1  ;;  %v13237_v42 = vld [vmem:[#allocation15_spill] sm:$0xff] }
 0x2b4   : > { %v11562_v2 = vpop.f32.mrf.mxu1 }
 0x2b6   : > { %v11566_v15 = vpop.f32.mrf.mxu1 }
 0x2b8   : > { %v11568_v63 = vpop.f32.mrf.mxu1 }
 0x2b9   : > { %v2418_v11 = vadd.f32 %v11568_v63, %v2302_v24 }
 0x2ba   : > { %v11578_v34 = vpop.f32.mrf.mxu1 }
 0x2bb   : > { %13225 = vst [vmem:[#allocation18_spill] sm:$0xff] %v11578_v34  ;;  %v1726_v34 = vadd.f32 %v11502_v49, %v1578_v39  ;;  %v11605_v49 = vpop.f32.mrf.mxu0 }
 0x2bc   : > { %v11580_v37 = vpop.f32.mrf.mxu1 }
 0x2bd   : > { %v1863_v7 = vadd.f32 %v1824_v16, %v1726_v34  ;;  %v11618_v34 = vpop.f32.mrf.mxu0 }
 0x2be   : > { %v9734_v62 = vpop.f32.mrf.mxu1 }
 0x2bf   : > { %v1992_v26 = vadd.f32 %v11440_v46, %v1863_v7  ;;  %v1994_v46 = vadd.f32 %v11446_v10, %v1865_v1  ;;  %v11636_v10 = vpop.f32.mrf.mxu0 }
 0x2c0   : > { %v2608_v47 = vpop.f32.mrf.mxu1 }
 0x2c1   : > { %v2145_v16 = vadd.f32 %v2106_v45, %v1992_v26  ;;  %v2147_v44 = vadd.f32 %v2116_v50, %v1994_v46  ;;  %v2301_v45 = vadd.f32 %v11466_v57, %v2148_v31  ;;  %v9804_v7 = vpop.f32.mrf.mxu0  ;;  %v13232_v31 = vld [vmem:[#allocation8_spill] sm:$0xff] }
 0x2c2   : > { %v9737_v21 = vpop.f32.mrf.mxu1 }
 0x2c3   : > { %v2298_v22 = vadd.f32 %v11464_v61, %v2145_v16  ;;  %v2417_v61 = vadd.f32 %v11560_v25, %v2301_v45  ;;  %v2300_v58 = vadd.f32 %v11470_v28, %v2147_v44  ;;  %v2151_v25 = vadd.f32 %v11554_v55, %v1998_v18  ;;  %v3178_v56 = vpop.f32.mrf.mxu0  ;;  %v13229_v55 = vld [vmem:[#allocation18_spill] sm:$0xff] }
 0x2c4   : > { %v11601_v27 = vpop.f32.mrf.mxu1  ;;  %v2419_v28 = vadd.f32 %v11566_v15, %v2303_v48  ;;  %v2421_v6 = vadd.f32 %v13229_v55, %v2305_v43  ;;  %v13230_v15 = vld [vmem:[#allocation2_spill] sm:$0xff] }
 0x2c5   : > { %v2414_v1 = vadd.f32 %v2375_v52, %v2298_v22  ;;  %v2416_v57 = vadd.f32 %v11562_v2, %v2300_v58  ;;  %v2648_v52 = vadd.f32 %v9734_v62, %v2530_v3  ;;  %v2532_v53 = vadd.f32 %v11496_v4, %v2417_v61  ;;  %v9807_v46 = vpop.f32.mrf.mxu0 }
 0x2c6   : > { %v11607_v39 = vpop.f32.mrf.mxu1  ;;  %v2304_v16 = vadd.f32 %v13230_v15, %v2151_v25  ;;  %v2534_v41 = vadd.f32 %v13231_v5, %v2419_v28  ;;  %v2536_v29 = vadd.f32 %v13235_v20, %v2421_v6 }
 0x2c7   : > { %v2529_v19 = vadd.f32 %v11492_v13, %v2414_v1  ;;  %v2650_v2 = vadd.f32 %v9737_v21, %v2532_v53  ;;  %v2531_v62 = vadd.f32 %v11500_v30, %v2416_v57  ;;  %v13228_v13 = vld [vmem:[#allocation7_spill] sm:$0xff]  ;;  %v13233_v30 = vld [vmem:[#allocation4_spill] sm:$0xff]  ;;  %v3188_v58 = vpop.f32.mrf.mxu0 }
 0x2c8   : > { %v11614_v32 = vpop.f32.mrf.mxu1  ;;  %v2766_v51 = vadd.f32 %v13228_v13, %v2648_v52  ;;  %v2420_v35 = vadd.f32 %v11580_v37, %v2304_v16  ;;  %v2652_v21 = vadd.f32 %v11607_v39, %v2534_v41  ;;  %v2533_v33 = vadd.f32 %v13233_v30, %v2418_v11  ;;  %v13238_v39 = vld [vmem:[#allocation6_spill] sm:$0xff]  ;;  %v13240_v52 = vld [vmem:[#allocation16_spill] sm:$0xff]  ;;  %v13242_v11 = vld [vmem:[#allocation17_spill] sm:$0xff] }
 0x2c9   : > { %v2647_v36 = vadd.f32 %v2608_v47, %v2529_v19  ;;  %v2649_v4 = vadd.f32 %v11601_v27, %v2531_v62  ;;  %v2768_v22 = vadd.f32 %v13234_v59, %v2650_v2  ;;  %v13243_v62 = vld [vmem:[#allocation13_spill] sm:$0xff]  ;;  %v13245_v16 = vld [vmem:[#allocation14_spill] sm:$0xff]  ;;  %v13246_v41 = vld [vmem:[#allocation20_spill] sm:$0xff] }
 0x2ca   : > { %v11620_v8 = vpop.f32.mrf.mxu1  ;;  %v2651_v60 = vadd.f32 %v11614_v32, %v2533_v33  ;;  %v2535_v3 = vadd.f32 %v13238_v39, %v2420_v35  ;;  %v2770_v18 = vadd.f32 %v13239_v38, %v2652_v21 }
 0x2cb   : > { %v2765_v63 = vadd.f32 %v13232_v31, %v2647_v36  ;;  %v2654_v37 = vadd.f32 %v11620_v8, %v2536_v29  ;;  %v9810_v8 = vpop.f32.mrf.mxu0 }
 0x2cc   : > { %v11626_v17 = vpop.f32.mrf.mxu1 }
 0x2cd   : > { %v2653_v19 = vadd.f32 %v11626_v17, %v2535_v3  ;;  %v2772_v13 = vadd.f32 %v13243_v62, %v2654_v37  ;;  %v13244_v17 = vld [vmem:[#allocation19_spill] sm:$0xff]  ;;  %v3198_v35 = vpop.f32.mrf.mxu0 }
 0x2ce   : > { %v9762_v12 = vpop.f32.mrf.mxu1 }
 0x2cf   : > { %v2879_v0 = vadd.f32 %v9762_v12, %v2766_v51  ;;  %v13236_v12 = vld [vmem:[#allocation10_spill] sm:$0xff]  ;;  %v2771_v5 = vadd.f32 %v13245_v16, %v2653_v19 }
 0x2d0   : > { %v2839_v50 = vpop.f32.mrf.mxu1  ;;  %v2767_v45 = vadd.f32 %v13236_v12, %v2649_v4 }
 0x2d1   : > { %v2878_v44 = vadd.f32 %v2839_v50, %v2765_v63  ;;  %v2992_v61 = vadd.f32 %v13237_v42, %v2879_v0 }
 0x2d2   : > { %v9765_v40 = vpop.f32.mrf.mxu1 }
 0x2d3   : > { %v2881_v27 = vadd.f32 %v9765_v40, %v2768_v22  ;;  %v2991_v32 = vadd.f32 %v13240_v52, %v2878_v44  ;;  %v13241_v40 = vld [vmem:[#allocation12_spill] sm:$0xff] }
 0x2d4   : > { %v2849_v14 = vpop.f32.mrf.mxu1  ;;  %v2769_v28 = vadd.f32 %v13241_v40, %v2651_v60 }
 0x2d5   : > { %v2880_v48 = vadd.f32 %v2849_v14, %v2767_v45  ;;  %v2994_v43 = vadd.f32 %v13242_v11, %v2881_v27  ;;  %v8740_v14 = vld [vmem:[%s13177_s4] ss:$0 sm:$0xff] }
 0x2d6   : > { %v9768_v26 = vpop.f32.mrf.mxu1 }
 0x2d7   : > { %v2883_v25 = vadd.f32 %v9768_v26, %v2770_v18  ;;  %v2993_v26 = vadd.f32 %v13244_v17, %v2880_v48 }
 0x2d8   : > { %v2859_v47 = vpop.f32.mrf.mxu1 }
 0x2d9   : > { %v2882_v2 = vadd.f32 %v2859_v47, %v2769_v28  ;;  %v2996_v4 = vadd.f32 %v13246_v41, %v2883_v25 }
 0x2da   : > { %v9771_v54 = vpop.f32.mrf.mxu1 }
 0x2db   : > { %v2885_v15 = vadd.f32 %v9771_v54, %v2772_v13  ;;  %v2995_v30 = vadd.f32 %v11605_v49, %v2882_v2 }
 0x2dc   : > { %v2869_v1 = vpop.f32.mrf.mxu1 }
 0x2dd   : > { %v2884_v33 = vadd.f32 %v2869_v1, %v2771_v5  ;;  %v2998_v60 = vadd.f32 %v11618_v34, %v2885_v15 }
 0x2de   : > { %v9790_v50 = vpop.f32.mrf.mxu1 }
 0x2df   : > { %v3105_v57 = vadd.f32 %v9790_v50, %v2992_v61  ;;  %v2997_v37 = vadd.f32 %v11636_v10, %v2884_v33 }
 0x2e0   : > { %v3065_v24 = vpop.f32.mrf.mxu1 }
 0x2e1   : > { %v3218_v36 = vadd.f32 %v9804_v7, %v3105_v57  ;;  %v3104_v53 = vadd.f32 %v3065_v24, %v2991_v32 }
 0x2e2   : > { %v9793_v51 = vpop.f32.mrf.mxu1 }
 0x2e3   : > { %v3217_v55 = vadd.f32 %v3178_v56, %v3104_v53  ;;  %v3107_v6 = vadd.f32 %v9793_v51, %v2994_v43  ;;  %v3232_v0 = vadd.f32 %v8740_v14, %v3218_v36 }
 0x2e4   : > { %v3075_v7 = vpop.f32.mrf.mxu1 }
 0x2e5   : > { %v3231_v31 = vadd.f32 %v8740_v14, %v3217_v55  ;;  %v3220_v47 = vadd.f32 %v9807_v46, %v3107_v6  ;;  %v3106_v63 = vadd.f32 %v3075_v7, %v2993_v26  ;;  %v3240_v20 = vsel %vm823_vm2, %v3232_v0, 0.0  ;;  %v9813_v46 = vpop.f32.mrf.mxu0 }
 0x2e6   : > { %v9796_v21 = vpop.f32.mrf.mxu1 }
 0x2e7   : > { %v3239_v56 = vsel %vm823_vm2, %v3231_v31, 0.0  ;;  %v3219_v44 = vadd.f32 %v3188_v58, %v3106_v63  ;;  %v3109_v59 = vadd.f32 %v9796_v21, %v2996_v4  ;;  %v3234_v22 = vadd.f32 %v8740_v14, %v3220_v47  ;;  %v3208_v48 = vpop.f32.mrf.mxu0 }
 0x2e8   : > { %v3085_v54 = vpop.f32.mrf.mxu1  ;;  %v3241_v45 = vadd.f32 %v3240_v20, %v3239_v56 }
 0x2e9   : > { %v3233_v29 = vadd.f32 %v8740_v14, %v3219_v44  ;;  %v3222_v27 = vadd.f32 %v9810_v8, %v3109_v59  ;;  %v3108_v12 = vadd.f32 %v3085_v54, %v2995_v30  ;;  %v3244_v58 = vsel %vm823_vm2, %v3234_v22, 0.0 }
 0x2ea   : > { %v9799_v42 = vpop.f32.mrf.mxu1 }
 0x2eb   : > { %v3242_v61 = vsel %vm823_vm2, %v3233_v29, 0.0  ;;  %v3221_v49 = vadd.f32 %v3198_v35, %v3108_v12  ;;  %v3111_v1 = vadd.f32 %v9799_v42, %v2998_v60  ;;  %v3236_v38 = vadd.f32 %v8740_v14, %v3222_v27 }
 0x2ec   : > { %v3243_v39 = vadd.f32 %v3242_v61, %v3241_v45  ;;  %v3095_v3 = vpop.f32.mrf.mxu1 }
 0x2ed   : > { %v3235_v34 = vadd.f32 %v8740_v14, %v3221_v49  ;;  %v3224_v18 = vadd.f32 %v9813_v46, %v3111_v1  ;;  %v3110_v50 = vadd.f32 %v3095_v3, %v2997_v37  ;;  %v3248_v25 = vsel %vm823_vm2, %v3236_v38, 0.0 }
 0x2ee   : > { %v3245_v57 = vadd.f32 %v3244_v58, %v3243_v39 }
 0x2ef   : > { %v3246_v52 = vsel %vm823_vm2, %v3235_v34, 0.0  ;;  %v3223_v32 = vadd.f32 %v3208_v48, %v3110_v50  ;;  %v3238_v40 = vadd.f32 %v8740_v14, %v3224_v18 }
 0x2f0   : > { %v3247_v19 = vadd.f32 %v3246_v52, %v3245_v57 }
 0x2f1   : > { %v3237_v28 = vadd.f32 %v8740_v14, %v3223_v32  ;;  %v3252_v53 = vsel %vm823_vm2, %v3238_v40, 0.0 }
 0x2f2   : > { %v3249_v24 = vadd.f32 %v3248_v25, %v3247_v19 }
 0x2f3   : > { %v3250_v10 = vsel %vm823_vm2, %v3237_v28, 0.0 }
 0x2f4   : > { %v3251_v36 = vadd.f32 %v3250_v10, %v3249_v24 }
 0x2f6   : > { %v3253_v11 = vadd.f32 %v3252_v53, %v3251_v36 }
 0x2f8   : > { %v3254_v43 = vrot.slane %v3253_v11, 4 }
 0x2fa   : > { %v3255_v8 = vadd.f32 %v3254_v43, %v3253_v11 }
 0x2fc   : > { %v3256_v2 = vrot.slane %v3255_v8, 2 }
 0x2fe   : > { %v3257_v62 = vadd.f32 %v3256_v2, %v3255_v8 }
 0x300   : > { %v3258_v13 = vrot.slane %v3257_v62, 1 }
 0x302   : > { %v3259_v51 = vadd.f32 %v3258_v13, %v3257_v62 }
 0x304   : > { %v3261_v55 = vmul.f32 0.015625, %v3259_v51 }
 0x306   : > { %v3262_v6 = vsub.f32 %v3231_v31, %v3261_v55  ;;  %v3263_v17 = vsub.f32 %v3232_v0, %v3261_v55  ;;  %v3264_v26 = vsub.f32 %v3233_v29, %v3261_v55  ;;  %v3265_v15 = vsub.f32 %v3234_v22, %v3261_v55 }
 0x307   : > { %v3267_v16 = vsub.f32 %v3236_v38, %v3261_v55  ;;  %v3269_v14 = vsub.f32 %v3238_v40, %v3261_v55  ;;  %v3266_v5 = vsub.f32 %v3235_v34, %v3261_v55  ;;  %v3268_v30 = vsub.f32 %v3237_v28, %v3261_v55 }
 0x308   : > { %v3270_v7 = vmul.f32 %v3262_v6, %v3262_v6  ;;  %v3271_v41 = vmul.f32 %v3263_v17, %v3263_v17  ;;  %v3272_v4 = vmul.f32 %v3264_v26, %v3264_v26  ;;  %v3273_v47 = vmul.f32 %v3265_v15, %v3265_v15 }
 0x309   : > { %v3274_v33 = vmul.f32 %v3266_v5, %v3266_v5  ;;  %v3275_v0 = vmul.f32 %v3267_v16, %v3267_v16  ;;  %v3276_v22 = vmul.f32 %v3268_v30, %v3268_v30  ;;  %v3277_v20 = vmul.f32 %v3269_v14, %v3269_v14 }
 0x30a   : > { %v3278_v63 = vsel %vm823_vm2, %v3270_v7, 0.0  ;;  %v3279_v35 = vsel %vm823_vm2, %v3271_v41, 0.0  ;;  %v3281_v56 = vsel %vm823_vm2, %v3272_v4, 0.0  ;;  %v3283_v44 = vsel %vm823_vm2, %v3273_v47, 0.0  ;;  %v11748_v41 = vld [vmem:[%s13178_s5 + $0x28] sm:$0xff] }
 0x30b   : > { %v3280_v21 = vadd.f32 %v3279_v35, %v3278_v63  ;;  %v3285_v54 = vsel %vm823_vm2, %v3274_v33, 0.0  ;;  %v3287_v29 = vsel %vm823_vm2, %v3275_v0, 0.0  ;;  %v3289_v12 = vsel %vm823_vm2, %v3276_v22, 0.0 }
 0x30c   : > { %v3291_v45 = vsel %vm823_vm2, %v3277_v20, 0.0  ;;  %v3322_v20 = vld [vmem:[%s13178_s5 + $0x20] sm:$0xff] }
 0x30d   : > { %v3282_v31 = vadd.f32 %v3281_v56, %v3280_v21 }
 0x30f   : > { %v3284_v59 = vadd.f32 %v3283_v44, %v3282_v31 }
 0x311   : > { %v3286_v60 = vadd.f32 %v3285_v54, %v3284_v59 }
 0x313   : > { %v3288_v27 = vadd.f32 %v3287_v29, %v3286_v60 }
 0x315   : > { %v3290_v46 = vadd.f32 %v3289_v12, %v3288_v27 }
 0x317   : > { %v3292_v42 = vadd.f32 %v3291_v45, %v3290_v46 }
 0x319   : > { %v3293_v61 = vrot.slane %v3292_v42, 4 }
 0x31b   : > { %v3294_v49 = vadd.f32 %v3293_v61, %v3292_v42 }
 0x31d   : > { %v3295_v1 = vrot.slane %v3294_v49, 2 }
 0x31f   : > { %v3296_v37 = vadd.f32 %v3295_v1, %v3294_v49 }
 0x321   : > { %v3297_v58 = vrot.slane %v3296_v37, 1 }
 0x323   : > { %v3298_v39 = vadd.f32 %v3297_v58, %v3296_v37 }
 0x325   : > { %v3299_v3 = vmul.f32 0.015625, %v3298_v39 }
 0x327   : > { %v3300_v38 = vadd.f32 1e-05, %v3299_v3 }
 0x329   : > { %10329 = vrsqrt.f32 %v3300_v38 }
 0x336   : > { %v10330_v34 = vpop.eup %10329 }
 0x337   : > { %v3308_v18 = vmul.f32 %v10330_v34, %v3268_v30  ;;  %v3303_v50 = vmul.f32 %v10330_v34, %v3263_v17  ;;  %v3302_v48 = vmul.f32 %v10330_v34, %v3262_v6  ;;  %v3304_v57 = vmul.f32 %v10330_v34, %v3264_v26 }
 0x338   : > { %v3305_v52 = vmul.f32 %v10330_v34, %v3265_v15  ;;  %v3306_v32 = vmul.f32 %v10330_v34, %v3266_v5  ;;  %v3307_v19 = vmul.f32 %v10330_v34, %v3267_v16  ;;  %v11706_v25 = vmul.f32 %v10330_v34, %v3269_v14 }
 0x339   : > { %v11708_v40 = vmax.f32 %v3303_v50, 0.0  ;;  %v11710_v28 = vmax.f32 %v3302_v48, 0.0  ;;  %v11712_v24 = vmax.f32 %v3304_v57, 0.0  ;;  %v11714_v10 = vmax.f32 %v3308_v18, 0.0 }
 0x33a   : > { %v11716_v36 = vmax.f32 %v3305_v52, 0.0  ;;  %v11718_v53 = vmax.f32 %v3306_v32, 0.0  ;;  %v11743_v7 = vmax.f32 %v3307_v19, 0.0 }
 0x33b   : > { %13247 = vst [vmem:[#allocation7_spill] sm:$0xff] %v11708_v40  ;;  %13248 = vst [vmem:[#allocation18_spill] sm:$0xff] %v11710_v28  ;;  %v3346_v11 = vrot.slane %v11708_v40, 1  ;;  %v3362_v43 = vrot.slane %v11708_v40, 7  ;;  %v3347_v8 = vrot.slane %v11710_v28, 1  ;;  %v3363_v2 = vrot.slane %v11710_v28, 7 }
 0x33c   : > { %13249 = vst [vmem:[#allocation2_spill] sm:$0xff] %v11712_v24  ;;  %13250 = vst [vmem:[#allocation3_spill] sm:$0xff] %v11714_v10  ;;  %v3378_v62 = vrot.slane %v11708_v40, 5  ;;  %v3379_v13 = vrot.slane %v11710_v28, 5  ;;  %v3348_v51 = vrot.slane %v11712_v24, 1  ;;  %v3364_v55 = vrot.slane %v11712_v24, 7 }
 0x33d   : > { %13251 = vst [vmem:[#allocation8_spill] sm:$0xff] %v11716_v36  ;;  %13252 = vst [vmem:[#allocation4_spill] sm:$0xff] %v11718_v53  ;;  %v11729_v6 = vsel %vm1119_vm4, %v3346_v11, %v3362_v43  ;;  %v11732_v17 = vsel %vm1119_vm4, %v3347_v8, %v3363_v2  ;;  %v3349_v26 = vrot.slane %v11716_v36, 1  ;;  %v3365_v15 = vrot.slane %v11716_v36, 7 }
 0x33e   : > { %9830 = vmatprep.mubr.msk.f32.mxu0 %vm823_vm2, %v11729_v6  ;;  %v3427_v16 = vrot.slane %v11732_v17, 1  ;;  %v11740_v14 = vsel %vm1119_vm4, %v3362_v43, %v3378_v62  ;;  %v3424_v5 = vrot.slane %v11729_v6, 1  ;;  %13253 = vst [vmem:[#allocation9_spill] sm:$0xff] %v11743_v7  ;;  %v11754_v47 = vsel %vm1119_vm4, %v3363_v2, %v3379_v13 }
 0x33f   : > { %9831 = vmatmul.mubr.msk.f32.vlgmr.msra.gmra.mxu0 %vm823_vm2, %v11732_v17  ;;  %v3425_v4 = vrot.slane %v11740_v14, 1  ;;  %v11757_v63 = vsel %vm1119_vm4, %v3348_v51, %v3364_v55  ;;  %v11760_v35 = vsel %vm1119_vm4, %v3349_v26, %v3365_v15  ;;  %v3428_v21 = vrot.slane %v11754_v47, 1 }
 0x340   : > { %9833 = vmatprep.mubr.msk.f32.mxu0 %vm823_vm2, %v11729_v6  ;;  %v3380_v30 = vrot.slane %v11712_v24, 5  ;;  %v3430_v33 = vrot.slane %v11757_v63, 1  ;;  %v3381_v56 = vrot.slane %v11716_v36, 5  ;;  %9857 = vmatpush3.msra.mxu0 %v11631_v23  ;;  %v3433_v0 = vrot.slane %v11760_v35, 1 }
 0x341   : > { %v11770_v31 = vsel %vm1437_vm3, %v3424_v5, %v3425_v4  ;;  %v3350_v44 = vrot.slane %v11718_v53, 1  ;;  %v3366_v59 = vrot.slane %v11718_v53, 7  ;;  %9884 = vmatprep.subr.mxu0 %v11748_v41  ;;  %v11779_v22 = vsel %vm1437_vm3, %v3427_v16, %v3428_v21 }
 0x342   : > { %9816 = vmatprep.mubr.msk.f32.mxu1 %vm823_vm2, %v11770_v31  ;;  %v11782_v54 = vsel %vm1119_vm4, %v3364_v55, %v3380_v30  ;;  %v11785_v23 = vsel %vm1119_vm4, %v3365_v15, %v3381_v56  ;;  %v3351_v60 = vrot.slane %v11743_v7, 1  ;;  %v3367_v46 = vrot.slane %v11743_v7, 7  ;;  %v3325_v55 = vld [vmem:[%s13178_s5 + $0x38] sm:$0xff] }
 0x343   : > { %9817 = vmatmul.mubr.msk.f32.vlgmr.msra.gmra.mxu1 %vm823_vm2, %v11779_v22  ;;  %9834 = vmatmul.mubr.msk.f32.gmra.mxu0 %vm823_vm2, %v11757_v63  ;;  %v3431_v29 = vrot.slane %v11782_v54, 1  ;;  %v3434_v27 = vrot.slane %v11785_v23, 1  ;;  %v11798_v12 = vsel %vm1119_vm4, %v3350_v44, %v3366_v59  ;;  %v3382_v45 = vrot.slane %v11718_v53, 5 }
 0x344   : > { %9843 = vmatpush3.msra.mxu1 %v11595_v9  ;;  %9819 = vmatprep.mubr.msk.f32.mxu1 %vm823_vm2, %v11770_v31  ;;  %v3383_v42 = vrot.slane %v11743_v7, 5  ;;  %v3352_v61 = vrot.slane %v11714_v10, 1  ;;  %v11813_v1 = vsel %vm1119_vm4, %v3351_v60, %v3367_v46  ;;  %v3436_v9 = vrot.slane %v11798_v12, 1 }
 0x345   : > { %9836 = vmatprep.mubr.msk.f32.mxu0 %vm823_vm2, %v11760_v35  ;;  %v11810_v49 = vsel %vm1437_vm3, %v3430_v33, %v3431_v29  ;;  %v3368_v37 = vrot.slane %v11714_v10, 7  ;;  %9870 = vmatprep.subr.mxu1 %v3322_v20  ;;  %v11818_v58 = vsel %vm1437_vm3, %v3433_v0, %v3434_v27  ;;  %v3406_v39 = vsel %vm1119_vm4, %v3366_v59, %v3382_v45  ;;  %v3326_v27 = vld [vmem:[%s13178_s5 + $0x40] sm:$0xff] }
 0x346   : > { %v11822_v3 = vsel %vm1119_vm4, %v3367_v46, %v3383_v42  ;;  %v3384_v38 = vrot.slane %v11714_v10, 5  ;;  %v3437_v34 = vrot.slane %v3406_v39, 1  ;;  %v3439_v18 = vrot.slane %v11813_v1, 1 }
 0x347   : > { %9820 = vmatmul.mubr.msk.f32.gmra.mxu1 %vm823_vm2, %v11810_v49  ;;  %9837 = vmatmul.mubr.msk.f32.gmra.mxu0 %vm823_vm2, %v11798_v12  ;;  %v3440_v50 = vrot.slane %v11822_v3, 1  ;;  %v11832_v48 = vsel %vm1119_vm4, %v3352_v61, %v3368_v37  ;;  %v3684_v43 = vrot.slane %v11729_v6, 2  ;;  %v3685_v8 = vrot.slane %v11740_v14, 2  ;;  %v3324_v14 = vld [vmem:[%s13178_s5 + $0x30] sm:$0xff] }
 0x348   : > { %9822 = vmatprep.mubr.msk.f32.mxu1 %vm823_vm2, %v11818_v58  ;;  %9839 = vmatprep.mubr.msk.f32.mxu0 %vm823_vm2, %v11813_v1  ;;  %v3408_v57 = vsel %vm1119_vm4, %v3368_v37, %v3384_v38  ;;  %v11840_v52 = vsel %vm1437_vm3, %v3436_v9, %v3437_v34  ;;  %v3442_v32 = vrot.slane %v11832_v48, 1  ;;  %v3687_v2 = vrot.slane %v11732_v17, 2 }
 0x349   : > { %v3443_v19 = vrot.slane %v3408_v57, 1  ;;  %v11846_v11 = vsel %vm1437_vm3, %v3439_v18, %v3440_v50  ;;  %v3688_v13 = vrot.slane %v11754_v47, 2  ;;  %v11864_v51 = vsel %vm3683_vm5, %v3684_v43, %v3685_v8 }
 0x34a   : > { %v3690_v26 = vrot.slane %v11757_v63, 2  ;;  %v3691_v15 = vrot.slane %v11782_v54, 2  ;;  %v11880_v16 = vmax.f32 %v11706_v25, 0.0  ;;  %v3693_v5 = vrot.slane %v11760_v35, 2 }
 0x34b   : > { %9823 = vmatmul.mubr.msk.f32.gmra.mxu1 %vm823_vm2, %v11840_v52  ;;  %9840 = vmatmul.mubr.msk.f32.gmra.mxu0 %vm823_vm2, %v11832_v48  ;;  %v11858_v62 = vsel %vm1437_vm3, %v3442_v32, %v3443_v19  ;;  %v3696_v25 = vrot.slane %v11798_v12, 2  ;;  %v3697_v47 = vrot.slane %v3406_v39, 2  ;;  %v3699_v56 = vrot.slane %v11813_v1, 2 }
 0x34c   : > { %9825 = vmatprep.mubr.msk.f32.mxu1 %vm823_vm2, %v11846_v11  ;;  %9858 = vmatprep.mubr.msk.f32.mxu0 %vm823_vm2, %v11732_v17  ;;  %v3689_v17 = vsel %vm3683_vm5, %v3687_v2, %v3688_v13  ;;  %13254 = vst [vmem:[#allocation5_spill] sm:$0xff] %v11880_v16  ;;  %v11896_v4 = vsel %vm3683_vm5, %v3690_v26, %v3691_v15  ;;  %v3353_v21 = vrot.slane %v11880_v16, 1  ;;  %v3369_v30 = vrot.slane %v11880_v16, 7 }
 0x34d   : > { %v3700_v0 = vrot.slane %v11822_v3, 2  ;;  %v3698_v44 = vsel %vm3683_vm5, %v3696_v25, %v3697_v47  ;;  %v3702_v54 = vrot.slane %v11832_v48, 2  ;;  %v3385_v29 = vrot.slane %v11880_v16, 5 }
 0x34e   : > { %v3401_v59 = vsel %vm1119_vm4, %v3353_v21, %v3369_v30 }
 0x34f   : > { %9826 = vmatmul.mubr.msk.f32.gmra.mxu1 %vm823_vm2, %v11858_v62  ;;  %9859 = vmatmul.mubr.msk.f32.vlgmr.msra.gmra.mxu0 %vm823_vm2, %v11729_v6  ;;  %v3701_v60 = vsel %vm3683_vm5, %v3699_v56, %v3700_v0  ;;  %v3409_v46 = vsel %vm1119_vm4, %v3369_v30, %v3385_v29  ;;  %v3949_v42 = vrot.slane %v3401_v59, 1  ;;  %v12031_v0 = vld [vmem:[%s13180_s7 + $0x10] sm:$0xff] }
 0x350   : > { %9844 = vmatprep.mubr.msk.f32.mxu1 %vm823_vm2, %v11864_v51  ;;  %9861 = vmatprep.mubr.msk.f32.mxu0 %vm823_vm2, %v11757_v63  ;;  %v4068_v45 = vrot.slane %v3409_v46, 2  ;;  %v3950_v9 = vrot.slane %v3409_v46, 1  ;;  %13255 = vst [vmem:[#allocation10_spill] sm:$0xff] %v12031_v0 }
 0x351   : > { %9885 = vmatpush3.msra.mxu0 %v11748_v41  ;;  %v3694_v41 = vrot.slane %v11785_v23, 2  ;;  %v3703_v23 = vrot.slane %v3408_v57, 2 }
 0x352   : > { %9912 = vmatprep.subr.mxu0 %v3325_v55  ;;  %v3951_v37 = vsel %vm1437_vm3, %v3949_v42, %v3950_v9 }
 0x353   : > { %9845 = vmatmul.mubr.msk.f32.vlgmr.msra.gmra.mxu1 %vm823_vm2, %v3689_v17  ;;  %9862 = vmatmul.mubr.msk.f32.gmra.mxu0 %vm823_vm2, %v11760_v35  ;;  %v11903_v33 = vsel %vm3683_vm5, %v3693_v5, %v3694_v41  ;;  %v3328_v5 = vld [vmem:[%s13180_s7] sm:$0xff] }
 0x354   : > { %9871 = vmatpush3.msra.mxu1 %v3322_v20  ;;  %9847 = vmatprep.mubr.msk.f32.mxu1 %vm823_vm2, %v11864_v51  ;;  %v3704_v20 = vsel %vm3683_vm5, %v3702_v54, %v3703_v23 }
 0x355   : > { %9864 = vmatprep.mubr.msk.f32.mxu0 %vm823_vm2, %v11798_v12  ;;  %9898 = vmatprep.subr.mxu1 %v3324_v14 }
 0x357   : > { %9848 = vmatmul.mubr.msk.f32.gmra.mxu1 %vm823_vm2, %v11896_v4  ;;  %9865 = vmatmul.mubr.msk.f32.gmra.mxu0 %vm823_vm2, %v11813_v1 }
 0x358   : > { %9850 = vmatprep.mubr.msk.f32.mxu1 %vm823_vm2, %v11903_v33  ;;  %9867 = vmatprep.mubr.msk.f32.mxu0 %vm823_vm2, %v11832_v48 }
 0x35b   : > { %9851 = vmatmul.mubr.msk.f32.gmra.mxu1 %vm823_vm2, %v3698_v44  ;;  %9868 = vmatmul.mubr.msk.f32.gmra.mxu0 %vm823_vm2, %v3401_v59 }
 0x35c   : > { %9853 = vmatprep.mubr.msk.f32.mxu1 %vm823_vm2, %v3701_v60  ;;  %9886 = vmatprep.mubr.msk.f32.mxu0 %vm823_vm2, %v3689_v17 }
 0x35f   : > { %9854 = vmatmul.mubr.msk.f32.gmra.mxu1 %vm823_vm2, %v3704_v20  ;;  %9887 = vmatmul.mubr.msk.f32.vlgmr.msra.gmra.mxu0 %vm823_vm2, %v11864_v51 }
 0x360   : > { %9872 = vmatprep.mubr.msk.f32.mxu1 %vm823_vm2, %v11779_v22  ;;  %9889 = vmatprep.mubr.msk.f32.mxu0 %vm823_vm2, %v11896_v4  ;;  %v4067_v22 = vrot.slane %v3401_v59, 2 }
 0x361   : > { %9913 = vmatpush3.msra.mxu0 %v3325_v55 }
 0x362   : > { %v4069_v61 = vsel %vm3683_vm5, %v4067_v22, %v4068_v45  ;;  %v12045_v45 = vld [vmem:[%s13180_s7 + $0x18] sm:$0xff] }
 0x363   : > { %9873 = vmatmul.mubr.msk.f32.vlgmr.msra.gmra.mxu1 %vm823_vm2, %v11770_v31  ;;  %9890 = vmatmul.mubr.msk.f32.gmra.mxu0 %vm823_vm2, %v11903_v33  ;;  %13256 = vst [vmem:[#allocation15_spill] sm:$0xff] %v12045_v45 }
 0x364   : > { %9899 = vmatpush3.msra.mxu1 %v3324_v14  ;;  %9875 = vmatprep.mubr.msk.f32.mxu1 %vm823_vm2, %v11810_v49  ;;  %v3329_v14 = vld [vmem:[%s13180_s7 + $0x8] sm:$0xff] }
 0x365   : > { %9892 = vmatprep.mubr.msk.f32.mxu0 %vm823_vm2, %v3698_v44  ;;  %9926 = vmatprep.subr.mxu1 %v3326_v27 }
 0x366   : > { %9940 = vmatprep.subr.mxu0 %v3329_v14 }
 0x367   : > { %9876 = vmatmul.mubr.msk.f32.gmra.mxu1 %vm823_vm2, %v11818_v58  ;;  %9893 = vmatmul.mubr.msk.f32.gmra.mxu0 %vm823_vm2, %v3701_v60 }
 0x368   : > { %9878 = vmatprep.mubr.msk.f32.mxu1 %vm823_vm2, %v11840_v52  ;;  %9895 = vmatprep.mubr.msk.f32.mxu0 %vm823_vm2, %v3704_v20 }
 0x36b   : > { %9879 = vmatmul.mubr.msk.f32.gmra.mxu1 %vm823_vm2, %v11846_v11  ;;  %9896 = vmatmul.mubr.msk.f32.gmra.mxu0 %vm823_vm2, %v4069_v61 }
 0x36c   : > { %9881 = vmatprep.mubr.msk.f32.mxu1 %vm823_vm2, %v11858_v62  ;;  %9914 = vmatprep.mubr.msk.f32.mxu0 %vm823_vm2, %v11770_v31 }
 0x36f   : > { %9882 = vmatmul.mubr.msk.f32.gmra.mxu1 %vm823_vm2, %v3951_v37  ;;  %9915 = vmatmul.mubr.msk.f32.vlgmr.msra.gmra.mxu0 %vm823_vm2, %v11810_v49 }
 0x370   : > { %9900 = vmatprep.mubr.msk.f32.mxu1 %vm823_vm2, %v11729_v6  ;;  %9917 = vmatprep.mubr.msk.f32.mxu0 %vm823_vm2, %v11818_v58 }
 0x371   : > { %9941 = vmatpush3.msra.mxu0 %v3329_v14 }
 0x372   : > { %9968 = vmatprep.subr.mxu0 %v12031_v0 }
 0x373   : > { %9901 = vmatmul.mubr.msk.f32.vlgmr.msra.gmra.mxu1 %vm823_vm2, %v11757_v63  ;;  %9918 = vmatmul.mubr.msk.f32.gmra.mxu0 %vm823_vm2, %v11840_v52 }
 0x374   : > { %9927 = vmatpush3.msra.mxu1 %v3326_v27  ;;  %9903 = vmatprep.mubr.msk.f32.mxu1 %vm823_vm2, %v11760_v35 }
 0x375   : > { %9920 = vmatprep.mubr.msk.f32.mxu0 %vm823_vm2, %v11846_v11  ;;  %9954 = vmatprep.subr.mxu1 %v3328_v5 }
 0x377   : > { %9904 = vmatmul.mubr.msk.f32.gmra.mxu1 %vm823_vm2, %v11798_v12  ;;  %9921 = vmatmul.mubr.msk.f32.gmra.mxu0 %vm823_vm2, %v11858_v62 }
 0x378   : > { %9906 = vmatprep.mubr.msk.f32.mxu1 %vm823_vm2, %v11813_v1  ;;  %9923 = vmatprep.mubr.msk.f32.mxu0 %vm823_vm2, %v3951_v37 }
 0x37b   : > { %9907 = vmatmul.mubr.msk.f32.gmra.mxu1 %vm823_vm2, %v11832_v48  ;;  %9924 = vmatmul.mubr.msk.f32.gmra.mxu0 %vm823_vm2, %v11858_v62 }
 0x37c   : > { %9909 = vmatprep.mubr.msk.f32.mxu1 %vm823_vm2, %v3401_v59 }
 0x37f   : > { %9910 = vmatmul.mubr.msk.f32.gmra.mxu1 %vm823_vm2, %v11832_v48 }
 0x380   : > { %9928 = vmatprep.mubr.msk.f32.mxu1 %vm823_vm2, %v11864_v51 }
 0x383   : > { %9929 = vmatmul.mubr.msk.f32.vlgmr.msra.gmra.mxu1 %vm823_vm2, %v11896_v4 }
 0x384   : > { %9931 = vmatprep.mubr.msk.f32.mxu1 %vm823_vm2, %v11903_v33  ;;  %9955 = vmatpush3.msra.mxu1 %v3328_v5 }
 0x385   : > { %9982 = vmatprep.subr.mxu1 %v12045_v45 }
 0x387   : > { %9932 = vmatmul.mubr.msk.f32.gmra.mxu1 %vm823_vm2, %v3698_v44 }
 0x388   : > { %9934 = vmatprep.mubr.msk.f32.mxu1 %vm823_vm2, %v3701_v60 }
 0x38b   : > { %9935 = vmatmul.mubr.msk.f32.gmra.mxu1 %vm823_vm2, %v3704_v20 }
 0x38c   : > { %9937 = vmatprep.mubr.msk.f32.mxu1 %vm823_vm2, %v4069_v61 }
 0x38f   : > { %9938 = vmatmul.mubr.msk.f32.gmra.mxu1 %vm823_vm2, %v3704_v20 }
 0x3ff   : > { %v9832_v6 = vpop.f32.mrf.mxu0 }
 0x401   : > { %v3644_v63 = vpop.f32.mrf.mxu0 }
 0x403   : > { %v9818_v35 = vpop.f32.mrf.mxu1  ;;  %v9835_v31 = vpop.f32.mrf.mxu0 }
 0x404   : > { %v3650_v22 = vadd.f32 %v9832_v6, %v9818_v35 }
 0x405   : > { %v3525_v12 = vpop.f32.mrf.mxu1  ;;  %v3654_v49 = vpop.f32.mrf.mxu0 }
 0x406   : > { %v3645_v61 = vadd.f32 %v3644_v63, %v3525_v12 }
 0x407   : > { %v9821_v1 = vpop.f32.mrf.mxu1  ;;  %v11996_v58 = vpop.f32.mrf.mxu0 }
 0x408   : > { %v3660_v5 = vadd.f32 %v9835_v31, %v9821_v1 }
 0x409   : > { %v3535_v39 = vpop.f32.mrf.mxu1  ;;  %v11998_v3 = vpop.f32.mrf.mxu0 }
 0x40a   : > { %v3655_v7 = vadd.f32 %v3654_v49, %v3535_v39 }
 0x40b   : > { %v9824_v38 = vpop.f32.mrf.mxu1  ;;  %v12000_v34 = vpop.f32.mrf.mxu0 }
 0x40c   : > { %v3670_v35 = vadd.f32 %v11996_v58, %v9824_v38 }
 0x40d   : > { %v12002_v18 = vpop.f32.mrf.mxu1  ;;  %v12004_v50 = vpop.f32.mrf.mxu0 }
 0x40e   : > { %v3665_v45 = vadd.f32 %v11998_v3, %v12002_v18 }
 0x40f   : > { %v12006_v48 = vpop.f32.mrf.mxu1  ;;  %v9860_v57 = vpop.f32.mrf.mxu0 }
 0x410   : > { %v3680_v49 = vadd.f32 %v12000_v34, %v12006_v48 }
 0x411   : > { %v12008_v52 = vpop.f32.mrf.mxu1  ;;  %v3901_v32 = vpop.f32.mrf.mxu0 }
 0x413   : > { %v9846_v19 = vpop.f32.mrf.mxu1  ;;  %v9863_v11 = vpop.f32.mrf.mxu0 }
 0x414   : > { %v3825_v9 = vadd.f32 %v9846_v19, %v3650_v22 }
 0x415   : > { %v3785_v43 = vpop.f32.mrf.mxu1  ;;  %v12010_v8 = vpop.f32.mrf.mxu0 }
 0x416   : > { %v3824_v16 = vadd.f32 %v3785_v43, %v3645_v61  ;;  %v3941_v24 = vadd.f32 %v9860_v57, %v3825_v9 }
 0x417   : > { %v9849_v2 = vpop.f32.mrf.mxu1  ;;  %v12012_v62 = vpop.f32.mrf.mxu0 }
 0x418   : > { %v3827_v36 = vadd.f32 %v9849_v2, %v3660_v5  ;;  %v3940_v0 = vadd.f32 %v3901_v32, %v3824_v16 }
 0x419   : > { %v3795_v13 = vpop.f32.mrf.mxu1  ;;  %v12014_v51 = vpop.f32.mrf.mxu0 }
 0x41a   : > { %v3826_v40 = vadd.f32 %v3795_v13, %v3655_v7  ;;  %v3943_v22 = vadd.f32 %v9863_v11, %v3827_v36 }
 0x41b   : > { %v9852_v55 = vpop.f32.mrf.mxu1  ;;  %v12016_v17 = vpop.f32.mrf.mxu0 }
 0x41c   : > { %v3829_v12 = vadd.f32 %v9852_v55, %v3670_v35  ;;  %v3942_v43 = vadd.f32 %v12010_v8, %v3826_v40 }
 0x41d   : > { %v3805_v26 = vpop.f32.mrf.mxu1  ;;  %v12018_v15 = vpop.f32.mrf.mxu0 }
 0x41e   : > { %v3828_v1 = vadd.f32 %v3805_v26, %v3665_v45  ;;  %v3945_v38 = vadd.f32 %v12012_v62, %v3829_v12 }
 0x41f   : > { %v9855_v41 = vpop.f32.mrf.mxu1  ;;  %v9888_v25 = vpop.f32.mrf.mxu0 }
 0x420   : > { %v3831_v7 = vadd.f32 %v9855_v41, %v3680_v49  ;;  %v3944_v34 = vadd.f32 %v12014_v51, %v3828_v1 }
 0x421   : > { %v3815_v4 = vpop.f32.mrf.mxu1  ;;  %v4138_v47 = vpop.f32.mrf.mxu0 }
 0x423   : > { %v9874_v21 = vpop.f32.mrf.mxu1  ;;  %v9891_v30 = vpop.f32.mrf.mxu0 }
 0x424   : > { %v4060_v10 = vadd.f32 %v9874_v21, %v3941_v24  ;;  %v3675_v24 = vadd.f32 %v12004_v50, %v12008_v52 }
 0x425   : > { %v4020_v33 = vpop.f32.mrf.mxu1  ;;  %v12026_v56 = vpop.f32.mrf.mxu0 }
 0x426   : > { %v4059_v19 = vadd.f32 %v4020_v33, %v3940_v0  ;;  %v4178_v58 = vadd.f32 %v9888_v25, %v4060_v10  ;;  %v3830_v11 = vadd.f32 %v3815_v4, %v3675_v24  ;;  %v3947_v10 = vadd.f32 %v12016_v17, %v3831_v7  ;;  %v8813_v17 = vld [vmem:[%s13179_s6] ss:$0 sm:$0xff] }
 0x427   : > { %v9877_v44 = vpop.f32.mrf.mxu1  ;;  %v12034_v59 = vpop.f32.mrf.mxu0 }
 0x428   : > { %v4062_v57 = vadd.f32 %v9877_v44, %v3943_v22  ;;  %v4177_v36 = vadd.f32 %v4138_v47, %v4059_v19  ;;  %v3946_v25 = vadd.f32 %v12018_v15, %v3830_v11 }
 0x429   : > { %v4030_v54 = vpop.f32.mrf.mxu1  ;;  %v12036_v23 = vpop.f32.mrf.mxu0 }
 0x42a   : > { %v4061_v3 = vadd.f32 %v4030_v54, %v3942_v43  ;;  %v4180_v55 = vadd.f32 %v9891_v30, %v4062_v57 }
 0x42b   : > { %v9880_v60 = vpop.f32.mrf.mxu1  ;;  %v12038_v20 = vpop.f32.mrf.mxu0 }
 0x42c   : > { %v4064_v2 = vadd.f32 %v9880_v60, %v3945_v38  ;;  %v4179_v26 = vadd.f32 %v12026_v56, %v4061_v3 }
 0x42d   : > { %v4040_v29 = vpop.f32.mrf.mxu1  ;;  %v12040_v27 = vpop.f32.mrf.mxu0 }
 0x42e   : > { %v4063_v40 = vadd.f32 %v4040_v29, %v3944_v34  ;;  %v4182_v51 = vadd.f32 %v12034_v59, %v4064_v2 }
 0x42f   : > { %v9883_v46 = vpop.f32.mrf.mxu1  ;;  %v9916_v37 = vpop.f32.mrf.mxu0 }
 0x430   : > { %v4066_v62 = vadd.f32 %v9883_v46, %v3947_v10  ;;  %v4181_v30 = vadd.f32 %v12036_v23, %v4063_v40 }
 0x431   : > { %v4050_v42 = vpop.f32.mrf.mxu1  ;;  %v4364_v28 = vpop.f32.mrf.mxu0 }
 0x432   : > { %v4184_v15 = vadd.f32 %v12038_v20, %v4066_v62 }
 0x433   : > { %v9902_v14 = vpop.f32.mrf.mxu1  ;;  %v9919_v31 = vpop.f32.mrf.mxu0 }
 0x434   : > { %v4291_v18 = vadd.f32 %v9902_v14, %v4178_v58 }
 0x435   : > { %v4251_v53 = vpop.f32.mrf.mxu1  ;;  %v4374_v32 = vpop.f32.mrf.mxu0 }
 0x436   : > { %v4290_v13 = vadd.f32 %v4251_v53, %v4177_v36  ;;  %v4404_v41 = vadd.f32 %v9916_v37, %v4291_v18  ;;  %v4065_v53 = vadd.f32 %v4050_v42, %v3946_v25 }
 0x437   : > { %v9905_v6 = vpop.f32.mrf.mxu1  ;;  %v9922_v52 = vpop.f32.mrf.mxu0 }
 0x438   : > { %v4293_v50 = vadd.f32 %v9905_v6, %v4180_v55  ;;  %v4403_v33 = vadd.f32 %v4364_v28, %v4290_v13  ;;  %v4183_v42 = vadd.f32 %v12040_v27, %v4065_v53 }
 0x439   : > { %v4261_v63 = vpop.f32.mrf.mxu1  ;;  %v4384_v44 = vpop.f32.mrf.mxu0 }
 0x43a   : > { %v4292_v4 = vadd.f32 %v4261_v63, %v4179_v26  ;;  %v4406_v60 = vadd.f32 %v9919_v31, %v4293_v50 }
 0x43b   : > { %v9908_v39 = vpop.f32.mrf.mxu1  ;;  %v9925_v9 = vpop.f32.mrf.mxu0 }
 0x43c   : > { %v4295_v56 = vadd.f32 %v9908_v39, %v4182_v51  ;;  %v4405_v28 = vadd.f32 %v4374_v32, %v4292_v4 }
 0x43d   : > { %v4271_v16 = vpop.f32.mrf.mxu1  ;;  %v4394_v39 = vpop.f32.mrf.mxu0 }
 0x43e   : > { %v4294_v29 = vadd.f32 %v4271_v16, %v4181_v30  ;;  %v4408_v6 = vadd.f32 %v9922_v52, %v4295_v56 }
 0x43f   : > { %v9911_v48 = vpop.f32.mrf.mxu1 }
 0x440   : > { %v4297_v37 = vadd.f32 %v9911_v48, %v4184_v15  ;;  %v4407_v12 = vadd.f32 %v4384_v44, %v4294_v29 }
 0x441   : > { %v4281_v8 = vpop.f32.mrf.mxu1 }
 0x442   : > { %v4296_v35 = vadd.f32 %v4281_v8, %v4183_v42  ;;  %v4410_v43 = vadd.f32 %v9925_v9, %v4297_v37 }
 0x443   : > { %v9930_v47 = vpop.f32.mrf.mxu1 }
 0x444   : > { %v4517_v21 = vadd.f32 %v9930_v47, %v4404_v41  ;;  %v4409_v7 = vadd.f32 %v4394_v39, %v4296_v35 }
 0x445   : > { %v4477_v0 = vpop.f32.mrf.mxu1 }
 0x446   : > { %v4516_v54 = vadd.f32 %v4477_v0, %v4403_v33  ;;  %v4531_v45 = vadd.f32 %v8813_v17, %v4517_v21 }
 0x447   : > { %v9933_v46 = vpop.f32.mrf.mxu1 }
 0x448   : > { %v4530_v59 = vadd.f32 %v8813_v17, %v4516_v54  ;;  %v4519_v61 = vadd.f32 %v9933_v46, %v4406_v60  ;;  %v4539_v19 = vsel %vm823_vm2, %v4531_v45, 0.0 }
 0x449   : > { %v4487_v23 = vpop.f32.mrf.mxu1 }
 0x44a   : > { %v4538_v14 = vsel %vm823_vm2, %v4530_v59, 0.0  ;;  %v4518_v5 = vadd.f32 %v4487_v23, %v4405_v28  ;;  %v4533_v20 = vadd.f32 %v8813_v17, %v4519_v61 }
 0x44b   : > { %v9936_v63 = vpop.f32.mrf.mxu1  ;;  %v4540_v49 = vadd.f32 %v4539_v19, %v4538_v14 }
 0x44c   : > { %v4532_v22 = vadd.f32 %v8813_v17, %v4518_v5  ;;  %v4521_v31 = vadd.f32 %v9936_v63, %v4408_v6  ;;  %v4543_v16 = vsel %vm823_vm2, %v4533_v20, 0.0 }
 0x44d   : > { %v4497_v1 = vpop.f32.mrf.mxu1 }
 0x44e   : > { %v4541_v27 = vsel %vm823_vm2, %v4532_v22, 0.0  ;;  %v4520_v57 = vadd.f32 %v4497_v1, %v4407_v12  ;;  %v4535_v3 = vadd.f32 %v8813_v17, %v4521_v31 }
 0x44f   : > { %v4542_v58 = vadd.f32 %v4541_v27, %v4540_v49  ;;  %v9939_v24 = vpop.f32.mrf.mxu1 }
 0x450   : > { %v4534_v38 = vadd.f32 %v8813_v17, %v4520_v57  ;;  %v4523_v18 = vadd.f32 %v9939_v24, %v4410_v43  ;;  %v4547_v2 = vsel %vm823_vm2, %v4535_v3, 0.0 }
 0x451   : > { %v4544_v36 = vadd.f32 %v4543_v16, %v4542_v58  ;;  %v4507_v32 = vpop.f32.mrf.mxu1 }
 0x452   : > { %v4545_v11 = vsel %vm823_vm2, %v4534_v38, 0.0  ;;  %v4522_v34 = vadd.f32 %v4507_v32, %v4409_v7  ;;  %v4537_v13 = vadd.f32 %v8813_v17, %v4523_v18 }
 0x453   : > { %v4546_v48 = vadd.f32 %v4545_v11, %v4544_v36 }
 0x454   : > { %v4536_v55 = vadd.f32 %v8813_v17, %v4522_v34  ;;  %v4551_v50 = vsel %vm823_vm2, %v4537_v13, 0.0 }
 0x455   : > { %v4548_v40 = vadd.f32 %v4547_v2, %v4546_v48 }
 0x456   : > { %v4549_v10 = vsel %vm823_vm2, %v4536_v55, 0.0 }
 0x457   : > { %v4550_v8 = vadd.f32 %v4549_v10, %v4548_v40 }
 0x459   : > { %v4552_v52 = vadd.f32 %v4551_v50, %v4550_v8 }
 0x45b   : > { %v4553_v26 = vrot.slane %v4552_v52, 4 }
 0x45d   : > { %v4554_v41 = vadd.f32 %v4553_v26, %v4552_v52 }
 0x45f   : > { %v4555_v62 = vrot.slane %v4554_v41, 2 }
 0x461   : > { %v4556_v25 = vadd.f32 %v4555_v62, %v4554_v41 }
 0x463   : > { %v4557_v47 = vrot.slane %v4556_v25, 1 }
 0x465   : > { %v4558_v4 = vadd.f32 %v4557_v47, %v4556_v25 }
 0x467   : > { %v4559_v51 = vmul.f32 0.015625, %v4558_v4 }
 0x469   : > { %v4560_v21 = vsub.f32 %v4530_v59, %v4559_v51  ;;  %v4561_v33 = vsub.f32 %v4531_v45, %v4559_v51  ;;  %v4562_v53 = vsub.f32 %v4532_v22, %v4559_v51  ;;  %v4563_v30 = vsub.f32 %v4533_v20, %v4559_v51 }
 0x46a   : > { %v4564_v0 = vsub.f32 %v4534_v38, %v4559_v51  ;;  %v4565_v54 = vsub.f32 %v4535_v3, %v4559_v51  ;;  %v4566_v61 = vsub.f32 %v4536_v55, %v4559_v51  ;;  %v12079_v59 = vsub.f32 %v4537_v13, %v4559_v51 }
 0x46b   : > { %v4568_v17 = vmul.f32 %v4560_v21, %v4560_v21  ;;  %v4569_v44 = vmul.f32 %v4561_v33, %v4561_v33  ;;  %v4570_v56 = vmul.f32 %v4562_v53, %v4562_v53  ;;  %v4571_v60 = vmul.f32 %v4563_v30, %v4563_v30 }
 0x46c   : > { %v4572_v28 = vmul.f32 %v4564_v0, %v4564_v0  ;;  %v4573_v45 = vmul.f32 %v4565_v54, %v4565_v54  ;;  %v4574_v14 = vmul.f32 %v4566_v61, %v4566_v61  ;;  %v4575_v35 = vmul.f32 %v12079_v59, %v12079_v59 }
 0x46d   : > { %v4576_v29 = vsel %vm823_vm2, %v4568_v17, 0.0  ;;  %v4577_v15 = vsel %vm823_vm2, %v4569_v44, 0.0  ;;  %v4579_v42 = vsel %vm823_vm2, %v4570_v56, 0.0  ;;  %v4581_v9 = vsel %vm823_vm2, %v4571_v60, 0.0  ;;  %v12119_v60 = vld [vmem:[%s13180_s7 + $0x28] sm:$0xff] }
 0x46e   : > { %v4578_v46 = vadd.f32 %v4577_v15, %v4576_v29  ;;  %v4583_v5 = vsel %vm823_vm2, %v4572_v28, 0.0  ;;  %v4585_v63 = vsel %vm823_vm2, %v4573_v45, 0.0  ;;  %v4587_v19 = vsel %vm823_vm2, %v4574_v14, 0.0 }
 0x46f   : > { %v4589_v22 = vsel %vm823_vm2, %v4575_v35, 0.0 }
 0x470   : > { %v4580_v23 = vadd.f32 %v4579_v42, %v4578_v46 }
 0x472   : > { %v4582_v37 = vadd.f32 %v4581_v9, %v4580_v23  ;;  %v13257_v9 = vld [vmem:[#allocation15_spill] sm:$0xff] }
 0x474   : > { %v4584_v6 = vadd.f32 %v4583_v5, %v4582_v37 }
 0x476   : > { %v4586_v12 = vadd.f32 %v4585_v63, %v4584_v6 }
 0x478   : > { %v4588_v20 = vadd.f32 %v4587_v19, %v4586_v12 }
 0x47a   : > { %v4590_v31 = vadd.f32 %v4589_v22, %v4588_v20 }
 0x47c   : > { %v4591_v49 = vrot.slane %v4590_v31, 4 }
 0x47e   : > { %v4592_v1 = vadd.f32 %v4591_v49, %v4590_v31 }
 0x480   : > { %v4593_v39 = vrot.slane %v4592_v1, 2 }
 0x482   : > { %v4594_v27 = vadd.f32 %v4593_v39, %v4592_v1  ;;  %v3332_v1 = vld [vmem:[%s13180_s7 + $0x20] sm:$0xff] }
 0x483   : > { %v13258_v39 = vld [vmem:[#allocation10_spill] sm:$0xff] }
 0x484   : > { %v4595_v57 = vrot.slane %v4594_v27, 1 }
 0x486   : > { %v4596_v43 = vadd.f32 %v4595_v57, %v4594_v27 }
 0x488   : > { %v4597_v58 = vmul.f32 0.015625, %v4596_v43 }
 0x48a   : > { %v4598_v24 = vadd.f32 1e-05, %v4597_v58 }
 0x48c   : > { %10331 = vrsqrt.f32 %v4598_v24 }
 0x499   : > { %v12088_v7 = vpop.eup %10331 }
 0x49a   : > { %v4606_v16 = vmul.f32 %v12088_v7, %v4566_v61  ;;  %v4601_v3 = vmul.f32 %v12088_v7, %v4561_v33  ;;  %v4600_v38 = vmul.f32 %v12088_v7, %v4560_v21  ;;  %v4602_v18 = vmul.f32 %v12088_v7, %v4562_v53 }
 0x49b   : > { %v4603_v36 = vmul.f32 %v12088_v7, %v4563_v30  ;;  %v4604_v32 = vmul.f32 %v12088_v7, %v4564_v0  ;;  %v4605_v11 = vmul.f32 %v12088_v7, %v4565_v54 }
 0x49c   : > { %v12097_v34 = vmax.f32 %v4606_v16, 0.0  ;;  %v4609_v48 = vmax.f32 %v4601_v3, 0.0  ;;  %v4608_v2 = vmax.f32 %v4600_v38, 0.0  ;;  %v4610_v13 = vmax.f32 %v4602_v18, 0.0 }
 0x49d   : > { %v4611_v55 = vmax.f32 %v4603_v36, 0.0  ;;  %v4612_v40 = vmax.f32 %v4604_v32, 0.0  ;;  %v4613_v52 = vmax.f32 %v4605_v11, 0.0 }
 0x49e   : > { %v4630_v10 = vrot.slane %v12097_v34, 1  ;;  %v4646_v8 = vrot.slane %v12097_v34, 7  ;;  %v4624_v50 = vrot.slane %v4609_v48, 1  ;;  %v4640_v26 = vrot.slane %v4609_v48, 7 }
 0x49f   : > { %v4625_v41 = vrot.slane %v4608_v2, 1  ;;  %v4641_v62 = vrot.slane %v4608_v2, 7  ;;  %v4656_v25 = vrot.slane %v4609_v48, 5  ;;  %v4657_v47 = vrot.slane %v4608_v2, 5 }
 0x4a0   : > { %v4626_v4 = vrot.slane %v4610_v13, 1  ;;  %v4642_v51 = vrot.slane %v4610_v13, 7  ;;  %v4627_v21 = vrot.slane %v4611_v55, 1  ;;  %v12102_v33 = vsel %vm1119_vm4, %v4624_v50, %v4640_v26 }
 0x4a1   : > { %v12105_v53 = vsel %vm1119_vm4, %v4625_v41, %v4641_v62  ;;  %v12108_v30 = vsel %vm1119_vm4, %v4640_v26, %v4656_v25  ;;  %v4643_v0 = vrot.slane %v4611_v55, 7  ;;  %v4662_v17 = vrot.slane %v12097_v34, 5  ;;  %9956 = vmatprep.mubr.msk.f32.mxu1 %vm823_vm2, %v12102_v33  ;;  %v3335_v41 = vld [vmem:[%s13180_s7 + $0x38] sm:$0xff] }
 0x4a2   : > { %v4705_v44 = vrot.slane %v12105_v53, 1  ;;  %v4702_v56 = vrot.slane %v12102_v33, 1  ;;  %v4703_v54 = vrot.slane %v12108_v30, 1  ;;  %9957 = vmatmul.mubr.msk.f32.vlgmr.msra.gmra.mxu1 %vm823_vm2, %v12105_v53  ;;  %v12124_v29 = vsel %vm1119_vm4, %v4641_v62, %v4657_v47  ;;  %v3334_v47 = vld [vmem:[%s13180_s7 + $0x30] sm:$0xff] }
 0x4a3   : > { %v12127_v15 = vsel %vm1119_vm4, %v4626_v4, %v4642_v51  ;;  %v12130_v46 = vsel %vm1119_vm4, %v4627_v21, %v4643_v0  ;;  %v4658_v61 = vrot.slane %v4610_v13, 5  ;;  %9959 = vmatprep.mubr.msk.f32.mxu1 %vm823_vm2, %v12102_v33  ;;  %v4706_v42 = vrot.slane %v12124_v29, 1  ;;  %9983 = vmatpush3.msra.mxu1 %v13257_v9 }
 0x4a4   : > { %v12135_v28 = vsel %vm1437_vm3, %v4702_v56, %v4703_v54  ;;  %v4708_v23 = vrot.slane %v12127_v15, 1  ;;  %v4659_v45 = vrot.slane %v4611_v55, 5  ;;  %v4711_v14 = vrot.slane %v12130_v46, 1  ;;  %10010 = vmatprep.subr.mxu1 %v12119_v60 }
 0x4a5   : > { %9942 = vmatprep.mubr.msk.f32.mxu0 %vm823_vm2, %v12135_v28  ;;  %v12143_v37 = vsel %vm1119_vm4, %v4642_v51, %v4658_v61  ;;  %v4628_v5 = vrot.slane %v4612_v40, 1  ;;  %v4644_v6 = vrot.slane %v4612_v40, 7  ;;  %v12148_v35 = vsel %vm1437_vm3, %v4705_v44, %v4706_v42 }
 0x4a6   : > { %v4709_v63 = vrot.slane %v12143_v37, 1  ;;  %v12152_v12 = vsel %vm1119_vm4, %v4643_v0, %v4659_v45  ;;  %v4629_v19 = vrot.slane %v4613_v52, 1  ;;  %9943 = vmatmul.mubr.msk.f32.vlgmr.msra.gmra.mxu0 %vm823_vm2, %v12148_v35  ;;  %9960 = vmatmul.mubr.msk.f32.gmra.mxu1 %vm823_vm2, %v12127_v15  ;;  %v4645_v31 = vrot.slane %v4613_v52, 7 }
 0x4a7   : > { %v4712_v20 = vrot.slane %v12152_v12, 1  ;;  %v12160_v22 = vsel %vm1119_vm4, %v4628_v5, %v4644_v6  ;;  %v4660_v49 = vrot.slane %v4612_v40, 5  ;;  %9969 = vmatpush3.msra.mxu0 %v13258_v39  ;;  %9945 = vmatprep.mubr.msk.f32.mxu0 %vm823_vm2, %v12135_v28  ;;  %v4661_v27 = vrot.slane %v4613_v52, 5 }
 0x4a8   : > { %9962 = vmatprep.mubr.msk.f32.mxu1 %vm823_vm2, %v12130_v46  ;;  %v12171_v57 = vsel %vm1437_vm3, %v4708_v23, %v4709_v63  ;;  %v12174_v43 = vsel %vm1119_vm4, %v4629_v19, %v4645_v31  ;;  %v4714_v24 = vrot.slane %v12160_v22, 1  ;;  %v12187_v38 = vsel %vm1119_vm4, %v4630_v10, %v4646_v8  ;;  %9996 = vmatprep.subr.mxu0 %v3332_v1 }
 0x4a9   : > { %v12177_v58 = vsel %vm1119_vm4, %v4644_v6, %v4660_v49  ;;  %v12182_v3 = vsel %vm1119_vm4, %v4645_v31, %v4661_v27  ;;  %v12192_v18 = vsel %vm1437_vm3, %v4711_v14, %v4712_v20  ;;  %v4717_v36 = vrot.slane %v12174_v43, 1 }
 0x4aa   : > { %v4715_v16 = vrot.slane %v12177_v58, 1  ;;  %9946 = vmatmul.mubr.msk.f32.gmra.mxu0 %vm823_vm2, %v12171_v57  ;;  %9963 = vmatmul.mubr.msk.f32.gmra.mxu1 %vm823_vm2, %v12160_v22  ;;  %v4718_v32 = vrot.slane %v12182_v3, 1  ;;  %v4686_v11 = vsel %vm1119_vm4, %v4646_v8, %v4662_v17  ;;  %v4720_v2 = vrot.slane %v12187_v38, 1 }
 0x4ab   : > { %9948 = vmatprep.mubr.msk.f32.mxu0 %vm823_vm2, %v12192_v18  ;;  %9965 = vmatprep.mubr.msk.f32.mxu1 %vm823_vm2, %v12174_v43  ;;  %v4721_v13 = vrot.slane %v4686_v11, 1  ;;  %v4961_v34 = vrot.slane %v12102_v33, 2  ;;  %v4962_v40 = vrot.slane %v12108_v30, 2  ;;  %v4964_v10 = vrot.slane %v12105_v53, 2 }
 0x4ac   : > { %v12206_v48 = vsel %vm1437_vm3, %v4714_v24, %v4715_v16  ;;  %v12212_v55 = vsel %vm1437_vm3, %v4717_v36, %v4718_v32  ;;  %v4965_v50 = vrot.slane %v12124_v29, 2  ;;  %v4607_v52 = vmul.f32 %v12088_v7, %v12079_v59 }
 0x4ad   : > { %v12224_v8 = vsel %vm1437_vm3, %v4720_v2, %v4721_v13  ;;  %v12232_v26 = vsel %vm3683_vm5, %v4961_v34, %v4962_v40  ;;  %v4967_v59 = vrot.slane %v12127_v15, 2  ;;  %v4968_v7 = vrot.slane %v12143_v37, 2  ;;  %v3336_v37 = vld [vmem:[%s13180_s7 + $0x40] sm:$0xff] }
 0x4ae   : > { %9949 = vmatmul.mubr.msk.f32.gmra.mxu0 %vm823_vm2, %v12206_v48  ;;  %9966 = vmatmul.mubr.msk.f32.gmra.mxu1 %vm823_vm2, %v12187_v38  ;;  %v4966_v62 = vsel %vm3683_vm5, %v4964_v10, %v4965_v50  ;;  %v4615_v25 = vmax.f32 %v4607_v52, 0.0  ;;  %v4970_v4 = vrot.slane %v12130_v46, 2  ;;  %v4971_v51 = vrot.slane %v12152_v12, 2  ;;  %v5894_v10 = vld [vmem:[%s13182_s9 + $0x8] sm:$0xff] }
 0x4af   : > { %9951 = vmatprep.mubr.msk.f32.mxu0 %vm823_vm2, %v12212_v55  ;;  %9984 = vmatprep.mubr.msk.f32.mxu1 %vm823_vm2, %v12105_v53  ;;  %v12260_v21 = vsel %vm3683_vm5, %v4967_v59, %v4968_v7  ;;  %v4973_v53 = vrot.slane %v12160_v22, 2  ;;  %v4974_v30 = vrot.slane %v12177_v58, 2  ;;  %v4976_v56 = vrot.slane %v12174_v43, 2 }
 0x4b0   : > { %v4631_v0 = vrot.slane %v4615_v25, 1  ;;  %v4647_v17 = vrot.slane %v4615_v25, 7  ;;  %v12267_v44 = vsel %vm3683_vm5, %v4970_v4, %v4971_v51  ;;  %v4977_v54 = vrot.slane %v12182_v3, 2 }
 0x4b1   : > { %v4979_v61 = vrot.slane %v12187_v38, 2  ;;  %v4980_v42 = vrot.slane %v4686_v11, 2  ;;  %v4663_v9 = vrot.slane %v4615_v25, 5 }
 0x4b2   : > { %9952 = vmatmul.mubr.msk.f32.gmra.mxu0 %vm823_vm2, %v12224_v8  ;;  %9985 = vmatmul.mubr.msk.f32.vlgmr.msra.gmra.mxu1 %vm823_vm2, %v12102_v33  ;;  %v4679_v29 = vsel %vm1119_vm4, %v4631_v0, %v4647_v17  ;;  %v4978_v23 = vsel %vm3683_vm5, %v4976_v56, %v4977_v54 }
 0x4b3   : > { %9970 = vmatprep.mubr.msk.f32.mxu0 %vm823_vm2, %v12232_v26  ;;  %9987 = vmatprep.mubr.msk.f32.mxu1 %vm823_vm2, %v12127_v15  ;;  %v4981_v45 = vsel %vm3683_vm5, %v4979_v61, %v4980_v42  ;;  %v4687_v14 = vsel %vm1119_vm4, %v4647_v17, %v4663_v9  ;;  %v5344_v5 = vrot.slane %v4679_v29, 2  ;;  %v12406_v61 = vld [vmem:[%s13182_s9 + $0x18] sm:$0xff] }
 0x4b4   : > { %10011 = vmatpush3.msra.mxu1 %v12119_v60  ;;  %v4975_v60 = vsel %vm3683_vm5, %v4973_v53, %v4974_v30  ;;  %v5345_v6 = vrot.slane %v4687_v14, 2  ;;  %v5227_v12 = vrot.slane %v4687_v14, 1  ;;  %13260 = vst [vmem:[#allocation11_spill] sm:$0xff] %v12406_v61 }
 0x4b5   : > { %10038 = vmatprep.subr.mxu1 %v3335_v41 }
 0x4b6   : > { %9971 = vmatmul.mubr.msk.f32.vlgmr.msra.gmra.mxu0 %vm823_vm2, %v4966_v62  ;;  %9988 = vmatmul.mubr.msk.f32.gmra.mxu1 %vm823_vm2, %v12130_v46  ;;  %v5346_v63 = vsel %vm3683_vm5, %v5344_v5, %v5345_v6 }
 0x4b7   : > { %9997 = vmatpush3.msra.mxu0 %v3332_v1  ;;  %9973 = vmatprep.mubr.msk.f32.mxu0 %vm823_vm2, %v12232_v26 }
 0x4b8   : > { %9990 = vmatprep.mubr.msk.f32.mxu1 %vm823_vm2, %v12160_v22  ;;  %10024 = vmatprep.subr.mxu0 %v3334_v47 }
 0x4ba   : > { %9974 = vmatmul.mubr.msk.f32.gmra.mxu0 %vm823_vm2, %v12260_v21  ;;  %9991 = vmatmul.mubr.msk.f32.gmra.mxu1 %vm823_vm2, %v12174_v43 }
 0x4bb   : > { %9976 = vmatprep.mubr.msk.f32.mxu0 %vm823_vm2, %v12267_v44  ;;  %9993 = vmatprep.mubr.msk.f32.mxu1 %vm823_vm2, %v12187_v38 }
 0x4be   : > { %9977 = vmatmul.mubr.msk.f32.gmra.mxu0 %vm823_vm2, %v4975_v60  ;;  %9994 = vmatmul.mubr.msk.f32.gmra.mxu1 %vm823_vm2, %v4679_v29 }
 0x4bf   : > { %9979 = vmatprep.mubr.msk.f32.mxu0 %vm823_vm2, %v4978_v23  ;;  %10012 = vmatprep.mubr.msk.f32.mxu1 %vm823_vm2, %v4966_v62 }
 0x4c2   : > { %9980 = vmatmul.mubr.msk.f32.gmra.mxu0 %vm823_vm2, %v4981_v45  ;;  %10013 = vmatmul.mubr.msk.f32.vlgmr.msra.gmra.mxu1 %vm823_vm2, %v12232_v26 }
 0x4c3   : > { %9998 = vmatprep.mubr.msk.f32.mxu0 %vm823_vm2, %v12148_v35  ;;  %10015 = vmatprep.mubr.msk.f32.mxu1 %vm823_vm2, %v12260_v21  ;;  %v5226_v35 = vrot.slane %v4679_v29, 1 }
 0x4c4   : > { %10039 = vmatpush3.msra.mxu1 %v3335_v41 }
 0x4c5   : > { %v5228_v19 = vsel %vm1437_vm3, %v5226_v35, %v5227_v12  ;;  %10066 = vmatprep.subr.mxu1 %v5894_v10 }
 0x4c6   : > { %9999 = vmatmul.mubr.msk.f32.vlgmr.msra.gmra.mxu0 %vm823_vm2, %v12135_v28  ;;  %10016 = vmatmul.mubr.msk.f32.gmra.mxu1 %vm823_vm2, %v12267_v44 }
 0x4c7   : > { %10025 = vmatpush3.msra.mxu0 %v3334_v47  ;;  %10001 = vmatprep.mubr.msk.f32.mxu0 %vm823_vm2, %v12171_v57  ;;  %v12392_v47 = vld [vmem:[%s13182_s9 + $0x10] sm:$0xff] }
 0x4c8   : > { %10018 = vmatprep.mubr.msk.f32.mxu1 %vm823_vm2, %v4975_v60  ;;  %10052 = vmatprep.subr.mxu0 %v3336_v37  ;;  %13259 = vst [vmem:[#allocation6_spill] sm:$0xff] %v12392_v47 }
 0x4ca   : > { %10002 = vmatmul.mubr.msk.f32.gmra.mxu0 %vm823_vm2, %v12192_v18  ;;  %10019 = vmatmul.mubr.msk.f32.gmra.mxu1 %vm823_vm2, %v4978_v23 }
 0x4cb   : > { %10004 = vmatprep.mubr.msk.f32.mxu0 %vm823_vm2, %v12206_v48  ;;  %10021 = vmatprep.mubr.msk.f32.mxu1 %vm823_vm2, %v4981_v45 }
 0x4ce   : > { %10005 = vmatmul.mubr.msk.f32.gmra.mxu0 %vm823_vm2, %v12212_v55  ;;  %10022 = vmatmul.mubr.msk.f32.gmra.mxu1 %vm823_vm2, %v5346_v63 }
 0x4cf   : > { %10007 = vmatprep.mubr.msk.f32.mxu0 %vm823_vm2, %v12224_v8  ;;  %10040 = vmatprep.mubr.msk.f32.mxu1 %vm823_vm2, %v12135_v28 }
 0x4d2   : > { %10008 = vmatmul.mubr.msk.f32.gmra.mxu0 %vm823_vm2, %v5228_v19  ;;  %10041 = vmatmul.mubr.msk.f32.vlgmr.msra.gmra.mxu1 %vm823_vm2, %v12171_v57 }
 0x4d3   : > { %10026 = vmatprep.mubr.msk.f32.mxu0 %vm823_vm2, %v12102_v33  ;;  %10043 = vmatprep.mubr.msk.f32.mxu1 %vm823_vm2, %v12192_v18 }
 0x4d4   : > { %10067 = vmatpush3.msra.mxu1 %v5894_v10 }
 0x4d5   : > { %10094 = vmatprep.subr.mxu1 %v12392_v47 }
 0x4d6   : > { %10027 = vmatmul.mubr.msk.f32.vlgmr.msra.gmra.mxu0 %vm823_vm2, %v12127_v15  ;;  %10044 = vmatmul.mubr.msk.f32.gmra.mxu1 %vm823_vm2, %v12206_v48 }
 0x4d7   : > { %10053 = vmatpush3.msra.mxu0 %v3336_v37  ;;  %10029 = vmatprep.mubr.msk.f32.mxu0 %vm823_vm2, %v12130_v46 }
 0x4d8   : > { %10046 = vmatprep.mubr.msk.f32.mxu1 %vm823_vm2, %v12212_v55 }
 0x4da   : > { %10030 = vmatmul.mubr.msk.f32.gmra.mxu0 %vm823_vm2, %v12160_v22  ;;  %10047 = vmatmul.mubr.msk.f32.gmra.mxu1 %vm823_vm2, %v12224_v8 }
 0x4db   : > { %10032 = vmatprep.mubr.msk.f32.mxu0 %vm823_vm2, %v12174_v43  ;;  %10049 = vmatprep.mubr.msk.f32.mxu1 %vm823_vm2, %v5228_v19 }
 0x4de   : > { %10033 = vmatmul.mubr.msk.f32.gmra.mxu0 %vm823_vm2, %v12187_v38  ;;  %10050 = vmatmul.mubr.msk.f32.gmra.mxu1 %vm823_vm2, %v12224_v8  ;;  %v5893_v8 = vld [vmem:[%s13182_s9] sm:$0xff] }
 0x4df   : > { %10035 = vmatprep.mubr.msk.f32.mxu0 %vm823_vm2, %v4679_v29  ;;  %10080 = vmatprep.subr.mxu0 %v5893_v8 }
 0x4e2   : > { %10036 = vmatmul.mubr.msk.f32.gmra.mxu0 %vm823_vm2, %v12187_v38 }
 0x4e3   : > { %10054 = vmatprep.mubr.msk.f32.mxu0 %vm823_vm2, %v12232_v26 }
 0x4e6   : > { %10055 = vmatmul.mubr.msk.f32.vlgmr.msra.gmra.mxu0 %vm823_vm2, %v12260_v21 }
 0x4e7   : > { %10057 = vmatprep.mubr.msk.f32.mxu0 %vm823_vm2, %v12267_v44  ;;  %10081 = vmatpush3.msra.mxu0 %v5893_v8 }
 0x4e8   : > { %10108 = vmatprep.subr.mxu0 %v12406_v61 }
 0x4ea   : > { %10058 = vmatmul.mubr.msk.f32.gmra.mxu0 %vm823_vm2, %v4975_v60 }
 0x4eb   : > { %10060 = vmatprep.mubr.msk.f32.mxu0 %vm823_vm2, %v4978_v23 }
 0x4ee   : > { %10061 = vmatmul.mubr.msk.f32.gmra.mxu0 %vm823_vm2, %v4981_v45 }
 0x4ef   : > { %10063 = vmatprep.mubr.msk.f32.mxu0 %vm823_vm2, %v5346_v63 }
 0x4f2   : > { %10064 = vmatmul.mubr.msk.f32.gmra.mxu0 %vm823_vm2, %v4981_v45 }
 0x562   : > { %v9958_v33 = vpop.f32.mrf.mxu1 }
 0x564   : > { %v4922_v15 = vpop.f32.mrf.mxu1 }
 0x566   : > { %v9944_v46 = vpop.f32.mrf.mxu0  ;;  %v9961_v28 = vpop.f32.mrf.mxu1 }
 0x567   : > { %v4928_v29 = vadd.f32 %v9958_v33, %v9944_v46 }
 0x568   : > { %v4803_v20 = vpop.f32.mrf.mxu0  ;;  %v4932_v22 = vpop.f32.mrf.mxu1 }
 0x569   : > { %v4923_v23 = vadd.f32 %v4922_v15, %v4803_v20 }
 0x56a   : > { %v9947_v31 = vpop.f32.mrf.mxu0  ;;  %v12359_v49 = vpop.f32.mrf.mxu1 }
 0x56b   : > { %v4938_v14 = vadd.f32 %v9961_v28, %v9947_v31 }
 0x56c   : > { %v4813_v1 = vpop.f32.mrf.mxu0  ;;  %v12361_v39 = vpop.f32.mrf.mxu1 }
 0x56d   : > { %v4933_v35 = vadd.f32 %v4932_v22, %v4813_v1 }
 0x56e   : > { %v9950_v27 = vpop.f32.mrf.mxu0  ;;  %v12363_v57 = vpop.f32.mrf.mxu1 }
 0x56f   : > { %v4948_v46 = vadd.f32 %v12359_v49, %v9950_v27 }
 0x570   : > { %v12365_v43 = vpop.f32.mrf.mxu0  ;;  %v12367_v58 = vpop.f32.mrf.mxu1 }
 0x571   : > { %v4943_v61 = vadd.f32 %v12361_v39, %v12365_v43 }
 0x572   : > { %v12369_v24 = vpop.f32.mrf.mxu0  ;;  %v9986_v16 = vpop.f32.mrf.mxu1 }
 0x573   : > { %v4958_v22 = vadd.f32 %v12363_v57, %v12369_v24 }
 0x574   : > { %v12371_v3 = vpop.f32.mrf.mxu0  ;;  %v5178_v38 = vpop.f32.mrf.mxu1 }
 0x575   : > { %v4953_v27 = vadd.f32 %v12367_v58, %v12371_v3 }
 0x576   : > { %v9972_v18 = vpop.f32.mrf.mxu0  ;;  %v9989_v36 = vpop.f32.mrf.mxu1 }
 0x577   : > { %v5102_v45 = vadd.f32 %v9972_v18, %v4928_v29 }
 0x578   : > { %v5062_v32 = vpop.f32.mrf.mxu0  ;;  %v12373_v11 = vpop.f32.mrf.mxu1 }
 0x579   : > { %v5101_v5 = vadd.f32 %v5062_v32, %v4923_v23  ;;  %v5218_v12 = vadd.f32 %v9986_v16, %v5102_v45 }
 0x57a   : > { %v9975_v48 = vpop.f32.mrf.mxu0  ;;  %v12375_v2 = vpop.f32.mrf.mxu1 }
 0x57b   : > { %v5104_v63 = vadd.f32 %v9975_v48, %v4938_v14  ;;  %v5217_v47 = vadd.f32 %v5178_v38, %v5101_v5 }
 0x57c   : > { %v5072_v13 = vpop.f32.mrf.mxu0  ;;  %v12377_v55 = vpop.f32.mrf.mxu1 }
 0x57d   : > { %v5103_v10 = vadd.f32 %v5072_v13, %v4933_v35  ;;  %v5220_v29 = vadd.f32 %v9989_v36, %v5104_v63 }
 0x57e   : > { %v9978_v34 = vpop.f32.mrf.mxu0  ;;  %v12379_v40 = vpop.f32.mrf.mxu1 }
 0x57f   : > { %v5106_v20 = vadd.f32 %v9978_v34, %v4948_v46  ;;  %v5219_v32 = vadd.f32 %v12373_v11, %v5103_v10 }
 0x580   : > { %v5082_v50 = vpop.f32.mrf.mxu0  ;;  %v12387_v52 = vpop.f32.mrf.mxu1 }
 0x581   : > { %v5105_v31 = vadd.f32 %v5082_v50, %v4943_v61  ;;  %v5222_v43 = vadd.f32 %v12375_v2, %v5106_v20 }
 0x582   : > { %v9981_v26 = vpop.f32.mrf.mxu0  ;;  %v10014_v41 = vpop.f32.mrf.mxu1 }
 0x583   : > { %v5108_v38 = vadd.f32 %v9981_v26, %v4958_v22  ;;  %v5221_v57 = vadd.f32 %v12377_v55, %v5105_v31 }
 0x584   : > { %v5092_v59 = vpop.f32.mrf.mxu0  ;;  %v5415_v7 = vpop.f32.mrf.mxu1 }
 0x586   : > { %v10000_v62 = vpop.f32.mrf.mxu0  ;;  %v10017_v25 = vpop.f32.mrf.mxu1 }
 0x587   : > { %v5337_v8 = vadd.f32 %v10000_v62, %v5218_v12  ;;  %v5107_v62 = vadd.f32 %v5092_v59, %v4953_v27 }
 0x588   : > { %v5297_v4 = vpop.f32.mrf.mxu0  ;;  %v5425_v51 = vpop.f32.mrf.mxu1 }
 0x589   : > { %v5336_v18 = vadd.f32 %v5297_v4, %v5217_v47  ;;  %v5455_v49 = vadd.f32 %v10014_v41, %v5337_v8  ;;  %v5224_v41 = vadd.f32 %v12379_v40, %v5108_v38  ;;  %v5223_v2 = vadd.f32 %v12387_v52, %v5107_v62  ;;  %v8886_v40 = vld [vmem:[%s13181_s8] ss:$0 sm:$0xff] }
 0x58a   : > { %v10003_v21 = vpop.f32.mrf.mxu0  ;;  %v12395_v53 = vpop.f32.mrf.mxu1 }
 0x58b   : > { %v5339_v16 = vadd.f32 %v10003_v21, %v5220_v29  ;;  %v5454_v36 = vadd.f32 %v5415_v7, %v5336_v18 }
 0x58c   : > { %v5307_v30 = vpop.f32.mrf.mxu0  ;;  %v12397_v0 = vpop.f32.mrf.mxu1 }
 0x58d   : > { %v5338_v39 = vadd.f32 %v5307_v30, %v5219_v32  ;;  %v5457_v4 = vadd.f32 %v10017_v25, %v5339_v16 }
 0x58e   : > { %v10006_v17 = vpop.f32.mrf.mxu0  ;;  %v12399_v44 = vpop.f32.mrf.mxu1 }
 0x58f   : > { %v5341_v50 = vadd.f32 %v10006_v17, %v5222_v43  ;;  %v5456_v26 = vadd.f32 %v5425_v51, %v5338_v39 }
 0x590   : > { %v5317_v56 = vpop.f32.mrf.mxu0  ;;  %v12401_v54 = vpop.f32.mrf.mxu1 }
 0x591   : > { %v5340_v11 = vadd.f32 %v5317_v56, %v5221_v57  ;;  %v5459_v59 = vadd.f32 %v12395_v53, %v5341_v50 }
 0x592   : > { %v10009_v60 = vpop.f32.mrf.mxu0  ;;  %v10042_v9 = vpop.f32.mrf.mxu1 }
 0x593   : > { %v5343_v61 = vadd.f32 %v10009_v60, %v5224_v41  ;;  %v5458_v25 = vadd.f32 %v12397_v0, %v5340_v11 }
 0x594   : > { %v5327_v42 = vpop.f32.mrf.mxu0  ;;  %v5641_v19 = vpop.f32.mrf.mxu1 }
 0x595   : > { %v5342_v17 = vadd.f32 %v5327_v42, %v5223_v2  ;;  %v5461_v52 = vadd.f32 %v12399_v44, %v5343_v61 }
 0x596   : > { %v10028_v37 = vpop.f32.mrf.mxu0  ;;  %v10045_v28 = vpop.f32.mrf.mxu1 }
 0x597   : > { %v5568_v13 = vadd.f32 %v10028_v37, %v5455_v49  ;;  %v5460_v42 = vadd.f32 %v12401_v54, %v5342_v17 }
 0x598   : > { %v5528_v6 = vpop.f32.mrf.mxu0  ;;  %v5651_v34 = vpop.f32.mrf.mxu1 }
 0x599   : > { %v5567_v47 = vadd.f32 %v5528_v6, %v5454_v36  ;;  %v5681_v30 = vadd.f32 %v10042_v9, %v5568_v13 }
 0x59a   : > { %v10031_v33 = vpop.f32.mrf.mxu0  ;;  %v10048_v3 = vpop.f32.mrf.mxu1 }
 0x59b   : > { %v5570_v58 = vadd.f32 %v10031_v33, %v5457_v4  ;;  %v5680_v45 = vadd.f32 %v5641_v19, %v5567_v47 }
 0x59c   : > { %v5538_v15 = vpop.f32.mrf.mxu0  ;;  %v5661_v37 = vpop.f32.mrf.mxu1 }
 0x59d   : > { %v5569_v23 = vadd.f32 %v5538_v15, %v5456_v26  ;;  %v5683_v60 = vadd.f32 %v10045_v28, %v5570_v58 }
 0x59e   : > { %v10034_v1 = vpop.f32.mrf.mxu0  ;;  %v10051_v12 = vpop.f32.mrf.mxu1 }
 0x59f   : > { %v5572_v51 = vadd.f32 %v10034_v1, %v5459_v59  ;;  %v5682_v63 = vadd.f32 %v5651_v34, %v5569_v23 }
 0x5a0   : > { %v5548_v48 = vpop.f32.mrf.mxu0  ;;  %v5671_v1 = vpop.f32.mrf.mxu1 }
 0x5a1   : > { %v5571_v14 = vadd.f32 %v5548_v48, %v5458_v25  ;;  %v5685_v10 = vadd.f32 %v10048_v3, %v5572_v51 }
 0x5a2   : > { %v10037_v24 = vpop.f32.mrf.mxu0 }
 0x5a3   : > { %v5574_v19 = vadd.f32 %v10037_v24, %v5461_v52  ;;  %v5684_v20 = vadd.f32 %v5661_v37, %v5571_v14 }
 0x5a4   : > { %v5558_v21 = vpop.f32.mrf.mxu0 }
 0x5a5   : > { %v5573_v8 = vadd.f32 %v5558_v21, %v5460_v42  ;;  %v5687_v32 = vadd.f32 %v10051_v12, %v5574_v19 }
 0x5a6   : > { %v10056_v7 = vpop.f32.mrf.mxu0 }
 0x5a7   : > { %v5794_v55 = vadd.f32 %v10056_v7, %v5681_v30  ;;  %v5686_v38 = vadd.f32 %v5671_v1, %v5573_v8 }
 0x5a8   : > { %v5754_v56 = vpop.f32.mrf.mxu0 }
 0x5a9   : > { %v5793_v9 = vadd.f32 %v5754_v56, %v5680_v45  ;;  %v5808_v6 = vadd.f32 %v8886_v40, %v5794_v55 }
 0x5aa   : > { %v10059_v5 = vpop.f32.mrf.mxu0 }
 0x5ab   : > { %v5807_v53 = vadd.f32 %v8886_v40, %v5793_v9  ;;  %v5796_v35 = vadd.f32 %v10059_v5, %v5683_v60  ;;  %v5816_v18 = vsel %vm823_vm2, %v5808_v6, 0.0 }
 0x5ac   : > { %v5764_v0 = vpop.f32.mrf.mxu0 }
 0x5ad   : > { %v5815_v33 = vsel %vm823_vm2, %v5807_v53, 0.0  ;;  %v5795_v46 = vadd.f32 %v5764_v0, %v5682_v63  ;;  %v5810_v44 = vadd.f32 %v8886_v40, %v5796_v35 }
 0x5ae   : > { %v10062_v15 = vpop.f32.mrf.mxu0  ;;  %v5817_v22 = vadd.f32 %v5816_v18, %v5815_v33 }
 0x5af   : > { %v5809_v29 = vadd.f32 %v8886_v40, %v5795_v46  ;;  %v5798_v28 = vadd.f32 %v10062_v15, %v5685_v10  ;;  %v5820_v48 = vsel %vm823_vm2, %v5810_v44, 0.0 }
 0x5b0   : > { %v5774_v31 = vpop.f32.mrf.mxu0 }
 0x5b1   : > { %v5818_v54 = vsel %vm823_vm2, %v5809_v29, 0.0  ;;  %v5797_v16 = vadd.f32 %v5774_v31, %v5684_v20  ;;  %v5812_v39 = vadd.f32 %v8886_v40, %v5798_v28 }
 0x5b2   : > { %v5819_v49 = vadd.f32 %v5818_v54, %v5817_v22  ;;  %v10065_v27 = vpop.f32.mrf.mxu0 }
 0x5b3   : > { %v5811_v43 = vadd.f32 %v8886_v40, %v5797_v16  ;;  %v5800_v13 = vadd.f32 %v10065_v27, %v5687_v32  ;;  %v5824_v50 = vsel %vm823_vm2, %v5812_v39, 0.0 }
 0x5b4   : > { %v5821_v36 = vadd.f32 %v5820_v48, %v5819_v49  ;;  %v5784_v34 = vpop.f32.mrf.mxu0 }
 0x5b5   : > { %v5822_v62 = vsel %vm823_vm2, %v5811_v43, 0.0  ;;  %v5799_v57 = vadd.f32 %v5784_v34, %v5686_v38  ;;  %v5814_v47 = vadd.f32 %v8886_v40, %v5800_v13 }
 0x5b6   : > { %v5823_v24 = vadd.f32 %v5822_v62, %v5821_v36 }
 0x5b7   : > { %v5813_v4 = vadd.f32 %v8886_v40, %v5799_v57  ;;  %v5828_v58 = vsel %vm823_vm2, %v5814_v47, 0.0  ;;  %v13261_v57 = vld [vmem:[#allocation3_spill] sm:$0xff] }
 0x5b8   : > { %v5825_v11 = vadd.f32 %v5824_v50, %v5823_v24  ;;  %v13263_v50 = vld [vmem:[#allocation7_spill] sm:$0xff] }
 0x5b9   : > { %v5826_v41 = vsel %vm823_vm2, %v5813_v4, 0.0 }
 0x5ba   : > { %v5827_v21 = vadd.f32 %v5826_v41, %v5825_v11  ;;  %v13267_v41 = vld [vmem:[#allocation2_spill] sm:$0xff] }
 0x5bc   : > { %v5829_v3 = vadd.f32 %v5828_v58, %v5827_v21  ;;  %v13269_v58 = vld [vmem:[#allocation8_spill] sm:$0xff] }
 0x5be   : > { %v5830_v26 = vrot.slane %v5829_v3, 4 }
 0x5c0   : > { %v5831_v30 = vadd.f32 %v5830_v26, %v5829_v3  ;;  %v13271_v26 = vld [vmem:[#allocation9_spill] sm:$0xff] }
 0x5c2   : > { %v5832_v61 = vrot.slane %v5831_v30, 2 }
 0x5c4   : > { %v5833_v2 = vadd.f32 %v5832_v61, %v5831_v30 }
 0x5c6   : > { %v5834_v7 = vrot.slane %v5833_v2, 1 }
 0x5c8   : > { %v5835_v23 = vadd.f32 %v5834_v7, %v5833_v2 }
 0x5ca   : > { %v5836_v59 = vmul.f32 0.015625, %v5835_v23  ;;  %v13273_v23 = vld [vmem:[#allocation4_spill] sm:$0xff] }
 0x5cc   : > { %v5837_v55 = vsub.f32 %v5807_v53, %v5836_v59  ;;  %v5838_v45 = vsub.f32 %v5808_v6, %v5836_v59  ;;  %v5839_v17 = vsub.f32 %v5809_v29, %v5836_v59  ;;  %v5840_v25 = vsub.f32 %v5810_v44, %v5836_v59 }
 0x5cd   : > { %v5841_v56 = vsub.f32 %v5811_v43, %v5836_v59  ;;  %v5842_v9 = vsub.f32 %v5812_v39, %v5836_v59  ;;  %v5843_v35 = vsub.f32 %v5813_v4, %v5836_v59  ;;  %v12439_v53 = vsub.f32 %v5814_v47, %v5836_v59  ;;  %v13265_v4 = vld [vmem:[#allocation18_spill] sm:$0xff] }
 0x5ce   : > { %v5845_v40 = vmul.f32 %v5837_v55, %v5837_v55  ;;  %v5846_v37 = vmul.f32 %v5838_v45, %v5838_v45  ;;  %v5847_v51 = vmul.f32 %v5839_v17, %v5839_v17  ;;  %v5848_v60 = vmul.f32 %v5840_v25, %v5840_v25 }
 0x5cf   : > { %v5849_v63 = vmul.f32 %v5841_v56, %v5841_v56  ;;  %v5850_v6 = vmul.f32 %v5842_v9, %v5842_v9  ;;  %v5851_v33 = vmul.f32 %v5843_v35, %v5843_v35  ;;  %v5852_v8 = vmul.f32 %v12439_v53, %v12439_v53 }
 0x5d0   : > { %v5853_v14 = vsel %vm823_vm2, %v5845_v40, 0.0  ;;  %v5854_v52 = vsel %vm823_vm2, %v5846_v37, 0.0  ;;  %v5856_v42 = vsel %vm823_vm2, %v5847_v51, 0.0  ;;  %v5858_v12 = vsel %vm823_vm2, %v5848_v60, 0.0 }
 0x5d1   : > { %v5855_v5 = vadd.f32 %v5854_v52, %v5853_v14  ;;  %v5860_v46 = vsel %vm823_vm2, %v5849_v63, 0.0  ;;  %v5862_v15 = vsel %vm823_vm2, %v5850_v6, 0.0  ;;  %v5864_v18 = vsel %vm823_vm2, %v5851_v33, 0.0 }
 0x5d2   : > { %v5866_v29 = vsel %vm823_vm2, %v5852_v8, 0.0 }
 0x5d3   : > { %v5857_v0 = vadd.f32 %v5856_v42, %v5855_v5  ;;  %v12506_v5 = vld [vmem:[%s13182_s9 + $0x28] sm:$0xff] }
 0x5d5   : > { %v5859_v19 = vadd.f32 %v5858_v12, %v5857_v0 }
 0x5d7   : > { %v5861_v10 = vadd.f32 %v5860_v46, %v5859_v19  ;;  %v13275_v46 = vld [vmem:[#allocation11_spill] sm:$0xff] }
 0x5d9   : > { %v5863_v20 = vadd.f32 %v5862_v15, %v5861_v10 }
 0x5db   : > { %v5865_v44 = vadd.f32 %v5864_v18, %v5863_v20  ;;  %v12536_v18 = vld [vmem:[%s13182_s9 + $0x20] sm:$0xff] }
 0x5dd   : > { %v5867_v28 = vadd.f32 %v5866_v29, %v5865_v44 }
 0x5df   : > { %v5868_v22 = vrot.slane %v5867_v28, 4 }
 0x5e1   : > { %v5869_v31 = vadd.f32 %v5868_v22, %v5867_v28 }
 0x5e3   : > { %v5870_v1 = vrot.slane %v5869_v31, 2 }
 0x5e5   : > { %v5871_v54 = vadd.f32 %v5870_v1, %v5869_v31  ;;  %v13276_v31 = vld [vmem:[#allocation6_spill] sm:$0xff] }
 0x5e7   : > { %v5872_v16 = vrot.slane %v5871_v54, 1 }
 0x5e9   : > { %v5873_v32 = vadd.f32 %v5872_v16, %v5871_v54 }
 0x5eb   : > { %v5874_v49 = vmul.f32 0.015625, %v5873_v32 }
 0x5ed   : > { %v5875_v27 = vadd.f32 1e-05, %v5874_v49 }
 0x5ef   : > { %10333 = vrsqrt.f32 %v5875_v27 }
 0x5fc   : > { %v12448_v38 = vpop.eup %10333 }
 0x5fd   : > { %v5882_v48 = vmul.f32 %v12448_v38, %v5842_v9  ;;  %v5883_v39 = vmul.f32 %v12448_v38, %v5843_v35  ;;  %v5878_v43 = vmul.f32 %v12448_v38, %v5838_v45  ;;  %v5877_v13 = vmul.f32 %v12448_v38, %v5837_v55 }
 0x5fe   : > { %v5879_v36 = vmul.f32 %v12448_v38, %v5839_v17  ;;  %v5880_v34 = vmul.f32 %v12448_v38, %v5840_v25  ;;  %v5881_v62 = vmul.f32 %v12448_v38, %v5841_v56 }
 0x5ff   : > { %v12458_v24 = vadd.f32 %v5883_v39, %v13261_v57  ;;  %v12461_v47 = vadd.f32 %v5878_v43, %v13263_v50  ;;  %v12464_v11 = vadd.f32 %v5877_v13, %v13265_v4  ;;  %v12473_v30 = vadd.f32 %v5882_v48, %v13271_v26 }
 0x600   : > { %v12467_v21 = vadd.f32 %v5879_v36, %v13267_v41  ;;  %v12470_v3 = vadd.f32 %v5880_v34, %v13269_v58  ;;  %v12479_v59 = vadd.f32 %v5881_v62, %v13273_v23 }
 0x601   : > { %13262 = vst [vmem:[#allocation16_spill] sm:$0xff] %v12458_v24  ;;  %13264 = vst [vmem:[#allocation12_spill] sm:$0xff] %v12461_v47  ;;  %v5921_v61 = vrot.slane %v12461_v47, 1  ;;  %v5937_v2 = vrot.slane %v12461_v47, 7  ;;  %v5953_v7 = vrot.slane %v12461_v47, 5  ;;  %v5922_v55 = vrot.slane %v12464_v11, 1 }
 0x602   : > { %13266 = vst [vmem:[#allocation17_spill] sm:$0xff] %v12464_v11  ;;  %13268 = vst [vmem:[#allocation13_spill] sm:$0xff] %v12467_v21  ;;  %v5938_v45 = vrot.slane %v12464_v11, 7  ;;  %v5954_v17 = vrot.slane %v12464_v11, 5  ;;  %v5923_v25 = vrot.slane %v12467_v21, 1  ;;  %v5939_v37 = vrot.slane %v12467_v21, 7 }
 0x603   : > { %13270 = vst [vmem:[#allocation19_spill] sm:$0xff] %v12470_v3  ;;  %13272 = vst [vmem:[#allocation14_spill] sm:$0xff] %v12473_v30  ;;  %v12486_v56 = vsel %vm1119_vm4, %v5921_v61, %v5937_v2  ;;  %v12489_v40 = vsel %vm1119_vm4, %v5937_v2, %v5953_v7  ;;  %v5924_v51 = vrot.slane %v12470_v3, 1  ;;  %v5926_v0 = vrot.slane %v12473_v30, 1 }
 0x604   : > { %13274 = vst [vmem:[#allocation20_spill] sm:$0xff] %v12479_v59  ;;  %10082 = vmatprep.mubr.msk.f32.mxu0 %vm823_vm2, %v12486_v56  ;;  %v12496_v9 = vsel %vm1119_vm4, %v5922_v55, %v5938_v45  ;;  %v5999_v60 = vrot.slane %v12486_v56, 1  ;;  %v6000_v14 = vrot.slane %v12489_v40, 1  ;;  %v12501_v52 = vsel %vm1119_vm4, %v5938_v45, %v5954_v17 }
 0x605   : > { %v6002_v35 = vrot.slane %v12496_v9, 1  ;;  %10083 = vmatmul.mubr.msk.f32.vlgmr.msra.gmra.mxu0 %vm823_vm2, %v12496_v9  ;;  %v6003_v63 = vrot.slane %v12501_v52, 1  ;;  %v12513_v42 = vsel %vm1119_vm4, %v5923_v25, %v5939_v37  ;;  %v5940_v12 = vrot.slane %v12470_v3, 7 }
 0x606   : > { %10085 = vmatprep.mubr.msk.f32.mxu0 %vm823_vm2, %v12486_v56  ;;  %v12519_v6 = vsel %vm1437_vm3, %v5999_v60, %v6000_v14  ;;  %v5955_v19 = vrot.slane %v12467_v21, 5  ;;  %v6005_v33 = vrot.slane %v12513_v42, 1  ;;  %10109 = vmatpush3.msra.mxu0 %v13275_v46  ;;  %v5956_v8 = vrot.slane %v12470_v3, 5 }
 0x607   : > { %10068 = vmatprep.mubr.msk.f32.mxu1 %vm823_vm2, %v12519_v6  ;;  %v12528_v10 = vsel %vm1437_vm3, %v6002_v35, %v6003_v63  ;;  %v5925_v15 = vrot.slane %v12479_v59, 1  ;;  %v5941_v20 = vrot.slane %v12479_v59, 7  ;;  %10136 = vmatprep.subr.mxu0 %v12506_v5  ;;  %v12542_v44 = vsel %vm1119_vm4, %v5924_v51, %v5940_v12 }
 0x608   : > { %10069 = vmatmul.mubr.msk.f32.vlgmr.msra.gmra.mxu1 %vm823_vm2, %v12528_v10  ;;  %v12545_v29 = vsel %vm1119_vm4, %v5939_v37, %v5955_v19  ;;  %v5942_v28 = vrot.slane %v12473_v30, 7  ;;  %v5957_v22 = vrot.slane %v12479_v59, 5  ;;  %v12554_v54 = vsel %vm1119_vm4, %v5940_v12, %v5956_v8 }
 0x609   : > { %10095 = vmatpush3.msra.mxu1 %v13276_v31  ;;  %10071 = vmatprep.mubr.msk.f32.mxu1 %vm823_vm2, %v12519_v6  ;;  %v6006_v1 = vrot.slane %v12545_v29, 1  ;;  %v6008_v16 = vrot.slane %v12542_v44, 1  ;;  %v12558_v32 = vsel %vm1119_vm4, %v5925_v15, %v5941_v20  ;;  %v6009_v49 = vrot.slane %v12554_v54, 1 }
 0x60a   : > { %10086 = vmatmul.mubr.msk.f32.gmra.mxu0 %vm823_vm2, %v12513_v42  ;;  %v12564_v27 = vsel %vm1119_vm4, %v5926_v0, %v5942_v28  ;;  %v12567_v48 = vsel %vm1119_vm4, %v5941_v20, %v5957_v22  ;;  %v6011_v39 = vrot.slane %v12558_v32, 1  ;;  %10122 = vmatprep.subr.mxu1 %v12536_v18  ;;  %v5958_v36 = vrot.slane %v12473_v30, 5  ;;  %v13277_v0 = vld [vmem:[#allocation5_spill] sm:$0xff] }
 0x60b   : > { %10088 = vmatprep.mubr.msk.f32.mxu0 %vm823_vm2, %v12542_v44  ;;  %v12574_v43 = vsel %vm1437_vm3, %v6005_v33, %v6006_v1  ;;  %v6012_v13 = vrot.slane %v12567_v48, 1  ;;  %v6014_v34 = vrot.slane %v12564_v27, 1  ;;  %v12582_v62 = vsel %vm1437_vm3, %v6008_v16, %v6009_v49  ;;  %v5901_v49 = vld [vmem:[%s13182_s9 + $0x40] sm:$0xff] }
 0x60c   : > { %10072 = vmatmul.mubr.msk.f32.gmra.mxu1 %vm823_vm2, %v12574_v43  ;;  %v5927_v57 = vrot.slane %v12458_v24, 1  ;;  %v5943_v50 = vrot.slane %v12458_v24, 7  ;;  %v5959_v4 = vrot.slane %v12458_v24, 5  ;;  %v5982_v41 = vsel %vm1119_vm4, %v5942_v28, %v5958_v36 }
 0x60d   : > { %10074 = vmatprep.mubr.msk.f32.mxu1 %vm823_vm2, %v12582_v62  ;;  %v6015_v58 = vrot.slane %v5982_v41, 1  ;;  %v12599_v2 = vsel %vm1437_vm3, %v6011_v39, %v6012_v13  ;;  %v6258_v45 = vrot.slane %v12486_v56, 2  ;;  %v6259_v17 = vrot.slane %v12489_v40, 2 }
 0x60e   : > { %10089 = vmatmul.mubr.msk.f32.gmra.mxu0 %vm823_vm2, %v12558_v32  ;;  %v12593_v26 = vsel %vm1119_vm4, %v5927_v57, %v5943_v50  ;;  %v5983_v61 = vsel %vm1119_vm4, %v5943_v50, %v5959_v4  ;;  %v6261_v25 = vrot.slane %v12496_v9, 2  ;;  %v6262_v51 = vrot.slane %v12501_v52, 2 }
 0x60f   : > { %10091 = vmatprep.mubr.msk.f32.mxu0 %vm823_vm2, %v12564_v27  ;;  %v6017_v7 = vrot.slane %v12593_v26, 1  ;;  %v6018_v23 = vrot.slane %v5983_v61, 1  ;;  %v12605_v55 = vsel %vm1437_vm3, %v6014_v34, %v6015_v58  ;;  %v12623_v40 = vsel %vm3683_vm5, %v6258_v45, %v6259_v17 }
 0x610   : > { %10075 = vmatmul.mubr.msk.f32.gmra.mxu1 %vm823_vm2, %v12599_v2  ;;  %v5884_v60 = vmul.f32 %v12448_v38, %v12439_v53  ;;  %v6263_v14 = vsel %vm3683_vm5, %v6261_v25, %v6262_v51  ;;  %v6264_v52 = vrot.slane %v12513_v42, 2  ;;  %v6265_v35 = vrot.slane %v12545_v29, 2  ;;  %v5899_v53 = vld [vmem:[%s13182_s9 + $0x30] sm:$0xff] }
 0x611   : > { %10077 = vmatprep.mubr.msk.f32.mxu1 %vm823_vm2, %v12605_v55  ;;  %v12617_v37 = vsel %vm1437_vm3, %v6017_v7, %v6018_v23  ;;  %v6267_v38 = vrot.slane %v12542_v44, 2  ;;  %v6268_v63 = vrot.slane %v12554_v54, 2  ;;  %v6270_v19 = vrot.slane %v12558_v32, 2 }
 0x612   : > { %10092 = vmatmul.mubr.msk.f32.gmra.mxu0 %vm823_vm2, %v12593_v26  ;;  %v12650_v12 = vadd.f32 %v5884_v60, %v13277_v0  ;;  %v6271_v33 = vrot.slane %v12567_v48, 2  ;;  %v6273_v8 = vrot.slane %v12564_v27, 2  ;;  %v6274_v15 = vrot.slane %v5982_v41, 2 }
 0x613   : > { %10110 = vmatprep.mubr.msk.f32.mxu0 %vm823_vm2, %v12496_v9  ;;  %v5900_v9 = vld [vmem:[%s13182_s9 + $0x38] sm:$0xff]  ;;  %v12664_v46 = vsel %vm3683_vm5, %v6267_v38, %v6268_v63  ;;  %v6276_v28 = vrot.slane %v12593_v26, 2  ;;  %v6277_v22 = vrot.slane %v5983_v61, 2  ;;  %v5903_v38 = vld [vmem:[%s13184_s11] sm:$0xff] }
 0x614   : > { %10078 = vmatmul.mubr.msk.f32.gmra.mxu1 %vm823_vm2, %v12617_v37  ;;  %13278 = vst [vmem:[#allocation15_spill] sm:$0xff] %v12650_v12  ;;  %v5928_v20 = vrot.slane %v12650_v12, 1  ;;  %v6272_v29 = vsel %vm3683_vm5, %v6270_v19, %v6271_v33  ;;  %v6275_v31 = vsel %vm3683_vm5, %v6273_v8, %v6274_v15  ;;  %v5960_v16 = vrot.slane %v12650_v12, 5 }
 0x615   : > { %10096 = vmatprep.mubr.msk.f32.mxu1 %vm823_vm2, %v12623_v40  ;;  %v6278_v54 = vsel %vm3683_vm5, %v6276_v28, %v6277_v22 }
 0x616   : > { %10111 = vmatmul.mubr.msk.f32.vlgmr.msra.gmra.mxu0 %vm823_vm2, %v12486_v56 }
 0x617   : > { %10113 = vmatprep.mubr.msk.f32.mxu0 %vm823_vm2, %v12513_v42  ;;  %10137 = vmatpush3.msra.mxu0 %v12506_v5  ;;  %v12657_v5 = vsel %vm3683_vm5, %v6264_v52, %v6265_v35 }
 0x618   : > { %10097 = vmatmul.mubr.msk.f32.vlgmr.msra.gmra.mxu1 %vm823_vm2, %v6263_v14  ;;  %10164 = vmatprep.subr.mxu0 %v5900_v9 }
 0x619   : > { %10123 = vmatpush3.msra.mxu1 %v12536_v18  ;;  %10099 = vmatprep.mubr.msk.f32.mxu1 %vm823_vm2, %v12623_v40  ;;  %v5944_v18 = vrot.slane %v12650_v12, 7 }
 0x61a   : > { %10114 = vmatmul.mubr.msk.f32.gmra.mxu0 %vm823_vm2, %v12542_v44  ;;  %10150 = vmatprep.subr.mxu1 %v5899_v53 }
 0x61b   : > { %10116 = vmatprep.mubr.msk.f32.mxu0 %vm823_vm2, %v12558_v32  ;;  %v5976_v1 = vsel %vm1119_vm4, %v5928_v20, %v5944_v18  ;;  %v12791_v20 = vld [vmem:[%s13184_s11 + $0x10] sm:$0xff] }
 0x61c   : > { %10100 = vmatmul.mubr.msk.f32.gmra.mxu1 %vm823_vm2, %v12657_v5  ;;  %v6641_v48 = vrot.slane %v5976_v1, 2  ;;  %v6523_v13 = vrot.slane %v5976_v1, 1  ;;  %13279 = vst [vmem:[#allocation10_spill] sm:$0xff] %v12791_v20 }
 0x61d   : > { %10102 = vmatprep.mubr.msk.f32.mxu1 %vm823_vm2, %v12664_v46 }
 0x61e   : > { %10117 = vmatmul.mubr.msk.f32.gmra.mxu0 %vm823_vm2, %v12564_v27 }
 0x61f   : > { %10119 = vmatprep.mubr.msk.f32.mxu0 %vm823_vm2, %v12593_v26 }
 0x620   : > { %10103 = vmatmul.mubr.msk.f32.gmra.mxu1 %vm823_vm2, %v6272_v29 }
 0x621   : > { %10105 = vmatprep.mubr.msk.f32.mxu1 %vm823_vm2, %v6275_v31 }
 0x622   : > { %10120 = vmatmul.mubr.msk.f32.gmra.mxu0 %vm823_vm2, %v5976_v1 }
 0x623   : > { %10138 = vmatprep.mubr.msk.f32.mxu0 %vm823_vm2, %v6263_v14 }
 0x624   : > { %10106 = vmatmul.mubr.msk.f32.gmra.mxu1 %vm823_vm2, %v6278_v54 }
 0x625   : > { %10124 = vmatprep.mubr.msk.f32.mxu1 %vm823_vm2, %v12528_v10  ;;  %v5984_v10 = vsel %vm1119_vm4, %v5944_v18, %v5960_v16 }
 0x626   : > { %10139 = vmatmul.mubr.msk.f32.vlgmr.msra.gmra.mxu0 %vm823_vm2, %v12623_v40  ;;  %v6642_v39 = vrot.slane %v5984_v10, 2  ;;  %v6524_v36 = vrot.slane %v5984_v10, 1 }
 0x627   : > { %10141 = vmatprep.mubr.msk.f32.mxu0 %vm823_vm2, %v12657_v5  ;;  %10165 = vmatpush3.msra.mxu0 %v5900_v9 }
 0x628   : > { %10125 = vmatmul.mubr.msk.f32.vlgmr.msra.gmra.mxu1 %vm823_vm2, %v12519_v6  ;;  %v6643_v34 = vsel %vm3683_vm5, %v6641_v48, %v6642_v39  ;;  %v6525_v57 = vsel %vm1437_vm3, %v6523_v13, %v6524_v36  ;;  %v12805_v39 = vld [vmem:[%s13184_s11 + $0x18] sm:$0xff] }
 0x629   : > { %10151 = vmatpush3.msra.mxu1 %v5899_v53  ;;  %10127 = vmatprep.mubr.msk.f32.mxu1 %vm823_vm2, %v12574_v43  ;;  %v5904_v53 = vld [vmem:[%s13184_s11 + $0x8] sm:$0xff]  ;;  %13280 = vst [vmem:[#allocation3_spill] sm:$0xff] %v12805_v39 }
 0x62a   : > { %10142 = vmatmul.mubr.msk.f32.gmra.mxu0 %vm823_vm2, %v12664_v46  ;;  %10178 = vmatprep.subr.mxu1 %v5901_v49 }
 0x62b   : > { %10144 = vmatprep.mubr.msk.f32.mxu0 %vm823_vm2, %v6272_v29  ;;  %10192 = vmatprep.subr.mxu0 %v5904_v53 }
 0x62c   : > { %10128 = vmatmul.mubr.msk.f32.gmra.mxu1 %vm823_vm2, %v12582_v62 }
 0x62d   : > { %10130 = vmatprep.mubr.msk.f32.mxu1 %vm823_vm2, %v12599_v2 }
 0x62e   : > { %10145 = vmatmul.mubr.msk.f32.gmra.mxu0 %vm823_vm2, %v6275_v31 }
 0x62f   : > { %10147 = vmatprep.mubr.msk.f32.mxu0 %vm823_vm2, %v6278_v54 }
 0x630   : > { %10131 = vmatmul.mubr.msk.f32.gmra.mxu1 %vm823_vm2, %v12605_v55 }
 0x631   : > { %10133 = vmatprep.mubr.msk.f32.mxu1 %vm823_vm2, %v12617_v37 }
 0x632   : > { %10148 = vmatmul.mubr.msk.f32.gmra.mxu0 %vm823_vm2, %v6643_v34 }
 0x633   : > { %10166 = vmatprep.mubr.msk.f32.mxu0 %vm823_vm2, %v12519_v6 }
 0x634   : > { %10134 = vmatmul.mubr.msk.f32.gmra.mxu1 %vm823_vm2, %v6525_v57 }
 0x635   : > { %10152 = vmatprep.mubr.msk.f32.mxu1 %vm823_vm2, %v12486_v56 }
 0x636   : > { %10167 = vmatmul.mubr.msk.f32.vlgmr.msra.gmra.mxu0 %vm823_vm2, %v12574_v43 }
 0x637   : > { %10169 = vmatprep.mubr.msk.f32.mxu0 %vm823_vm2, %v12582_v62  ;;  %10193 = vmatpush3.msra.mxu0 %v5904_v53 }
 0x638   : > { %10153 = vmatmul.mubr.msk.f32.vlgmr.msra.gmra.mxu1 %vm823_vm2, %v12513_v42  ;;  %10220 = vmatprep.subr.mxu0 %v12791_v20 }
 0x639   : > { %10179 = vmatpush3.msra.mxu1 %v5901_v49  ;;  %10155 = vmatprep.mubr.msk.f32.mxu1 %vm823_vm2, %v12542_v44 }
 0x63a   : > { %10170 = vmatmul.mubr.msk.f32.gmra.mxu0 %vm823_vm2, %v12599_v2  ;;  %10206 = vmatprep.subr.mxu1 %v5903_v38 }
 0x63b   : > { %10172 = vmatprep.mubr.msk.f32.mxu0 %vm823_vm2, %v12605_v55 }
 0x63c   : > { %10156 = vmatmul.mubr.msk.f32.gmra.mxu1 %vm823_vm2, %v12558_v32 }
 0x63d   : > { %10158 = vmatprep.mubr.msk.f32.mxu1 %vm823_vm2, %v12564_v27 }
 0x63e   : > { %10173 = vmatmul.mubr.msk.f32.gmra.mxu0 %vm823_vm2, %v12617_v37 }
 0x63f   : > { %10175 = vmatprep.mubr.msk.f32.mxu0 %vm823_vm2, %v6525_v57 }
 0x640   : > { %10159 = vmatmul.mubr.msk.f32.gmra.mxu1 %vm823_vm2, %v12593_v26 }
 0x641   : > { %10161 = vmatprep.mubr.msk.f32.mxu1 %vm823_vm2, %v5976_v1 }
 0x642   : > { %10176 = vmatmul.mubr.msk.f32.gmra.mxu0 %vm823_vm2, %v12617_v37 }
 0x644   : > { %10162 = vmatmul.mubr.msk.f32.gmra.mxu1 %vm823_vm2, %v12593_v26 }
 0x645   : > { %10180 = vmatprep.mubr.msk.f32.mxu1 %vm823_vm2, %v12623_v40 }
 0x648   : > { %10181 = vmatmul.mubr.msk.f32.vlgmr.msra.gmra.mxu1 %vm823_vm2, %v12657_v5 }
 0x649   : > { %10183 = vmatprep.mubr.msk.f32.mxu1 %vm823_vm2, %v12664_v46  ;;  %10207 = vmatpush3.msra.mxu1 %v5903_v38 }
 0x64a   : > { %10234 = vmatprep.subr.mxu1 %v12805_v39 }
 0x64c   : > { %10184 = vmatmul.mubr.msk.f32.gmra.mxu1 %vm823_vm2, %v6272_v29 }
 0x64d   : > { %10186 = vmatprep.mubr.msk.f32.mxu1 %vm823_vm2, %v6275_v31 }
 0x650   : > { %10187 = vmatmul.mubr.msk.f32.gmra.mxu1 %vm823_vm2, %v6278_v54 }
 0x651   : > { %10189 = vmatprep.mubr.msk.f32.mxu1 %vm823_vm2, %v6643_v34 }
 0x654   : > { %10190 = vmatmul.mubr.msk.f32.gmra.mxu1 %vm823_vm2, %v6278_v54 }
 0x6c5   : > { %v10084_v56 = vpop.f32.mrf.mxu0 }
 0x6c7   : > { %v6219_v42 = vpop.f32.mrf.mxu0 }
 0x6c8   : > { %v10070_v6 = vpop.f32.mrf.mxu1 }
 0x6c9   : > { %v6225_v48 = vadd.f32 %v10084_v56, %v10070_v6 }
 0x6ca   : > { %v10087_v44 = vpop.f32.mrf.mxu0  ;;  %v6100_v32 = vpop.f32.mrf.mxu1 }
 0x6cb   : > { %v6220_v36 = vadd.f32 %v6219_v42, %v6100_v32 }
 0x6cc   : > { %v6229_v27 = vpop.f32.mrf.mxu0  ;;  %v10073_v43 = vpop.f32.mrf.mxu1 }
 0x6cd   : > { %v6235_v38 = vadd.f32 %v10087_v44, %v10073_v43 }
 0x6ce   : > { %v12758_v62 = vpop.f32.mrf.mxu0  ;;  %v6110_v50 = vpop.f32.mrf.mxu1 }
 0x6cf   : > { %v6230_v30 = vadd.f32 %v6229_v27, %v6110_v50 }
 0x6d0   : > { %v12760_v4 = vpop.f32.mrf.mxu0  ;;  %v10076_v41 = vpop.f32.mrf.mxu1 }
 0x6d1   : > { %v6245_v6 = vadd.f32 %v12758_v62, %v10076_v41 }
 0x6d2   : > { %v12762_v58 = vpop.f32.mrf.mxu0  ;;  %v12764_v26 = vpop.f32.mrf.mxu1 }
 0x6d3   : > { %v6240_v39 = vadd.f32 %v12760_v4, %v12764_v26 }
 0x6d4   : > { %v12766_v61 = vpop.f32.mrf.mxu0  ;;  %v12768_v2 = vpop.f32.mrf.mxu1 }
 0x6d5   : > { %v6255_v27 = vadd.f32 %v12762_v58, %v12768_v2 }
 0x6d6   : > { %v10112_v7 = vpop.f32.mrf.mxu0  ;;  %v12770_v23 = vpop.f32.mrf.mxu1 }
 0x6d8   : > { %v6475_v55 = vpop.f32.mrf.mxu0  ;;  %v10098_v45 = vpop.f32.mrf.mxu1 }
 0x6d9   : > { %v6399_v34 = vadd.f32 %v10098_v45, %v6225_v48 }
 0x6da   : > { %v10115_v17 = vpop.f32.mrf.mxu0  ;;  %v6359_v25 = vpop.f32.mrf.mxu1 }
 0x6db   : > { %v6398_v12 = vadd.f32 %v6359_v25, %v6220_v36  ;;  %v6515_v3 = vadd.f32 %v10112_v7, %v6399_v34 }
 0x6dc   : > { %v12772_v37 = vpop.f32.mrf.mxu0  ;;  %v10101_v51 = vpop.f32.mrf.mxu1 }
 0x6dd   : > { %v6401_v59 = vadd.f32 %v10101_v51, %v6235_v38  ;;  %v6514_v20 = vadd.f32 %v6475_v55, %v6398_v12 }
 0x6de   : > { %v12774_v40 = vpop.f32.mrf.mxu0  ;;  %v6369_v60 = vpop.f32.mrf.mxu1 }
 0x6df   : > { %v6400_v47 = vadd.f32 %v6369_v60, %v6230_v30  ;;  %v6517_v48 = vadd.f32 %v10115_v17, %v6401_v59 }
 0x6e0   : > { %v12776_v9 = vpop.f32.mrf.mxu0  ;;  %v10104_v14 = vpop.f32.mrf.mxu1 }
 0x6e1   : > { %v6403_v32 = vadd.f32 %v10104_v14, %v6245_v6  ;;  %v6516_v25 = vadd.f32 %v12772_v37, %v6400_v47 }
 0x6e2   : > { %v12778_v52 = vpop.f32.mrf.mxu0  ;;  %v6379_v35 = vpop.f32.mrf.mxu1 }
 0x6e3   : > { %v6402_v43 = vadd.f32 %v6379_v35, %v6240_v39  ;;  %v6519_v41 = vadd.f32 %v12774_v40, %v6403_v32 }
 0x6e4   : > { %v12786_v63 = vpop.f32.mrf.mxu0  ;;  %v10107_v0 = vpop.f32.mrf.mxu1 }
 0x6e5   : > { %v6405_v30 = vadd.f32 %v10107_v0, %v6255_v27  ;;  %v6518_v58 = vadd.f32 %v12776_v9, %v6402_v43 }
 0x6e6   : > { %v10140_v5 = vpop.f32.mrf.mxu0  ;;  %v6389_v19 = vpop.f32.mrf.mxu1 }
 0x6e8   : > { %v6712_v33 = vpop.f32.mrf.mxu0  ;;  %v10126_v46 = vpop.f32.mrf.mxu1 }
 0x6e9   : > { %v6634_v11 = vadd.f32 %v10126_v46, %v6515_v3  ;;  %v6250_v3 = vadd.f32 %v12766_v61, %v12770_v23 }
 0x6ea   : > { %v10143_v8 = vpop.f32.mrf.mxu0  ;;  %v6594_v15 = vpop.f32.mrf.mxu1 }
 0x6eb   : > { %v6633_v45 = vadd.f32 %v6594_v15, %v6514_v20  ;;  %v6752_v62 = vadd.f32 %v10140_v5, %v6634_v11  ;;  %v6404_v17 = vadd.f32 %v6389_v19, %v6250_v3  ;;  %v6521_v11 = vadd.f32 %v12778_v52, %v6405_v30  ;;  %v8959_v52 = vld [vmem:[%s13183_s10] ss:$0 sm:$0xff] }
 0x6ec   : > { %v6722_v18 = vpop.f32.mrf.mxu0  ;;  %v10129_v29 = vpop.f32.mrf.mxu1 }
 0x6ed   : > { %v6636_v7 = vadd.f32 %v10129_v29, %v6517_v48  ;;  %v6751_v59 = vadd.f32 %v6712_v33, %v6633_v45  ;;  %v6520_v40 = vadd.f32 %v12786_v63, %v6404_v17 }
 0x6ee   : > { %v12794_v28 = vpop.f32.mrf.mxu0  ;;  %v6604_v22 = vpop.f32.mrf.mxu1 }
 0x6ef   : > { %v6635_v4 = vadd.f32 %v6604_v22, %v6516_v25  ;;  %v6754_v14 = vadd.f32 %v10143_v8, %v6636_v7 }
 0x6f0   : > { %v12796_v31 = vpop.f32.mrf.mxu0  ;;  %v10132_v1 = vpop.f32.mrf.mxu1 }
 0x6f1   : > { %v6638_v51 = vadd.f32 %v10132_v1, %v6519_v41  ;;  %v6753_v35 = vadd.f32 %v6722_v18, %v6635_v4 }
 0x6f2   : > { %v12798_v54 = vpop.f32.mrf.mxu0  ;;  %v6614_v16 = vpop.f32.mrf.mxu1 }
 0x6f3   : > { %v6637_v47 = vadd.f32 %v6614_v16, %v6518_v58  ;;  %v6756_v19 = vadd.f32 %v12794_v28, %v6638_v51 }
 0x6f4   : > { %v12800_v49 = vpop.f32.mrf.mxu0  ;;  %v10135_v10 = vpop.f32.mrf.mxu1 }
 0x6f5   : > { %v6640_v5 = vadd.f32 %v10135_v10, %v6521_v11 }
 0x6f6   : > { %v6624_v13 = vpop.f32.mrf.mxu1  ;;  %v10168_v57 = vpop.f32.mrf.mxu0 }
 0x6f7   : > { %v6639_v20 = vadd.f32 %v6624_v13, %v6520_v40  ;;  %v6758_v63 = vadd.f32 %v12798_v54, %v6640_v5 }
 0x6f8   : > { %v10154_v53 = vpop.f32.mrf.mxu1  ;;  %v6938_v21 = vpop.f32.mrf.mxu0 }
 0x6f9   : > { %v6865_v26 = vadd.f32 %v10154_v53, %v6752_v62  ;;  %v6757_v13 = vadd.f32 %v12800_v49, %v6639_v20 }
 0x6fa   : > { %v6825_v24 = vpop.f32.mrf.mxu1  ;;  %v10171_v44 = vpop.f32.mrf.mxu0 }
 0x6fb   : > { %v6864_v60 = vadd.f32 %v6825_v24, %v6751_v59  ;;  %v6978_v0 = vadd.f32 %v10168_v57, %v6865_v26  ;;  %v6755_v24 = vadd.f32 %v12796_v31, %v6637_v47 }
 0x6fc   : > { %v10157_v56 = vpop.f32.mrf.mxu1  ;;  %v6948_v55 = vpop.f32.mrf.mxu0 }
 0x6fd   : > { %v6867_v61 = vadd.f32 %v10157_v56, %v6754_v14  ;;  %v6977_v15 = vadd.f32 %v6938_v21, %v6864_v60 }
 0x6fe   : > { %v6835_v42 = vpop.f32.mrf.mxu1  ;;  %v10174_v23 = vpop.f32.mrf.mxu0 }
 0x6ff   : > { %v6866_v46 = vadd.f32 %v6835_v42, %v6753_v35  ;;  %v6980_v1 = vadd.f32 %v10171_v44, %v6867_v61 }
 0x700   : > { %v10160_v50 = vpop.f32.mrf.mxu1  ;;  %v6958_v29 = vpop.f32.mrf.mxu0 }
 0x701   : > { %v6869_v18 = vadd.f32 %v10160_v50, %v6756_v19  ;;  %v6979_v21 = vadd.f32 %v6948_v55, %v6866_v46 }
 0x702   : > { %v6845_v12 = vpop.f32.mrf.mxu1  ;;  %v10177_v34 = vpop.f32.mrf.mxu0 }
 0x703   : > { %v6868_v16 = vadd.f32 %v6845_v12, %v6755_v24  ;;  %v6982_v56 = vadd.f32 %v10174_v23, %v6869_v18 }
 0x704   : > { %v10163_v2 = vpop.f32.mrf.mxu1  ;;  %v6968_v50 = vpop.f32.mrf.mxu0 }
 0x705   : > { %v6871_v57 = vadd.f32 %v10163_v2, %v6758_v63  ;;  %v6981_v32 = vadd.f32 %v6958_v29, %v6868_v16 }
 0x706   : > { %v6855_v37 = vpop.f32.mrf.mxu1 }
 0x707   : > { %v6870_v6 = vadd.f32 %v6855_v37, %v6757_v13  ;;  %v6984_v25 = vadd.f32 %v10177_v34, %v6871_v57 }
 0x708   : > { %v10182_v33 = vpop.f32.mrf.mxu1 }
 0x709   : > { %v7091_v9 = vadd.f32 %v10182_v33, %v6978_v0  ;;  %v6983_v30 = vadd.f32 %v6968_v50, %v6870_v6 }
 0x70a   : > { %v7051_v8 = vpop.f32.mrf.mxu1 }
 0x70b   : > { %v7090_v22 = vadd.f32 %v7051_v8, %v6977_v15  ;;  %v7105_v39 = vadd.f32 %v8959_v52, %v7091_v9 }
 0x70c   : > { %v10185_v10 = vpop.f32.mrf.mxu1 }
 0x70d   : > { %v7104_v28 = vadd.f32 %v8959_v52, %v7090_v22  ;;  %v7093_v36 = vadd.f32 %v10185_v10, %v6980_v1  ;;  %v7113_v45 = vsel %vm823_vm2, %v7105_v39, 0.0 }
 0x70e   : > { %v7061_v31 = vpop.f32.mrf.mxu1 }
 0x70f   : > { %v7112_v53 = vsel %vm823_vm2, %v7104_v28, 0.0  ;;  %v7092_v38 = vadd.f32 %v7061_v31, %v6979_v21  ;;  %v7107_v54 = vadd.f32 %v8959_v52, %v7093_v36 }
 0x710   : > { %v10188_v42 = vpop.f32.mrf.mxu1  ;;  %v7114_v27 = vadd.f32 %v7113_v45, %v7112_v53 }
 0x711   : > { %v7106_v48 = vadd.f32 %v8959_v52, %v7092_v38  ;;  %v7095_v44 = vadd.f32 %v10188_v42, %v6982_v56  ;;  %v7117_v12 = vsel %vm823_vm2, %v7107_v54, 0.0 }
 0x712   : > { %v7071_v43 = vpop.f32.mrf.mxu1 }
 0x713   : > { %v7115_v49 = vsel %vm823_vm2, %v7106_v48, 0.0  ;;  %v7094_v7 = vadd.f32 %v7071_v43, %v6981_v32  ;;  %v7109_v4 = vadd.f32 %v8959_v52, %v7095_v44 }
 0x714   : > { %v7116_v62 = vadd.f32 %v7115_v49, %v7114_v27  ;;  %v10191_v3 = vpop.f32.mrf.mxu1 }
 0x715   : > { %v7108_v41 = vadd.f32 %v8959_v52, %v7094_v7  ;;  %v7097_v26 = vadd.f32 %v10191_v3, %v6984_v25  ;;  %v7121_v51 = vsel %vm823_vm2, %v7109_v4, 0.0 }
 0x716   : > { %v7118_v59 = vadd.f32 %v7117_v12, %v7116_v62  ;;  %v7081_v55 = vpop.f32.mrf.mxu1 }
 0x717   : > { %v7119_v17 = vsel %vm823_vm2, %v7108_v41, 0.0  ;;  %v7096_v58 = vadd.f32 %v7081_v55, %v6983_v30  ;;  %v7111_v60 = vadd.f32 %v8959_v52, %v7097_v26 }
 0x718   : > { %v7120_v2 = vadd.f32 %v7119_v17, %v7118_v59 }
 0x719   : > { %v7110_v14 = vadd.f32 %v8959_v52, %v7096_v58  ;;  %v7125_v61 = vsel %vm823_vm2, %v7111_v60, 0.0 }
 0x71a   : > { %v7122_v47 = vadd.f32 %v7121_v51, %v7120_v2 }
 0x71b   : > { %v7123_v11 = vsel %vm823_vm2, %v7110_v14, 0.0 }
 0x71c   : > { %v7124_v37 = vadd.f32 %v7123_v11, %v7122_v47 }
 0x71e   : > { %v7126_v23 = vadd.f32 %v7125_v61, %v7124_v37 }
 0x720   : > { %v7127_v35 = vrot.slane %v7126_v23, 4 }
 0x722   : > { %v7128_v0 = vadd.f32 %v7127_v35, %v7126_v23 }
 0x724   : > { %v7129_v5 = vrot.slane %v7128_v0, 2 }
 0x726   : > { %v7130_v40 = vadd.f32 %v7129_v5, %v7128_v0 }
 0x728   : > { %v7131_v33 = vrot.slane %v7130_v40, 1 }
 0x72a   : > { %v7132_v46 = vadd.f32 %v7131_v33, %v7130_v40 }
 0x72c   : > { %v7133_v19 = vmul.f32 0.015625, %v7132_v46 }
 0x72e   : > { %v7134_v9 = vsub.f32 %v7104_v28, %v7133_v19  ;;  %v7135_v15 = vsub.f32 %v7105_v39, %v7133_v19  ;;  %v7136_v20 = vsub.f32 %v7106_v48, %v7133_v19  ;;  %v7137_v24 = vsub.f32 %v7107_v54, %v7133_v19 }
 0x72f   : > { %v7138_v8 = vsub.f32 %v7108_v41, %v7133_v19  ;;  %v7139_v22 = vsub.f32 %v7109_v4, %v7133_v19  ;;  %v7140_v36 = vsub.f32 %v7110_v14, %v7133_v19  ;;  %v12838_v28 = vsub.f32 %v7111_v60, %v7133_v19 }
 0x730   : > { %v7142_v52 = vmul.f32 %v7134_v9, %v7134_v9  ;;  %v7143_v29 = vmul.f32 %v7135_v15, %v7135_v15  ;;  %v7144_v18 = vmul.f32 %v7136_v20, %v7136_v20  ;;  %v7145_v1 = vmul.f32 %v7137_v24, %v7137_v24 }
 0x731   : > { %v7146_v21 = vmul.f32 %v7138_v8, %v7138_v8  ;;  %v7147_v39 = vmul.f32 %v7139_v22, %v7139_v22  ;;  %v7148_v53 = vmul.f32 %v7140_v36, %v7140_v36  ;;  %v7149_v6 = vmul.f32 %v12838_v28, %v12838_v28 }
 0x732   : > { %v7150_v16 = vsel %vm823_vm2, %v7142_v52, 0.0  ;;  %v7151_v63 = vsel %vm823_vm2, %v7143_v29, 0.0  ;;  %v7153_v13 = vsel %vm823_vm2, %v7144_v18, 0.0  ;;  %v7155_v34 = vsel %vm823_vm2, %v7145_v1, 0.0  ;;  %v12878_v1 = vld [vmem:[%s13184_s11 + $0x28] sm:$0xff] }
 0x733   : > { %v7152_v10 = vadd.f32 %v7151_v63, %v7150_v16  ;;  %v7157_v38 = vsel %vm823_vm2, %v7146_v21, 0.0  ;;  %v7159_v42 = vsel %vm823_vm2, %v7147_v39, 0.0  ;;  %v7161_v45 = vsel %vm823_vm2, %v7148_v53, 0.0 }
 0x734   : > { %v7163_v48 = vsel %vm823_vm2, %v7149_v6, 0.0 }
 0x735   : > { %v7154_v31 = vadd.f32 %v7153_v13, %v7152_v10 }
 0x737   : > { %v7156_v57 = vadd.f32 %v7155_v34, %v7154_v31  ;;  %v13281_v34 = vld [vmem:[#allocation3_spill] sm:$0xff] }
 0x739   : > { %v7158_v56 = vadd.f32 %v7157_v38, %v7156_v57 }
 0x73b   : > { %v7160_v32 = vadd.f32 %v7159_v42, %v7158_v56 }
 0x73d   : > { %v7162_v54 = vadd.f32 %v7161_v45, %v7160_v32 }
 0x73f   : > { %v7164_v44 = vadd.f32 %v7163_v48, %v7162_v54 }
 0x741   : > { %v7165_v27 = vrot.slane %v7164_v44, 4 }
 0x743   : > { %v7166_v43 = vadd.f32 %v7165_v27, %v7164_v44 }
 0x745   : > { %v7167_v50 = vrot.slane %v7166_v43, 2 }
 0x747   : > { %v7168_v49 = vadd.f32 %v7167_v50, %v7166_v43  ;;  %v5907_v43 = vld [vmem:[%s13184_s11 + $0x20] sm:$0xff] }
 0x748   : > { %v13282_v50 = vld [vmem:[#allocation10_spill] sm:$0xff] }
 0x749   : > { %v7169_v7 = vrot.slane %v7168_v49, 1 }
 0x74b   : > { %v7170_v25 = vadd.f32 %v7169_v7, %v7168_v49 }
 0x74d   : > { %v7171_v62 = vmul.f32 0.015625, %v7170_v25 }
 0x74f   : > { %v7172_v3 = vadd.f32 1e-05, %v7171_v62 }
 0x751   : > { %10335 = vrsqrt.f32 %v7172_v3 }
 0x75e   : > { %v12847_v30 = vpop.eup %10335 }
 0x75f   : > { %v7180_v12 = vmul.f32 %v12847_v30, %v7140_v36  ;;  %v7175_v4 = vmul.f32 %v12847_v30, %v7135_v15  ;;  %v7174_v41 = vmul.f32 %v12847_v30, %v7134_v9  ;;  %v7176_v26 = vmul.f32 %v12847_v30, %v7136_v20 }
 0x760   : > { %v7177_v59 = vmul.f32 %v12847_v30, %v7137_v24  ;;  %v7178_v55 = vmul.f32 %v12847_v30, %v7138_v8  ;;  %v7179_v17 = vmul.f32 %v12847_v30, %v7139_v22 }
 0x761   : > { %v12856_v58 = vmax.f32 %v7180_v12, 0.0  ;;  %v7183_v2 = vmax.f32 %v7175_v4, 0.0  ;;  %v7182_v51 = vmax.f32 %v7174_v41, 0.0  ;;  %v7184_v60 = vmax.f32 %v7176_v26, 0.0 }
 0x762   : > { %v7185_v14 = vmax.f32 %v7177_v59, 0.0  ;;  %v7186_v47 = vmax.f32 %v7178_v55, 0.0  ;;  %v7187_v23 = vmax.f32 %v7179_v17, 0.0 }
 0x763   : > { %v7204_v11 = vrot.slane %v12856_v58, 1  ;;  %v7220_v37 = vrot.slane %v12856_v58, 7  ;;  %v7198_v61 = vrot.slane %v7183_v2, 1  ;;  %v7214_v35 = vrot.slane %v7183_v2, 7 }
 0x764   : > { %v7199_v0 = vrot.slane %v7182_v51, 1  ;;  %v7215_v5 = vrot.slane %v7182_v51, 7  ;;  %v7230_v40 = vrot.slane %v7183_v2, 5  ;;  %v7231_v33 = vrot.slane %v7182_v51, 5 }
 0x765   : > { %v7200_v46 = vrot.slane %v7184_v60, 1  ;;  %v7216_v19 = vrot.slane %v7184_v60, 7  ;;  %v7201_v9 = vrot.slane %v7185_v14, 1  ;;  %v12861_v15 = vsel %vm1119_vm4, %v7198_v61, %v7214_v35 }
 0x766   : > { %v12864_v20 = vsel %vm1119_vm4, %v7199_v0, %v7215_v5  ;;  %v12867_v24 = vsel %vm1119_vm4, %v7214_v35, %v7230_v40  ;;  %v7217_v8 = vrot.slane %v7185_v14, 7  ;;  %v7236_v52 = vrot.slane %v12856_v58, 5  ;;  %10208 = vmatprep.mubr.msk.f32.mxu1 %vm823_vm2, %v12861_v15  ;;  %v5910_v0 = vld [vmem:[%s13184_s11 + $0x38] sm:$0xff] }
 0x767   : > { %v7279_v29 = vrot.slane %v12864_v20, 1  ;;  %v7276_v18 = vrot.slane %v12861_v15, 1  ;;  %v7277_v22 = vrot.slane %v12867_v24, 1  ;;  %10209 = vmatmul.mubr.msk.f32.vlgmr.msra.gmra.mxu1 %vm823_vm2, %v12864_v20  ;;  %v12883_v16 = vsel %vm1119_vm4, %v7215_v5, %v7231_v33  ;;  %v5909_v33 = vld [vmem:[%s13184_s11 + $0x30] sm:$0xff] }
 0x768   : > { %v12886_v63 = vsel %vm1119_vm4, %v7200_v46, %v7216_v19  ;;  %v12889_v10 = vsel %vm1119_vm4, %v7201_v9, %v7217_v8  ;;  %v7232_v36 = vrot.slane %v7184_v60, 5  ;;  %10211 = vmatprep.mubr.msk.f32.mxu1 %vm823_vm2, %v12861_v15  ;;  %v7280_v13 = vrot.slane %v12883_v16, 1  ;;  %10235 = vmatpush3.msra.mxu1 %v13281_v34 }
 0x769   : > { %v12894_v21 = vsel %vm1437_vm3, %v7276_v18, %v7277_v22  ;;  %v7282_v31 = vrot.slane %v12886_v63, 1  ;;  %v7233_v39 = vrot.slane %v7185_v14, 5  ;;  %v7285_v53 = vrot.slane %v12889_v10, 1  ;;  %10262 = vmatprep.subr.mxu1 %v12878_v1 }
 0x76a   : > { %10194 = vmatprep.mubr.msk.f32.mxu0 %vm823_vm2, %v12894_v21  ;;  %v12902_v57 = vsel %vm1119_vm4, %v7216_v19, %v7232_v36  ;;  %v7202_v38 = vrot.slane %v7186_v47, 1  ;;  %v7218_v56 = vrot.slane %v7186_v47, 7  ;;  %v12907_v6 = vsel %vm1437_vm3, %v7279_v29, %v7280_v13 }
 0x76b   : > { %v7283_v42 = vrot.slane %v12902_v57, 1  ;;  %v12911_v32 = vsel %vm1119_vm4, %v7217_v8, %v7233_v39  ;;  %v7203_v45 = vrot.slane %v7187_v23, 1  ;;  %10195 = vmatmul.mubr.msk.f32.vlgmr.msra.gmra.mxu0 %vm823_vm2, %v12907_v6  ;;  %10212 = vmatmul.mubr.msk.f32.gmra.mxu1 %vm823_vm2, %v12886_v63  ;;  %v7219_v44 = vrot.slane %v7187_v23, 7 }
 0x76c   : > { %v7286_v54 = vrot.slane %v12911_v32, 1  ;;  %v12919_v48 = vsel %vm1119_vm4, %v7202_v38, %v7218_v56  ;;  %v7234_v27 = vrot.slane %v7186_v47, 5  ;;  %10221 = vmatpush3.msra.mxu0 %v13282_v50  ;;  %10197 = vmatprep.mubr.msk.f32.mxu0 %vm823_vm2, %v12894_v21  ;;  %v7235_v49 = vrot.slane %v7187_v23, 5 }
 0x76d   : > { %10214 = vmatprep.mubr.msk.f32.mxu1 %vm823_vm2, %v12889_v10  ;;  %v12930_v7 = vsel %vm1437_vm3, %v7282_v31, %v7283_v42  ;;  %v12933_v25 = vsel %vm1119_vm4, %v7203_v45, %v7219_v44  ;;  %v7288_v3 = vrot.slane %v12919_v48, 1  ;;  %v12946_v41 = vsel %vm1119_vm4, %v7204_v11, %v7220_v37  ;;  %10248 = vmatprep.subr.mxu0 %v5907_v43 }
 0x76e   : > { %v12936_v62 = vsel %vm1119_vm4, %v7218_v56, %v7234_v27  ;;  %v12941_v4 = vsel %vm1119_vm4, %v7219_v44, %v7235_v49  ;;  %v12951_v26 = vsel %vm1437_vm3, %v7285_v53, %v7286_v54  ;;  %v7291_v59 = vrot.slane %v12933_v25, 1 }
 0x76f   : > { %v7289_v12 = vrot.slane %v12936_v62, 1  ;;  %10198 = vmatmul.mubr.msk.f32.gmra.mxu0 %vm823_vm2, %v12930_v7  ;;  %10215 = vmatmul.mubr.msk.f32.gmra.mxu1 %vm823_vm2, %v12919_v48  ;;  %v7292_v55 = vrot.slane %v12941_v4, 1  ;;  %v7260_v17 = vsel %vm1119_vm4, %v7220_v37, %v7236_v52  ;;  %v7294_v51 = vrot.slane %v12946_v41, 1 }
 0x770   : > { %10200 = vmatprep.mubr.msk.f32.mxu0 %vm823_vm2, %v12951_v26  ;;  %10217 = vmatprep.mubr.msk.f32.mxu1 %vm823_vm2, %v12933_v25  ;;  %v7295_v60 = vrot.slane %v7260_v17, 1  ;;  %v7535_v58 = vrot.slane %v12861_v15, 2  ;;  %v7536_v47 = vrot.slane %v12867_v24, 2  ;;  %v7538_v11 = vrot.slane %v12864_v20, 2 }
 0x771   : > { %v12965_v2 = vsel %vm1437_vm3, %v7288_v3, %v7289_v12  ;;  %v12971_v14 = vsel %vm1437_vm3, %v7291_v59, %v7292_v55  ;;  %v7539_v61 = vrot.slane %v12883_v16, 2  ;;  %v7181_v23 = vmul.f32 %v12847_v30, %v12838_v28 }
 0x772   : > { %v12983_v37 = vsel %vm1437_vm3, %v7294_v51, %v7295_v60  ;;  %v12991_v35 = vsel %vm3683_vm5, %v7535_v58, %v7536_v47  ;;  %v7541_v28 = vrot.slane %v12886_v63, 2  ;;  %v7542_v30 = vrot.slane %v12902_v57, 2  ;;  %v5911_v57 = vld [vmem:[%s13184_s11 + $0x40] sm:$0xff] }
 0x773   : > { %10201 = vmatmul.mubr.msk.f32.gmra.mxu0 %vm823_vm2, %v12965_v2  ;;  %10218 = vmatmul.mubr.msk.f32.gmra.mxu1 %vm823_vm2, %v12946_v41  ;;  %v7540_v5 = vsel %vm3683_vm5, %v7538_v11, %v7539_v61  ;;  %v7189_v40 = vmax.f32 %v7181_v23, 0.0  ;;  %v7544_v46 = vrot.slane %v12889_v10, 2  ;;  %v7545_v19 = vrot.slane %v12911_v32, 2 }
 0x774   : > { %10203 = vmatprep.mubr.msk.f32.mxu0 %vm823_vm2, %v12971_v14  ;;  %10236 = vmatprep.mubr.msk.f32.mxu1 %vm823_vm2, %v12864_v20  ;;  %v13019_v9 = vsel %vm3683_vm5, %v7541_v28, %v7542_v30  ;;  %v7547_v20 = vrot.slane %v12919_v48, 2  ;;  %v7548_v24 = vrot.slane %v12936_v62, 2  ;;  %v7550_v18 = vrot.slane %v12933_v25, 2 }
 0x775   : > { %v7205_v8 = vrot.slane %v7189_v40, 1  ;;  %v7221_v52 = vrot.slane %v7189_v40, 7  ;;  %v13026_v29 = vsel %vm3683_vm5, %v7544_v46, %v7545_v19  ;;  %v7551_v22 = vrot.slane %v12941_v4, 2 }
 0x776   : > { %v7553_v36 = vrot.slane %v12946_v41, 2  ;;  %v7554_v13 = vrot.slane %v7260_v17, 2  ;;  %v7237_v34 = vrot.slane %v7189_v40, 5 }
 0x777   : > { %10204 = vmatmul.mubr.msk.f32.gmra.mxu0 %vm823_vm2, %v12983_v37  ;;  %10237 = vmatmul.mubr.msk.f32.vlgmr.msra.gmra.mxu1 %vm823_vm2, %v12861_v15  ;;  %v7253_v16 = vsel %vm1119_vm4, %v7205_v8, %v7221_v52  ;;  %v7552_v31 = vsel %vm3683_vm5, %v7550_v18, %v7551_v22 }
 0x778   : > { %10222 = vmatprep.mubr.msk.f32.mxu0 %vm823_vm2, %v12991_v35  ;;  %10239 = vmatprep.mubr.msk.f32.mxu1 %vm823_vm2, %v12886_v63  ;;  %v7555_v39 = vsel %vm3683_vm5, %v7553_v36, %v7554_v13  ;;  %v7261_v53 = vsel %vm1119_vm4, %v7221_v52, %v7237_v34  ;;  %v7918_v38 = vrot.slane %v7253_v16, 2 }
 0x779   : > { %10263 = vmatpush3.msra.mxu1 %v12878_v1  ;;  %v7549_v1 = vsel %vm3683_vm5, %v7547_v20, %v7548_v24  ;;  %v7919_v56 = vrot.slane %v7261_v53, 2  ;;  %v7801_v32 = vrot.slane %v7261_v53, 1 }
 0x77a   : > { %10290 = vmatprep.subr.mxu1 %v5910_v0 }
 0x77b   : > { %10223 = vmatmul.mubr.msk.f32.vlgmr.msra.gmra.mxu0 %vm823_vm2, %v7540_v5  ;;  %10240 = vmatmul.mubr.msk.f32.gmra.mxu1 %vm823_vm2, %v12889_v10  ;;  %v7920_v42 = vsel %vm3683_vm5, %v7918_v38, %v7919_v56 }
 0x77c   : > { %10249 = vmatpush3.msra.mxu0 %v5907_v43  ;;  %10225 = vmatprep.mubr.msk.f32.mxu0 %vm823_vm2, %v12991_v35 }
 0x77d   : > { %10242 = vmatprep.mubr.msk.f32.mxu1 %vm823_vm2, %v12919_v48  ;;  %10276 = vmatprep.subr.mxu0 %v5909_v33 }
 0x77f   : > { %10226 = vmatmul.mubr.msk.f32.gmra.mxu0 %vm823_vm2, %v13019_v9  ;;  %10243 = vmatmul.mubr.msk.f32.gmra.mxu1 %vm823_vm2, %v12933_v25 }
 0x780   : > { %10228 = vmatprep.mubr.msk.f32.mxu0 %vm823_vm2, %v13026_v29  ;;  %10245 = vmatprep.mubr.msk.f32.mxu1 %vm823_vm2, %v12946_v41 }
 0x783   : > { %10229 = vmatmul.mubr.msk.f32.gmra.mxu0 %vm823_vm2, %v7549_v1  ;;  %10246 = vmatmul.mubr.msk.f32.gmra.mxu1 %vm823_vm2, %v7253_v16 }
 0x784   : > { %10231 = vmatprep.mubr.msk.f32.mxu0 %vm823_vm2, %v7552_v31  ;;  %10264 = vmatprep.mubr.msk.f32.mxu1 %vm823_vm2, %v7540_v5 }
 0x787   : > { %10232 = vmatmul.mubr.msk.f32.gmra.mxu0 %vm823_vm2, %v7555_v39  ;;  %10265 = vmatmul.mubr.msk.f32.vlgmr.msra.gmra.mxu1 %vm823_vm2, %v12991_v35 }
 0x788   : > { %10250 = vmatprep.mubr.msk.f32.mxu0 %vm823_vm2, %v12907_v6  ;;  %10267 = vmatprep.mubr.msk.f32.mxu1 %vm823_vm2, %v13019_v9  ;;  %v7800_v6 = vrot.slane %v7253_v16, 1 }
 0x789   : > { %10291 = vmatpush3.msra.mxu1 %v5910_v0 }
 0x78a   : > { %v7802_v45 = vsel %vm1437_vm3, %v7800_v6, %v7801_v32 }
 0x78b   : > { %10251 = vmatmul.mubr.msk.f32.vlgmr.msra.gmra.mxu0 %vm823_vm2, %v12894_v21  ;;  %10268 = vmatmul.mubr.msk.f32.gmra.mxu1 %vm823_vm2, %v13026_v29 }
 0x78c   : > { %10277 = vmatpush3.msra.mxu0 %v5909_v33  ;;  %10253 = vmatprep.mubr.msk.f32.mxu0 %vm823_vm2, %v12930_v7 }
 0x78d   : > { %10270 = vmatprep.mubr.msk.f32.mxu1 %vm823_vm2, %v7549_v1  ;;  %10304 = vmatprep.subr.mxu0 %v5911_v57 }
 0x78f   : > { %10254 = vmatmul.mubr.msk.f32.gmra.mxu0 %vm823_vm2, %v12951_v26  ;;  %10271 = vmatmul.mubr.msk.f32.gmra.mxu1 %vm823_vm2, %v7552_v31 }
 0x790   : > { %10256 = vmatprep.mubr.msk.f32.mxu0 %vm823_vm2, %v12965_v2  ;;  %10273 = vmatprep.mubr.msk.f32.mxu1 %vm823_vm2, %v7555_v39 }
 0x793   : > { %10257 = vmatmul.mubr.msk.f32.gmra.mxu0 %vm823_vm2, %v12971_v14  ;;  %10274 = vmatmul.mubr.msk.f32.gmra.mxu1 %vm823_vm2, %v7920_v42 }
 0x794   : > { %10259 = vmatprep.mubr.msk.f32.mxu0 %vm823_vm2, %v12983_v37  ;;  %10292 = vmatprep.mubr.msk.f32.mxu1 %vm823_vm2, %v12894_v21 }
 0x797   : > { %10260 = vmatmul.mubr.msk.f32.gmra.mxu0 %vm823_vm2, %v7802_v45  ;;  %10293 = vmatmul.mubr.msk.f32.vlgmr.msra.gmra.mxu1 %vm823_vm2, %v12930_v7 }
 0x798   : > { %10278 = vmatprep.mubr.msk.f32.mxu0 %vm823_vm2, %v12861_v15  ;;  %10295 = vmatprep.mubr.msk.f32.mxu1 %vm823_vm2, %v12951_v26 }
 0x79b   : > { %10279 = vmatmul.mubr.msk.f32.vlgmr.msra.gmra.mxu0 %vm823_vm2, %v12886_v63  ;;  %10296 = vmatmul.mubr.msk.f32.gmra.mxu1 %vm823_vm2, %v12965_v2 }
 0x79c   : > { %10305 = vmatpush3.msra.mxu0 %v5911_v57  ;;  %10281 = vmatprep.mubr.msk.f32.mxu0 %vm823_vm2, %v12889_v10 }
 0x79d   : > { %10298 = vmatprep.mubr.msk.f32.mxu1 %vm823_vm2, %v12971_v14 }
 0x79f   : > { %10282 = vmatmul.mubr.msk.f32.gmra.mxu0 %vm823_vm2, %v12919_v48  ;;  %10299 = vmatmul.mubr.msk.f32.gmra.mxu1 %vm823_vm2, %v12983_v37 }
 0x7a0   : > { %10284 = vmatprep.mubr.msk.f32.mxu0 %vm823_vm2, %v12933_v25  ;;  %10301 = vmatprep.mubr.msk.f32.mxu1 %vm823_vm2, %v7802_v45 }
 0x7a3   : > { %10285 = vmatmul.mubr.msk.f32.gmra.mxu0 %vm823_vm2, %v12946_v41  ;;  %10302 = vmatmul.mubr.msk.f32.gmra.mxu1 %vm823_vm2, %v12983_v37 }
 0x7a4   : > { %10287 = vmatprep.mubr.msk.f32.mxu0 %vm823_vm2, %v7253_v16 }
 0x7a7   : > { %10288 = vmatmul.mubr.msk.f32.gmra.mxu0 %vm823_vm2, %v12946_v41 }
 0x7a8   : > { %10306 = vmatprep.mubr.msk.f32.mxu0 %vm823_vm2, %v12991_v35 }
 0x7ab   : > { %10307 = vmatmul.mubr.msk.f32.vlgmr.msra.gmra.mxu0 %vm823_vm2, %v13019_v9 }
 0x7ac   : > { %10309 = vmatprep.mubr.msk.f32.mxu0 %vm823_vm2, %v13026_v29 }
 0x7af   : > { %10310 = vmatmul.mubr.msk.f32.gmra.mxu0 %vm823_vm2, %v7549_v1 }
 0x7b0   : > { %10312 = vmatprep.mubr.msk.f32.mxu0 %vm823_vm2, %v7552_v31 }
 0x7b3   : > { %10313 = vmatmul.mubr.msk.f32.gmra.mxu0 %vm823_vm2, %v7555_v39 }
 0x7b4   : > { %10315 = vmatprep.mubr.msk.f32.mxu0 %vm823_vm2, %v7920_v42 }
 0x7b7   : > { %10316 = vmatmul.mubr.msk.f32.gmra.mxu0 %vm823_vm2, %v7555_v39 }
 0x827   : > { %v10210_v15 = vpop.f32.mrf.mxu1 }
 0x829   : > { %v7496_v63 = vpop.f32.mrf.mxu1 }
 0x82b   : > { %v10196_v10 = vpop.f32.mrf.mxu0  ;;  %v10213_v21 = vpop.f32.mrf.mxu1 }
 0x82c   : > { %v7502_v18 = vadd.f32 %v10210_v15, %v10196_v10 }
 0x82d   : > { %v7377_v54 = vpop.f32.mrf.mxu0  ;;  %v7506_v48 = vpop.f32.mrf.mxu1 }
 0x82e   : > { %v7497_v1 = vadd.f32 %v7496_v63, %v7377_v54 }
 0x82f   : > { %v10199_v44 = vpop.f32.mrf.mxu0  ;;  %v10216_v27 = vpop.f32.mrf.mxu1 }
 0x830   : > { %v7512_v31 = vadd.f32 %v10213_v21, %v10199_v44 }
 0x831   : > { %v7387_v43 = vpop.f32.mrf.mxu0  ;;  %v7516_v50 = vpop.f32.mrf.mxu1 }
 0x832   : > { %v7507_v57 = vadd.f32 %v7506_v48, %v7387_v43 }
 0x833   : > { %v10202_v49 = vpop.f32.mrf.mxu0  ;;  %v10219_v7 = vpop.f32.mrf.mxu1 }
 0x834   : > { %v7522_v42 = vadd.f32 %v10216_v27, %v10202_v49 }
 0x835   : > { %v7397_v25 = vpop.f32.mrf.mxu0  ;;  %v13118_v62 = vpop.f32.mrf.mxu1 }
 0x837   : > { %v10205_v3 = vpop.f32.mrf.mxu0  ;;  %v10238_v12 = vpop.f32.mrf.mxu1 }
 0x839   : > { %v7407_v4 = vpop.f32.mrf.mxu0  ;;  %v7752_v41 = vpop.f32.mrf.mxu1 }
 0x83a   : > { %v7527_v43 = vadd.f32 %v13118_v62, %v7407_v4 }
 0x83b   : > { %v10224_v26 = vpop.f32.mrf.mxu0  ;;  %v10241_v59 = vpop.f32.mrf.mxu1 }
 0x83c   : > { %v7676_v16 = vadd.f32 %v10224_v26, %v7502_v18  ;;  %v7532_v26 = vadd.f32 %v10219_v7, %v10205_v3 }
 0x83d   : > { %v7636_v55 = vpop.f32.mrf.mxu0  ;;  %v7762_v17 = vpop.f32.mrf.mxu1 }
 0x83e   : > { %v7675_v39 = vadd.f32 %v7636_v55, %v7497_v1  ;;  %v7792_v38 = vadd.f32 %v10238_v12, %v7676_v16 }
 0x83f   : > { %v10227_v2 = vpop.f32.mrf.mxu0  ;;  %v10244_v51 = vpop.f32.mrf.mxu1 }
 0x840   : > { %v7678_v53 = vadd.f32 %v10227_v2, %v7512_v31 }
 0x841   : > { %v7646_v60 = vpop.f32.mrf.mxu0  ;;  %v7772_v14 = vpop.f32.mrf.mxu1 }
 0x842   : > { %v7677_v32 = vadd.f32 %v7646_v60, %v7507_v57  ;;  %v7794_v63 = vadd.f32 %v10241_v59, %v7678_v53 }
 0x843   : > { %v10230_v58 = vpop.f32.mrf.mxu0  ;;  %v13120_v47 = vpop.f32.mrf.mxu1 }
 0x844   : > { %v7680_v15 = vadd.f32 %v10230_v58, %v7522_v42  ;;  %v7793_v55 = vadd.f32 %v7762_v17, %v7677_v32 }
 0x845   : > { %v7656_v11 = vpop.f32.mrf.mxu0  ;;  %v13122_v37 = vpop.f32.mrf.mxu1 }
 0x846   : > { %v7796_v49 = vadd.f32 %v10244_v51, %v7680_v15 }
 0x847   : > { %v10233_v61 = vpop.f32.mrf.mxu0  ;;  %v10266_v23 = vpop.f32.mrf.mxu1 }
 0x848   : > { %v7682_v12 = vadd.f32 %v10233_v61, %v7532_v26 }
 0x849   : > { %v7666_v35 = vpop.f32.mrf.mxu0  ;;  %v7989_v0 = vpop.f32.mrf.mxu1 }
 0x84b   : > { %v10252_v28 = vpop.f32.mrf.mxu0  ;;  %v10269_v30 = vpop.f32.mrf.mxu1 }
 0x84c   : > { %v7911_v45 = vadd.f32 %v10252_v28, %v7792_v38 }
 0x84d   : > { %v7871_v5 = vpop.f32.mrf.mxu0  ;;  %v7999_v40 = vpop.f32.mrf.mxu1 }
 0x84e   : > { %v8029_v48 = vadd.f32 %v10266_v23, %v7911_v45 }
 0x84f   : > { %v10255_v33 = vpop.f32.mrf.mxu0  ;;  %v13124_v46 = vpop.f32.mrf.mxu1 }
 0x850   : > { %v7913_v44 = vadd.f32 %v10255_v33, %v7794_v63 }
 0x851   : > { %v7881_v19 = vpop.f32.mrf.mxu0  ;;  %v13126_v9 = vpop.f32.mrf.mxu1 }
 0x852   : > { %13283 = vst [vmem:[#allocation7_spill] sm:$0xff] %v13126_v9  ;;  %v7912_v27 = vadd.f32 %v7881_v19, %v7793_v55  ;;  %v8031_v7 = vadd.f32 %v10269_v30, %v7913_v44 }
 0x853   : > { %v10258_v20 = vpop.f32.mrf.mxu0  ;;  %v13128_v24 = vpop.f32.mrf.mxu1 }
 0x854   : > { %13284 = vst [vmem:[#allocation18_spill] sm:$0xff] %v13128_v24  ;;  %v7791_v24 = vadd.f32 %v7752_v41, %v7675_v39  ;;  %v7915_v59 = vadd.f32 %v10258_v20, %v7796_v49  ;;  %v8030_v62 = vadd.f32 %v7999_v40, %v7912_v27 }
 0x855   : > { %v7891_v8 = vpop.f32.mrf.mxu0  ;;  %v13130_v52 = vpop.f32.mrf.mxu1 }
 0x856   : > { %13285 = vst [vmem:[#allocation2_spill] sm:$0xff] %v13130_v52  ;;  %v7517_v52 = vadd.f32 %v7516_v50, %v7397_v25  ;;  %v7910_v10 = vadd.f32 %v7871_v5, %v7791_v24  ;;  %v7681_v25 = vadd.f32 %v7666_v35, %v7527_v43  ;;  %v8033_v35 = vadd.f32 %v13124_v46, %v7915_v59 }
 0x857   : > { %v10261_v29 = vpop.f32.mrf.mxu0  ;;  %v10294_v36 = vpop.f32.mrf.mxu1 }
 0x858   : > { %v7679_v18 = vadd.f32 %v7656_v11, %v7517_v52  ;;  %v8028_v41 = vadd.f32 %v7989_v0, %v7910_v10  ;;  %v7798_v11 = vadd.f32 %v13120_v47, %v7682_v12  ;;  %v7797_v51 = vadd.f32 %v13122_v37, %v7681_v25  ;;  %v9032_v47 = vld [vmem:[%s13185_s12] ss:$0 sm:$0xff] }
 0x859   : > { %v7901_v22 = vpop.f32.mrf.mxu0  ;;  %v8215_v56 = vpop.f32.mrf.mxu1  ;;  %v13286_v52 = vld [vmem:[#allocation7_spill] sm:$0xff] }
 0x85a   : > { %v7795_v58 = vadd.f32 %v7772_v14, %v7679_v18  ;;  %v7917_v61 = vadd.f32 %v10261_v29, %v7798_v11  ;;  %v7916_v20 = vadd.f32 %v7901_v22, %v7797_v51 }
 0x85b   : > { %v10280_v13 = vpop.f32.mrf.mxu0  ;;  %v10297_v54 = vpop.f32.mrf.mxu1  ;;  %v13287_v37 = vld [vmem:[#allocation18_spill] sm:$0xff] }
 0x85c   : > { %v8142_v60 = vadd.f32 %v10280_v13, %v8029_v48  ;;  %v7914_v3 = vadd.f32 %v7891_v8, %v7795_v58  ;;  %v8035_v13 = vadd.f32 %v13287_v37, %v7917_v61 }
 0x85d   : > { %v8102_v34 = vpop.f32.mrf.mxu0  ;;  %v8225_v50 = vpop.f32.mrf.mxu1  ;;  %v13288_v22 = vld [vmem:[#allocation2_spill] sm:$0xff] }
 0x85e   : > { %v8141_v5 = vadd.f32 %v8102_v34, %v8028_v41  ;;  %v8255_v4 = vadd.f32 %v10294_v36, %v8142_v60  ;;  %v8032_v30 = vadd.f32 %v13286_v52, %v7914_v3  ;;  %v8034_v57 = vadd.f32 %v13288_v22, %v7916_v20 }
 0x85f   : > { %v10283_v6 = vpop.f32.mrf.mxu0  ;;  %v10300_v33 = vpop.f32.mrf.mxu1 }
 0x860   : > { %v8144_v23 = vadd.f32 %v10283_v6, %v8031_v7  ;;  %v8254_v24 = vadd.f32 %v8215_v56, %v8141_v5 }
 0x861   : > { %v8112_v9 = vpop.f32.mrf.mxu0  ;;  %v8235_v1 = vpop.f32.mrf.mxu1 }
 0x862   : > { %v8143_v0 = vadd.f32 %v8112_v9, %v8030_v62  ;;  %v8257_v29 = vadd.f32 %v10297_v54, %v8144_v23 }
 0x863   : > { %v10286_v21 = vpop.f32.mrf.mxu0  ;;  %v10303_v38 = vpop.f32.mrf.mxu1 }
 0x864   : > { %v8146_v40 = vadd.f32 %v10286_v21, %v8033_v35  ;;  %v8256_v34 = vadd.f32 %v8225_v50, %v8143_v0 }
 0x865   : > { %v8122_v2 = vpop.f32.mrf.mxu0  ;;  %v8245_v55 = vpop.f32.mrf.mxu1 }
 0x866   : > { %v8145_v36 = vadd.f32 %v8122_v2, %v8032_v30  ;;  %v8259_v32 = vadd.f32 %v10300_v33, %v8146_v40 }
 0x867   : > { %v10289_v28 = vpop.f32.mrf.mxu0 }
 0x868   : > { %v8148_v56 = vadd.f32 %v10289_v28, %v8035_v13  ;;  %v8258_v10 = vadd.f32 %v8235_v1, %v8145_v36 }
 0x869   : > { %v8132_v17 = vpop.f32.mrf.mxu0 }
 0x86a   : > { %v8147_v45 = vadd.f32 %v8132_v17, %v8034_v57  ;;  %v8261_v12 = vadd.f32 %v10303_v38, %v8148_v56 }
 0x86b   : > { %v10308_v19 = vpop.f32.mrf.mxu0 }
 0x86c   : > { %v8368_v14 = vadd.f32 %v10308_v19, %v8255_v4  ;;  %v8260_v49 = vadd.f32 %v8245_v55, %v8147_v45 }
 0x86d   : > { %v8328_v8 = vpop.f32.mrf.mxu0 }
 0x86e   : > { %v8367_v16 = vadd.f32 %v8328_v8, %v8254_v24  ;;  %v8382_v31 = vadd.f32 %v9032_v47, %v8368_v14 }
 0x86f   : > { %v10311_v9 = vpop.f32.mrf.mxu0 }
 0x870   : > { %v8381_v46 = vadd.f32 %v9032_v47, %v8367_v16  ;;  %v8370_v39 = vadd.f32 %v10311_v9, %v8257_v29  ;;  %v8390_v63 = vsel %vm823_vm2, %v8382_v31, 0.0 }
 0x871   : > { %v8338_v53 = vpop.f32.mrf.mxu0 }
 0x872   : > { %v8389_v6 = vsel %vm823_vm2, %v8381_v46, 0.0  ;;  %v8369_v42 = vadd.f32 %v8338_v53, %v8256_v34  ;;  %v8384_v54 = vadd.f32 %v9032_v47, %v8370_v39 }
 0x873   : > { %v10314_v15 = vpop.f32.mrf.mxu0  ;;  %v8391_v21 = vadd.f32 %v8390_v63, %v8389_v6 }
 0x874   : > { %v8383_v26 = vadd.f32 %v9032_v47, %v8369_v42  ;;  %v8372_v18 = vadd.f32 %v10314_v15, %v8259_v32  ;;  %v8394_v60 = vsel %vm823_vm2, %v8384_v54, 0.0 }
 0x875   : > { %v8348_v44 = vpop.f32.mrf.mxu0 }
 0x876   : > { %v8392_v48 = vsel %vm823_vm2, %v8383_v26, 0.0  ;;  %v8371_v43 = vadd.f32 %v8348_v44, %v8258_v10  ;;  %v8386_v41 = vadd.f32 %v9032_v47, %v8372_v18 }
 0x877   : > { %v8393_v2 = vadd.f32 %v8392_v48, %v8391_v21  ;;  %v10317_v27 = vpop.f32.mrf.mxu0 }
 0x878   : > { %v8385_v50 = vadd.f32 %v9032_v47, %v8371_v43  ;;  %v8374_v25 = vadd.f32 %v10317_v27, %v8261_v12  ;;  %v8398_v3 = vsel %vm823_vm2, %v8386_v41, 0.0 }
 0x879   : > { %v8395_v58 = vadd.f32 %v8394_v60, %v8393_v2  ;;  %v8358_v28 = vpop.f32.mrf.mxu0 }
 0x87a   : > { %v8396_v59 = vsel %vm823_vm2, %v8385_v50, 0.0  ;;  %v8373_v5 = vadd.f32 %v8358_v28, %v8260_v49  ;;  %v8388_v11 = vadd.f32 %v9032_v47, %v8374_v25 }
 0x87b   : > { %v8397_v7 = vadd.f32 %v8396_v59, %v8395_v58  ;;  %v13290_v58 = vld [vmem:[#allocation12_spill] sm:$0xff] }
 0x87c   : > { %v8387_v17 = vadd.f32 %v9032_v47, %v8373_v5  ;;  %v8402_v4 = vsel %vm823_vm2, %v8388_v11, 0.0  ;;  %v13291_v5 = vld [vmem:[#allocation13_spill] sm:$0xff] }
 0x87d   : > { %v8399_v23 = vadd.f32 %v8398_v3, %v8397_v7 }
 0x87e   : > { %v8400_v33 = vsel %vm823_vm2, %v8387_v17, 0.0 }
 0x87f   : > { %v8401_v62 = vadd.f32 %v8400_v33, %v8399_v23  ;;  %v13293_v33 = vld [vmem:[#allocation20_spill] sm:$0xff] }
 0x881   : > { %v8403_v61 = vadd.f32 %v8402_v4, %v8401_v62 }
 0x883   : > { %v8404_v51 = vrot.slane %v8403_v61, 4 }
 0x885   : > { %v8405_v19 = vadd.f32 %v8404_v51, %v8403_v61  ;;  %v13294_v61 = vld [vmem:[#allocation14_spill] sm:$0xff] }
 0x887   : > { %v8406_v0 = vrot.slane %v8405_v19, 2 }
 0x889   : > { %v8407_v35 = vadd.f32 %v8406_v0, %v8405_v19  ;;  %v13295_v0 = vld [vmem:[#allocation16_spill] sm:$0xff] }
 0x88b   : > { %v8408_v14 = vrot.slane %v8407_v35, 1 }
 0x88d   : > { %v8409_v24 = vadd.f32 %v8408_v14, %v8407_v35 }
 0x88f   : > { %v8410_v20 = vmul.f32 0.015625, %v8409_v24  ;;  %v13296_v24 = vld [vmem:[#allocation15_spill] sm:$0xff] }
 0x891   : > { %v8411_v52 = vsub.f32 %v8381_v46, %v8410_v20  ;;  %v8412_v30 = vsub.f32 %v8382_v31, %v8410_v20  ;;  %v8413_v8 = vsub.f32 %v8383_v26, %v8410_v20  ;;  %v8414_v1 = vsub.f32 %v8384_v54, %v8410_v20 }
 0x892   : > { %v8415_v40 = vsub.f32 %v8385_v50, %v8410_v20  ;;  %v8416_v36 = vsub.f32 %v8386_v41, %v8410_v20  ;;  %v8417_v34 = vsub.f32 %v8387_v17, %v8410_v20  ;;  %v8418_v46 = vsub.f32 %v8388_v11, %v8410_v20  ;;  %v13289_v41 = vld [vmem:[#allocation17_spill] sm:$0xff]  ;;  %v13292_v11 = vld [vmem:[#allocation19_spill] sm:$0xff] }
 0x893   : > { %v8419_v47 = vmul.f32 %v8411_v52, %v8411_v52  ;;  %v8420_v16 = vmul.f32 %v8412_v30, %v8412_v30  ;;  %v8421_v29 = vmul.f32 %v8413_v8, %v8413_v8  ;;  %v8422_v37 = vmul.f32 %v8414_v1, %v8414_v1 }
 0x894   : > { %v8423_v22 = vmul.f32 %v8415_v40, %v8415_v40  ;;  %v8424_v31 = vmul.f32 %v8416_v36, %v8416_v36  ;;  %v8425_v6 = vmul.f32 %v8417_v34, %v8417_v34  ;;  %v8426_v45 = vmul.f32 %v8418_v46, %v8418_v46 }
 0x895   : > { %v8427_v13 = vsel %vm823_vm2, %v8419_v47, 0.0  ;;  %v8428_v9 = vsel %vm823_vm2, %v8420_v16, 0.0  ;;  %v8430_v57 = vsel %vm823_vm2, %v8421_v29, 0.0  ;;  %v8432_v38 = vsel %vm823_vm2, %v8422_v37, 0.0 }
 0x896   : > { %v8429_v39 = vadd.f32 %v8428_v9, %v8427_v13  ;;  %v8434_v42 = vsel %vm823_vm2, %v8423_v22, 0.0  ;;  %v8436_v15 = vsel %vm823_vm2, %v8424_v31, 0.0  ;;  %v8438_v63 = vsel %vm823_vm2, %v8425_v6, 0.0 }
 0x897   : > { %v8440_v26 = vsel %vm823_vm2, %v8426_v45, 0.0 }
 0x898   : > { %v8431_v53 = vadd.f32 %v8430_v57, %v8429_v39 }
 0x89a   : > { %v8433_v56 = vadd.f32 %v8432_v38, %v8431_v53 }
 0x89c   : > { %v8435_v32 = vadd.f32 %v8434_v42, %v8433_v56 }
 0x89e   : > { %v8437_v10 = vadd.f32 %v8436_v15, %v8435_v32 }
 0x8a0   : > { %v8439_v54 = vadd.f32 %v8438_v63, %v8437_v10 }
 0x8a2   : > { %v8441_v18 = vadd.f32 %v8440_v26, %v8439_v54 }
 0x8a4   : > { %v8442_v21 = vrot.slane %v8441_v18, 4 }
 0x8a6   : > { %v8443_v44 = vadd.f32 %v8442_v21, %v8441_v18 }
 0x8a8   : > { %v8444_v55 = vrot.slane %v8443_v44, 2 }
 0x8aa   : > { %v8445_v48 = vadd.f32 %v8444_v55, %v8443_v44 }
 0x8ac   : > { %v8446_v43 = vrot.slane %v8445_v48, 1 }
 0x8ae   : > { %v8447_v12 = vadd.f32 %v8446_v43, %v8445_v48 }
 0x8b0   : > { %v8448_v2 = vmul.f32 0.015625, %v8447_v12 }
 0x8b2   : > { %v8449_v27 = vadd.f32 1e-05, %v8448_v2 }
 0x8b4   : > { %10337 = vrsqrt.f32 %v8449_v27 }
 0x8c1   : > { %v10338_v49 = vpop.eup %10337 }
 0x8c2   : > { %v8451_v60 = vmul.f32 %v10338_v49, %v8411_v52  ;;  %v8452_v25 = vmul.f32 %v10338_v49, %v8412_v30  ;;  %v8453_v59 = vmul.f32 %v10338_v49, %v8413_v8  ;;  %v8454_v3 = vmul.f32 %v10338_v49, %v8414_v1 }
 0x8c3   : > { %v8455_v23 = vmul.f32 %v10338_v49, %v8415_v40  ;;  %v8456_v4 = vmul.f32 %v10338_v49, %v8416_v36  ;;  %v8457_v19 = vmul.f32 %v10338_v49, %v8417_v34  ;;  %v8458_v14 = vmul.f32 %v10338_v49, %v8418_v46 }
 0x8c4   : > { %v8459_v50 = vadd.f32 %v8451_v60, %v13289_v41  ;;  %v8460_v28 = vadd.f32 %v8452_v25, %v13290_v58  ;;  %v8461_v7 = vadd.f32 %v8453_v59, %v13291_v5  ;;  %v8462_v17 = vadd.f32 %v8454_v3, %v13292_v11 }
 0x8c5   : > { %v8463_v62 = vadd.f32 %v8455_v23, %v13293_v33  ;;  %v8464_v51 = vadd.f32 %v8456_v4, %v13294_v61  ;;  %v8465_v35 = vadd.f32 %v8457_v19, %v13295_v0  ;;  %v8466_v20 = vadd.f32 %v8458_v14, %v13296_v24 }
 0x8c6   : > { %8467 = vxpose.xlu0.b32.start [1/8] (short) (narrow) %v8459_v50, 8 }
 0x8ca   : > { %8468 = vxpose.xlu0.b32.cont [2/8] (short) (narrow) %v8460_v28, 8 }
 0x8ce   : > { %8469 = vxpose.xlu0.b32.cont [3/8] (short) (narrow) %v8461_v7, 8 }
 0x8d2   : > { %8470 = vxpose.xlu0.b32.cont [4/8] (short) (narrow) %v8462_v17, 8 }
 0x8d6   : > { %8471 = vxpose.xlu0.b32.cont [5/8] (short) (narrow) %v8463_v62, 8 }
 0x8da   : > { %8472 = vxpose.xlu0.b32.cont [6/8] (short) (narrow) %v8464_v51, 8 }
 0x8de   : > { %8473 = vxpose.xlu0.b32.cont [7/8] (short) (narrow) %v8465_v35, 8 }
 0x8e2   : > { %8474 = vxpose.xlu0.b32.end [8/8] (short) (narrow) %v8466_v20, 8 }
 0x942   : > { %v8483_v52 = vpop.trf.xlu0 }
 0x943   : > { %8500 = vst.msk [vmem:[%s438_s17] sm:$0xff] %vm8499_vm6, %v8483_v52 }
 0x944 PF: > { %s23_s25 = sadd.s32 1, %s10345_s25  }
 0x945   : > { %p20_p4 = scmp.ge.s32.totalorder %s23_s25, 4  }
 0x947   :  { %22 = sbr.rel (!%p20_p4) target bundleno = 1 (0x1), region = 102 }

</bundles_post_ra>
